<compile_context>
chip_gen: v7x
topology: tpu7x:2x2x1
jax: 0.10.0
libtpu: 0.0.40
codegen_flags: <defaults>
</compile_context>

<pallas_src>
import jax
import jax.numpy as jnp
from jax.experimental import pallas as pl
from jax.experimental.pallas import tpu as pltpu


# ------------------------------- JAX glue ------------------------------------
def fold_bn(gamma, beta, mean, var, eps=1e-5):
    """Eval-mode BN -> (per-channel scale, (1, C) bias)."""
    scale = gamma / jnp.sqrt(var + eps)
    bias = beta - mean * scale
    return scale.astype(jnp.float32), bias[None, :].astype(jnp.float32)


def init_bottleneck_params(key, in_planes, planes):
    expansion = 4
    keys = jax.random.split(key, 15)
    p = {}

    def conv_w(k, shape, fan_in):
        return jax.random.normal(k, shape, jnp.float32) / jnp.sqrt(fan_in)

    p["w1"] = conv_w(keys[0], (planes, in_planes, 1, 1, 1), in_planes)
    p["w2"] = conv_w(keys[1], (planes, planes, 3, 3, 3), planes * 27)
    p["w3"] = conv_w(keys[2], (planes * expansion, planes, 1, 1, 1), planes)

    chans = [planes, planes, planes * expansion]
    for i, c in enumerate(chans):
        base = 3 + 4 * i
        p[f"gamma{i+1}"] = 1.0 + 0.1 * jax.random.normal(keys[base], (c,), jnp.float32)
        p[f"beta{i+1}"] = 0.1 * jax.random.normal(keys[base + 1], (c,), jnp.float32)
        p[f"mean{i+1}"] = 0.1 * jax.random.normal(keys[base + 2], (c,), jnp.float32)
        p[f"var{i+1}"] = jax.random.uniform(keys[base + 3], (c,), jnp.float32,
                                            minval=0.5, maxval=1.5)
    return p


# ------------------------- fused Bottleneck forward ---------------------------
def bottleneck_forward(params, x_ncdhw, stride=1, eps=1e-5):
    """Bottleneck.forward (downsample=None, identity residual), fully fused."""
    if stride != 1:
        # TODO(synk): stride>1 / downsample path not implemented (downsample is
        # None in this config; the identity residual requires stride == 1).
        raise NotImplementedError("Bottleneck with stride != 1 / downsample")

    x = jnp.transpose(x_ncdhw, (0, 2, 3, 4, 1)).astype(jnp.float32)  # NDHWC
    N, D, H, W, Cin = x.shape
    planes = params["w1"].shape[0]
    C3 = params["w3"].shape[0]
    assert Cin == C3, "identity residual requires in_planes == 4 * planes"

    Dp, Hp, Wp = D + 2, H + 2, W + 2
    HW, HpWp = H * W, Hp * Wp
    P = planes

    # ---- fold BN (eval mode): scale into bf16 weights, bias as f32 epilogue --
    s1, b1 = fold_bn(params["gamma1"], params["beta1"], params["mean1"], params["var1"], eps)
    s2, b2 = fold_bn(params["gamma2"], params["beta2"], params["mean2"], params["var2"], eps)
    s3, b3 = fold_bn(params["gamma3"], params["beta3"], params["mean3"], params["var3"], eps)

    w1f = (params["w1"][:, :, 0, 0, 0].T * s1[None, :]).astype(jnp.bfloat16)      # (Cin, P)
    w2f = (jnp.transpose(params["w2"], (2, 3, 4, 1, 0)).reshape(27, P, P)
           * s2[None, None, :]).astype(jnp.bfloat16)                              # (27, P, P)
    w3f = (params["w3"][:, :, 0, 0, 0].T * s3[None, :]).astype(jnp.bfloat16)      # (P, C3)

    # ---- inputs: padded bf16 activations, f32 residual, conv-pad mask --------
    xp = jnp.pad(x, ((0, 0), (1, 1), (1, 1), (1, 1), (0, 0)))
    xp = xp.reshape(N, Dp, HpWp, Cin).astype(jnp.bfloat16)   # (N, Dp, Hp*Wp, Cin)
    res = x.reshape(N, D, HW, Cin)                           # f32 identity residual

    # 1.0 on real pixels of a padded (Hp, Wp) plane, 0.0 on conv-zero-pad ring.
    hw_mask = (jnp.zeros((Hp, Wp), jnp.float32)
               .at[1:H + 1, 1:W + 1].set(1.0).reshape(HpWp, 1))

    # ---- advisory cost estimate ----------------------------------------------
    flops = 2 * N * D * (3 * HpWp * Cin * P + HW * 27 * P * P + HW * P * C3)
    bytes_accessed = (3 * xp.size * 2 + res.size * 4 + N * D * HW * C3 * 4
                      + (w1f.size + w2f.size + w3f.size) * 2
                      + (b1.size + b2.size + b3.size + hw_mask.size) * 4)
    cost = pl.CostEstimate(flops=int(flops), transcendentals=0,
                           bytes_accessed=int(bytes_accessed))

    # ------------------------------ kernel ------------------------------------
    def kernel(x0_ref, x1_ref, x2_ref, res_ref, mask_ref,
               w1_ref, b1_ref, w2_ref, b2_ref, w3_ref, b3_ref,
               o_ref, y1s_ref):
        d = pl.program_id(1)
        mask = mask_ref[...]                                      # (HpWp, 1)

        # -- stage 1: 1x1x1 conv (BN scale folded) + bias + ReLU on the three
        #    padded depth slabs the 3x3x3 conv needs; conv-pad positions -> 0.
        for j, xref in enumerate((x0_ref, x1_ref, x2_ref)):
            a = jnp.dot(xref[0, 0], w1_ref[...],
                        preferred_element_type=jnp.float32)       # (HpWp, P)
            yj = jnp.maximum(a + b1_ref[...], 0.0) * mask
            d_ok = jnp.logical_and(d + j >= 1, d + j <= D)        # real depth slab?
            yj = yj * d_ok.astype(jnp.float32)
            y1s_ref[j] = yj.reshape(Hp, Wp, P)

        # -- stage 2: 3x3x3 conv (BN scale folded) as a 27-tap accumulation
        #    over the VMEM-resident y1 slabs (im2col fused in VMEM).
        acc = jnp.zeros((HW, P), jnp.float32)
        t = 0
        for kd in range(3):
            for kh in range(3):
                for kw in range(3):
                    tap = y1s_ref[kd, kh:kh + H, kw:kw + W, :]    # (H, W, P)
                    tap = tap.reshape(HW, P).astype(jnp.bfloat16)
                    acc = acc + jnp.dot(tap, w2_ref[t],
                                        preferred_element_type=jnp.float32)
                    t += 1
        y2 = jnp.maximum(acc + b2_ref[...], 0.0).astype(jnp.bfloat16)   # (HW, P)

        # -- stage 3: 1x1x1 conv (BN scale folded) + bias + residual + ReLU.
        y3 = jnp.dot(y2, w3_ref[...], preferred_element_type=jnp.float32)
        o_ref[0, 0] = jnp.maximum(y3 + b3_ref[...] + res_ref[0, 0],
                                  0.0).astype(o_ref.dtype)

    out_flat = pl.pallas_call(
        kernel,
        out_shape=jax.ShapeDtypeStruct((N, D, HW, C3), jnp.float32),
        grid_spec=pltpu.PrefetchScalarGridSpec(
            num_scalar_prefetch=0,
            grid=(N, D),
            in_specs=[
                pl.BlockSpec((1, 1, HpWp, Cin), lambda n, d: (n, d, 0, 0)),      # xp slab d
                pl.BlockSpec((1, 1, HpWp, Cin), lambda n, d: (n, d + 1, 0, 0)),  # xp slab d+1
                pl.BlockSpec((1, 1, HpWp, Cin), lambda n, d: (n, d + 2, 0, 0)),  # xp slab d+2
                pl.BlockSpec((1, 1, HW, C3), lambda n, d: (n, d, 0, 0)),         # residual
                pl.BlockSpec((HpWp, 1), lambda n, d: (0, 0)),                    # HW pad mask
                pl.BlockSpec((Cin, P), lambda n, d: (0, 0)),                     # w1 (bf16)
                pl.BlockSpec((1, P), lambda n, d: (0, 0)),                       # b1
                pl.BlockSpec((27, P, P), lambda n, d: (0, 0, 0)),                # w2 (bf16)
                pl.BlockSpec((1, P), lambda n, d: (0, 0)),                       # b2
                pl.BlockSpec((P, C3), lambda n, d: (0, 0)),                      # w3 (bf16)
                pl.BlockSpec((1, C3), lambda n, d: (0, 0)),                      # b3
            ],
            out_specs=pl.BlockSpec((1, 1, HW, C3), lambda n, d: (n, d, 0, 0)),
            scratch_shapes=[pltpu.VMEM((3, Hp, Wp, P), jnp.float32)],            # y1 slabs
        ),
        compiler_params=pltpu.CompilerParams(
            dimension_semantics=("parallel", "parallel"),
            vmem_limit_bytes=64 * 1024 * 1024),
        cost_estimate=cost,
    )(xp, xp, xp, res, hw_mask, w1f, b1, w2f, b2, w3f, b3)

    out = out_flat.reshape(N, D, H, W, C3)
    return jnp.transpose(out, (0, 4, 1, 2, 3))                    # back to NCDHW


# --------------------------- pure-JAX reference ------------------------------
def reference_forward(params, x, stride=1):
    def bn(y, g, b, m, v, eps=1e-5):
        sh = (1, -1, 1, 1, 1)
        return (y - m.reshape(sh)) / jnp.sqrt(v.reshape(sh) + eps) * g.reshape(sh) \
            + b.reshape(sh)

    dn = ("NCDHW", "OIDHW", "NCDHW")
    y = jax.lax.conv_general_dilated(x, params["w1"], (1, 1, 1), "VALID",
                                     dimension_numbers=dn)
    y = jax.nn.relu(bn(y, params["gamma1"], params["beta1"],
                       params["mean1"], params["var1"]))
    y = jax.lax.conv_general_dilated(y, params["w2"], (stride,) * 3,
                                     [(1, 1)] * 3, dimension_numbers=dn)
    y = jax.nn.relu(bn(y, params["gamma2"], params["beta2"],
                       params["mean2"], params["var2"]))
    y = jax.lax.conv_general_dilated(y, params["w3"], (1, 1, 1), "VALID",
                                     dimension_numbers=dn)
    y = bn(y, params["gamma3"], params["beta3"], params["mean3"], params["var3"])
    return jax.nn.relu(y + x)


# ----------------------------------- main ------------------------------------
if __name__ == "__main__":
    key = jax.random.PRNGKey(0)
    kx, kp = jax.random.split(key)

    in_planes, planes = 16, 4          # expansion = 4 -> identity residual
    N, D, H, W = 2, 8, 8, 8
    x = jax.random.normal(kx, (N, in_planes, D, H, W), jnp.float32)
    params = init_bottleneck_params(kp, in_planes, planes)

    fwd = jax.jit(bottleneck_forward)
    out = jax.block_until_ready(fwd(params, x))
    assert out.shape == (N, planes * 4, D, H, W)

    ref = reference_forward(params, x, stride=1)
    # bf16 matmul operands (f32 accumulation / epilogue) -> loose-ish tolerance.
    ok = bool(jnp.allclose(out, ref, atol=5e-2, rtol=5e-2))
    assert ok, f"mismatch vs reference: {float(jnp.max(jnp.abs(out - ref)))}"

    print("KERNEL_OK")
</pallas_src>

<mosaic_0001>
module attributes {stable_mosaic.version = 11 : i64} {
  func.func @kernel(%arg0: i32, %arg1: i32, %arg2: memref<1x1x100x16xbf16, #tpu.memory_space<vmem>>, %arg3: memref<1x1x100x16xbf16, #tpu.memory_space<vmem>>, %arg4: memref<1x1x100x16xbf16, #tpu.memory_space<vmem>>, %arg5: memref<1x1x64x16xf32, #tpu.memory_space<vmem>>, %arg6: memref<100x1xf32, #tpu.memory_space<vmem>>, %arg7: memref<16x4xbf16, #tpu.memory_space<vmem>>, %arg8: memref<1x4xf32, #tpu.memory_space<vmem>>, %arg9: memref<27x4x4xbf16, #tpu.memory_space<vmem>>, %arg10: memref<1x4xf32, #tpu.memory_space<vmem>>, %arg11: memref<4x16xbf16, #tpu.memory_space<vmem>>, %arg12: memref<1x16xf32, #tpu.memory_space<vmem>>, %arg13: memref<1x1x64x16xf32, #tpu.memory_space<vmem>>, %arg14: memref<3x10x10x4xf32, #tpu.memory_space<vmem>>) attributes {dimension_semantics = [#tpu.dimension_semantics<parallel>, #tpu.dimension_semantics<parallel>], iteration_bounds = array<i64: 2, 8>, scalar_prefetch = 0 : i64, scratch_operands = 1 : i64, tpu.core_type = #tpu.core_type<tc>, window_params = [{transform_indices = @transform_0, window_bounds = array<i64: 1, 1, 100, 16>}, {transform_indices = @transform_1, window_bounds = array<i64: 1, 1, 100, 16>}, {transform_indices = @transform_2, window_bounds = array<i64: 1, 1, 100, 16>}, {transform_indices = @transform_3, window_bounds = array<i64: 1, 1, 64, 16>}, {pipeline_mode = #tpu.pipeline_mode<synchronous>, transform_indices = @transform_4, window_bounds = array<i64: 100, 1>}, {pipeline_mode = #tpu.pipeline_mode<synchronous>, transform_indices = @transform_5, window_bounds = array<i64: 16, 4>}, {pipeline_mode = #tpu.pipeline_mode<synchronous>, transform_indices = @transform_6, window_bounds = array<i64: 1, 4>}, {pipeline_mode = #tpu.pipeline_mode<synchronous>, transform_indices = @transform_7, window_bounds = array<i64: 27, 4, 4>}, {pipeline_mode = #tpu.pipeline_mode<synchronous>, transform_indices = @transform_8, window_bounds = array<i64: 1, 4>}, {pipeline_mode = #tpu.pipeline_mode<synchronous>, transform_indices = @transform_9, window_bounds = array<i64: 4, 16>}, {pipeline_mode = #tpu.pipeline_mode<synchronous>, transform_indices = @transform_10, window_bounds = array<i64: 1, 16>}, {transform_indices = @transform_11, window_bounds = array<i64: 1, 1, 64, 16>}]} {
    %c0 = arith.constant 0 : index
    %c0_0 = arith.constant 0 : index
    %0 = vector.load %arg6[%c0, %c0_0] : memref<100x1xf32, #tpu.memory_space<vmem>>, vector<100x1xf32>
    %c0_1 = arith.constant 0 : index
    %c0_2 = arith.constant 0 : index
    %c0_3 = arith.constant 0 : index
    %c0_4 = arith.constant 0 : index
    %1 = vector.load %arg2[%c0_1, %c0_2, %c0_3, %c0_4] : memref<1x1x100x16xbf16, #tpu.memory_space<vmem>>, vector<1x1x100x16xbf16>
    %2 = vector.shape_cast %1 : vector<1x1x100x16xbf16> to vector<100x16xbf16>
    %c0_5 = arith.constant 0 : index
    %c0_6 = arith.constant 0 : index
    %3 = vector.load %arg7[%c0_5, %c0_6] : memref<16x4xbf16, #tpu.memory_space<vmem>>, vector<16x4xbf16>
    %cst = arith.constant dense<0.000000e+00> : vector<100x4xf32>
    %4 = tpu.matmul %2, %3, %cst {dimension_numbers = #tpu.dot_dimension_numbers<[1], [0], [0], [1], [0, 0, 1, 1], [], []>} : vector<100x16xbf16>, vector<16x4xbf16>, vector<100x4xf32> -> vector<100x4xf32>
    %c0_7 = arith.constant 0 : index
    %c0_8 = arith.constant 0 : index
    %5 = vector.load %arg8[%c0_7, %c0_8] : memref<1x4xf32, #tpu.memory_space<vmem>>, vector<1x4xf32>
    %6 = vector.broadcast %5 : vector<1x4xf32> to vector<100x4xf32>
    %7 = arith.addf %4, %6 : vector<100x4xf32>
    %cst_9 = arith.constant 0.000000e+00 : f32
    %8 = vector.broadcast %cst_9 : f32 to vector<100x4xf32>
    %9 = arith.maximumf %7, %8 : vector<100x4xf32>
    %10 = vector.broadcast %0 : vector<100x1xf32> to vector<100x4xf32>
    %11 = arith.mulf %9, %10 : vector<100x4xf32>
    %c0_i32 = arith.constant 0 : i32
    %12 = arith.addi %arg1, %c0_i32 : i32
    %c1_i32 = arith.constant 1 : i32
    %13 = arith.cmpi sge, %12, %c1_i32 : i32
    %c0_i32_10 = arith.constant 0 : i32
    %14 = arith.addi %arg1, %c0_i32_10 : i32
    %c8_i32 = arith.constant 8 : i32
    %15 = arith.cmpi sle, %14, %c8_i32 : i32
    %16 = arith.andi %13, %15 : i1
    %17 = arith.extui %16 : i1 to i32
    %18 = arith.sitofp %17 : i32 to f32
    %19 = vector.broadcast %18 : f32 to vector<100x4xf32>
    %20 = arith.mulf %11, %19 : vector<100x4xf32>
    %21 = vector.shape_cast %20 : vector<100x4xf32> to vector<10x10x4xf32>
    %c0_11 = arith.constant 0 : index
    %c0_12 = arith.constant 0 : index
    %c0_13 = arith.constant 0 : index
    %c0_14 = arith.constant 0 : index
    %22 = vector.load %arg14[%c0_11, %c0_12, %c0_13, %c0_14] : memref<3x10x10x4xf32, #tpu.memory_space<vmem>>, vector<1x10x10x4xf32>
    %23 = vector.shape_cast %22 : vector<1x10x10x4xf32> to vector<10x10x4xf32>
    %24 = vector.shape_cast %21 : vector<10x10x4xf32> to vector<1x10x10x4xf32>
    tpu.vector_store %arg14[%c0_11, %c0_12, %c0_13, %c0_14], %24 {strides = array<i32>} : memref<3x10x10x4xf32, #tpu.memory_space<vmem>>, vector<1x10x10x4xf32>,
    %c0_15 = arith.constant 0 : index
    %c0_16 = arith.constant 0 : index
    %c0_17 = arith.constant 0 : index
    %c0_18 = arith.constant 0 : index
    %25 = vector.load %arg3[%c0_15, %c0_16, %c0_17, %c0_18] : memref<1x1x100x16xbf16, #tpu.memory_space<vmem>>, vector<1x1x100x16xbf16>
    %26 = vector.shape_cast %25 : vector<1x1x100x16xbf16> to vector<100x16xbf16>
    %c0_19 = arith.constant 0 : index
    %c0_20 = arith.constant 0 : index
    %27 = vector.load %arg7[%c0_19, %c0_20] : memref<16x4xbf16, #tpu.memory_space<vmem>>, vector<16x4xbf16>
    %cst_21 = arith.constant dense<0.000000e+00> : vector<100x4xf32>
    %28 = tpu.matmul %26, %27, %cst_21 {dimension_numbers = #tpu.dot_dimension_numbers<[1], [0], [0], [1], [0, 0, 1, 1], [], []>} : vector<100x16xbf16>, vector<16x4xbf16>, vector<100x4xf32> -> vector<100x4xf32>
    %c0_22 = arith.constant 0 : index
    %c0_23 = arith.constant 0 : index
    %29 = vector.load %arg8[%c0_22, %c0_23] : memref<1x4xf32, #tpu.memory_space<vmem>>, vector<1x4xf32>
    %30 = vector.broadcast %29 : vector<1x4xf32> to vector<100x4xf32>
    %31 = arith.addf %28, %30 : vector<100x4xf32>
    %cst_24 = arith.constant 0.000000e+00 : f32
    %32 = vector.broadcast %cst_24 : f32 to vector<100x4xf32>
    %33 = arith.maximumf %31, %32 : vector<100x4xf32>
    %34 = vector.broadcast %0 : vector<100x1xf32> to vector<100x4xf32>
    %35 = arith.mulf %33, %34 : vector<100x4xf32>
    %c1_i32_25 = arith.constant 1 : i32
    %36 = arith.addi %arg1, %c1_i32_25 : i32
    %c1_i32_26 = arith.constant 1 : i32
    %37 = arith.cmpi sge, %36, %c1_i32_26 : i32
    %c1_i32_27 = arith.constant 1 : i32
    %38 = arith.addi %arg1, %c1_i32_27 : i32
    %c8_i32_28 = arith.constant 8 : i32
    %39 = arith.cmpi sle, %38, %c8_i32_28 : i32
    %40 = arith.andi %37, %39 : i1
    %41 = arith.extui %40 : i1 to i32
    %42 = arith.sitofp %41 : i32 to f32
    %43 = vector.broadcast %42 : f32 to vector<100x4xf32>
    %44 = arith.mulf %35, %43 : vector<100x4xf32>
    %45 = vector.shape_cast %44 : vector<100x4xf32> to vector<10x10x4xf32>
    %c1 = arith.constant 1 : index
    %c0_29 = arith.constant 0 : index
    %c0_30 = arith.constant 0 : index
    %c0_31 = arith.constant 0 : index
    %46 = vector.load %arg14[%c1, %c0_29, %c0_30, %c0_31] : memref<3x10x10x4xf32, #tpu.memory_space<vmem>>, vector<1x10x10x4xf32>
    %47 = vector.shape_cast %46 : vector<1x10x10x4xf32> to vector<10x10x4xf32>
    %48 = vector.shape_cast %45 : vector<10x10x4xf32> to vector<1x10x10x4xf32>
    tpu.vector_store %arg14[%c1, %c0_29, %c0_30, %c0_31], %48 {strides = array<i32>} : memref<3x10x10x4xf32, #tpu.memory_space<vmem>>, vector<1x10x10x4xf32>,
    %c0_32 = arith.constant 0 : index
    %c0_33 = arith.constant 0 : index
    %c0_34 = arith.constant 0 : index
    %c0_35 = arith.constant 0 : index
    %49 = vector.load %arg4[%c0_32, %c0_33, %c0_34, %c0_35] : memref<1x1x100x16xbf16, #tpu.memory_space<vmem>>, vector<1x1x100x16xbf16>
    %50 = vector.shape_cast %49 : vector<1x1x100x16xbf16> to vector<100x16xbf16>
    %c0_36 = arith.constant 0 : index
    %c0_37 = arith.constant 0 : index
    %51 = vector.load %arg7[%c0_36, %c0_37] : memref<16x4xbf16, #tpu.memory_space<vmem>>, vector<16x4xbf16>
    %cst_38 = arith.constant dense<0.000000e+00> : vector<100x4xf32>
    %52 = tpu.matmul %50, %51, %cst_38 {dimension_numbers = #tpu.dot_dimension_numbers<[1], [0], [0], [1], [0, 0, 1, 1], [], []>} : vector<100x16xbf16>, vector<16x4xbf16>, vector<100x4xf32> -> vector<100x4xf32>
    %c0_39 = arith.constant 0 : index
    %c0_40 = arith.constant 0 : index
    %53 = vector.load %arg8[%c0_39, %c0_40] : memref<1x4xf32, #tpu.memory_space<vmem>>, vector<1x4xf32>
    %54 = vector.broadcast %53 : vector<1x4xf32> to vector<100x4xf32>
    %55 = arith.addf %52, %54 : vector<100x4xf32>
    %cst_41 = arith.constant 0.000000e+00 : f32
    %56 = vector.broadcast %cst_41 : f32 to vector<100x4xf32>
    %57 = arith.maximumf %55, %56 : vector<100x4xf32>
    %58 = vector.broadcast %0 : vector<100x1xf32> to vector<100x4xf32>
    %59 = arith.mulf %57, %58 : vector<100x4xf32>
    %c2_i32 = arith.constant 2 : i32
    %60 = arith.addi %arg1, %c2_i32 : i32
    %c1_i32_42 = arith.constant 1 : i32
    %61 = arith.cmpi sge, %60, %c1_i32_42 : i32
    %c2_i32_43 = arith.constant 2 : i32
    %62 = arith.addi %arg1, %c2_i32_43 : i32
    %c8_i32_44 = arith.constant 8 : i32
    %63 = arith.cmpi sle, %62, %c8_i32_44 : i32
    %64 = arith.andi %61, %63 : i1
    %65 = arith.extui %64 : i1 to i32
    %66 = arith.sitofp %65 : i32 to f32
    %67 = vector.broadcast %66 : f32 to vector<100x4xf32>
    %68 = arith.mulf %59, %67 : vector<100x4xf32>
    %69 = vector.shape_cast %68 : vector<100x4xf32> to vector<10x10x4xf32>
    %c2 = arith.constant 2 : index
    %c0_45 = arith.constant 0 : index
    %c0_46 = arith.constant 0 : index
    %c0_47 = arith.constant 0 : index
    %70 = vector.load %arg14[%c2, %c0_45, %c0_46, %c0_47] : memref<3x10x10x4xf32, #tpu.memory_space<vmem>>, vector<1x10x10x4xf32>
    %71 = vector.shape_cast %70 : vector<1x10x10x4xf32> to vector<10x10x4xf32>
    %72 = vector.shape_cast %69 : vector<10x10x4xf32> to vector<1x10x10x4xf32>
    tpu.vector_store %arg14[%c2, %c0_45, %c0_46, %c0_47], %72 {strides = array<i32>} : memref<3x10x10x4xf32, #tpu.memory_space<vmem>>, vector<1x10x10x4xf32>,
    %cst_48 = arith.constant 0.000000e+00 : f32
    %73 = vector.broadcast %cst_48 : f32 to vector<64x4xf32>
    %c0_49 = arith.constant 0 : index
    %c0_50 = arith.constant 0 : index
    %c0_51 = arith.constant 0 : index
    %c0_52 = arith.constant 0 : index
    %74 = vector.load %arg14[%c0_49, %c0_50, %c0_51, %c0_52] : memref<3x10x10x4xf32, #tpu.memory_space<vmem>>, vector<1x8x8x4xf32>
    %75 = vector.shape_cast %74 : vector<1x8x8x4xf32> to vector<8x8x4xf32>
    %76 = vector.shape_cast %75 : vector<8x8x4xf32> to vector<64x4xf32>
    %77 = arith.truncf %76 : vector<64x4xf32> to vector<64x4xbf16>
    %c0_53 = arith.constant 0 : index
    %c0_54 = arith.constant 0 : index
    %c0_55 = arith.constant 0 : index
    %78 = vector.load %arg9[%c0_53, %c0_54, %c0_55] : memref<27x4x4xbf16, #tpu.memory_space<vmem>>, vector<1x4x4xbf16>
    %79 = vector.shape_cast %78 : vector<1x4x4xbf16> to vector<4x4xbf16>
    %cst_56 = arith.constant dense<0.000000e+00> : vector<64x4xf32>
    %80 = tpu.matmul %77, %79, %cst_56 {dimension_numbers = #tpu.dot_dimension_numbers<[1], [0], [0], [1], [0, 0, 1, 1], [], []>} : vector<64x4xbf16>, vector<4x4xbf16>, vector<64x4xf32> -> vector<64x4xf32>
    %81 = arith.addf %73, %80 : vector<64x4xf32>
    %c0_57 = arith.constant 0 : index
    %c0_58 = arith.constant 0 : index
    %c1_59 = arith.constant 1 : index
    %c0_60 = arith.constant 0 : index
    %82 = vector.load %arg14[%c0_57, %c0_58, %c1_59, %c0_60] : memref<3x10x10x4xf32, #tpu.memory_space<vmem>>, vector<1x8x8x4xf32>
    %83 = vector.shape_cast %82 : vector<1x8x8x4xf32> to vector<8x8x4xf32>
    %84 = vector.shape_cast %83 : vector<8x8x4xf32> to vector<64x4xf32>
    %85 = arith.truncf %84 : vector<64x4xf32> to vector<64x4xbf16>
    %c1_61 = arith.constant 1 : index
    %c0_62 = arith.constant 0 : index
    %c0_63 = arith.constant 0 : index
    %86 = vector.load %arg9[%c1_61, %c0_62, %c0_63] : memref<27x4x4xbf16, #tpu.memory_space<vmem>>, vector<1x4x4xbf16>
    %87 = vector.shape_cast %86 : vector<1x4x4xbf16> to vector<4x4xbf16>
    %cst_64 = arith.constant dense<0.000000e+00> : vector<64x4xf32>
    %88 = tpu.matmul %85, %87, %cst_64 {dimension_numbers = #tpu.dot_dimension_numbers<[1], [0], [0], [1], [0, 0, 1, 1], [], []>} : vector<64x4xbf16>, vector<4x4xbf16>, vector<64x4xf32> -> vector<64x4xf32>
    %89 = arith.addf %81, %88 : vector<64x4xf32>
    %c0_65 = arith.constant 0 : index
    %c0_66 = arith.constant 0 : index
    %c2_67 = arith.constant 2 : index
    %c0_68 = arith.constant 0 : index
    %90 = vector.load %arg14[%c0_65, %c0_66, %c2_67, %c0_68] : memref<3x10x10x4xf32, #tpu.memory_space<vmem>>, vector<1x8x8x4xf32>
    %91 = vector.shape_cast %90 : vector<1x8x8x4xf32> to vector<8x8x4xf32>
    %92 = vector.shape_cast %91 : vector<8x8x4xf32> to vector<64x4xf32>
    %93 = arith.truncf %92 : vector<64x4xf32> to vector<64x4xbf16>
    %c2_69 = arith.constant 2 : index
    %c0_70 = arith.constant 0 : index
    %c0_71 = arith.constant 0 : index
    %94 = vector.load %arg9[%c2_69, %c0_70, %c0_71] : memref<27x4x4xbf16, #tpu.memory_space<vmem>>, vector<1x4x4xbf16>
    %95 = vector.shape_cast %94 : vector<1x4x4xbf16> to vector<4x4xbf16>
    %cst_72 = arith.constant dense<0.000000e+00> : vector<64x4xf32>
    %96 = tpu.matmul %93, %95, %cst_72 {dimension_numbers = #tpu.dot_dimension_numbers<[1], [0], [0], [1], [0, 0, 1, 1], [], []>} : vector<64x4xbf16>, vector<4x4xbf16>, vector<64x4xf32> -> vector<64x4xf32>
    %97 = arith.addf %89, %96 : vector<64x4xf32>
    %c0_73 = arith.constant 0 : index
    %c1_74 = arith.constant 1 : index
    %c0_75 = arith.constant 0 : index
    %c0_76 = arith.constant 0 : index
    %98 = vector.load %arg14[%c0_73, %c1_74, %c0_75, %c0_76] : memref<3x10x10x4xf32, #tpu.memory_space<vmem>>, vector<1x8x8x4xf32>
    %99 = vector.shape_cast %98 : vector<1x8x8x4xf32> to vector<8x8x4xf32>
    %100 = vector.shape_cast %99 : vector<8x8x4xf32> to vector<64x4xf32>
    %101 = arith.truncf %100 : vector<64x4xf32> to vector<64x4xbf16>
    %c3 = arith.constant 3 : index
    %c0_77 = arith.constant 0 : index
    %c0_78 = arith.constant 0 : index
    %102 = vector.load %arg9[%c3, %c0_77, %c0_78] : memref<27x4x4xbf16, #tpu.memory_space<vmem>>, vector<1x4x4xbf16>
    %103 = vector.shape_cast %102 : vector<1x4x4xbf16> to vector<4x4xbf16>
    %cst_79 = arith.constant dense<0.000000e+00> : vector<64x4xf32>
    %104 = tpu.matmul %101, %103, %cst_79 {dimension_numbers = #tpu.dot_dimension_numbers<[1], [0], [0], [1], [0, 0, 1, 1], [], []>} : vector<64x4xbf16>, vector<4x4xbf16>, vector<64x4xf32> -> vector<64x4xf32>
    %105 = arith.addf %97, %104 : vector<64x4xf32>
    %c0_80 = arith.constant 0 : index
    %c1_81 = arith.constant 1 : index
    %c1_82 = arith.constant 1 : index
    %c0_83 = arith.constant 0 : index
    %106 = vector.load %arg14[%c0_80, %c1_81, %c1_82, %c0_83] : memref<3x10x10x4xf32, #tpu.memory_space<vmem>>, vector<1x8x8x4xf32>
    %107 = vector.shape_cast %106 : vector<1x8x8x4xf32> to vector<8x8x4xf32>
    %108 = vector.shape_cast %107 : vector<8x8x4xf32> to vector<64x4xf32>
    %109 = arith.truncf %108 : vector<64x4xf32> to vector<64x4xbf16>
    %c4 = arith.constant 4 : index
    %c0_84 = arith.constant 0 : index
    %c0_85 = arith.constant 0 : index
    %110 = vector.load %arg9[%c4, %c0_84, %c0_85] : memref<27x4x4xbf16, #tpu.memory_space<vmem>>, vector<1x4x4xbf16>
    %111 = vector.shape_cast %110 : vector<1x4x4xbf16> to vector<4x4xbf16>
    %cst_86 = arith.constant dense<0.000000e+00> : vector<64x4xf32>
    %112 = tpu.matmul %109, %111, %cst_86 {dimension_numbers = #tpu.dot_dimension_numbers<[1], [0], [0], [1], [0, 0, 1, 1], [], []>} : vector<64x4xbf16>, vector<4x4xbf16>, vector<64x4xf32> -> vector<64x4xf32>
    %113 = arith.addf %105, %112 : vector<64x4xf32>
    %c0_87 = arith.constant 0 : index
    %c1_88 = arith.constant 1 : index
    %c2_89 = arith.constant 2 : index
    %c0_90 = arith.constant 0 : index
    %114 = vector.load %arg14[%c0_87, %c1_88, %c2_89, %c0_90] : memref<3x10x10x4xf32, #tpu.memory_space<vmem>>, vector<1x8x8x4xf32>
    %115 = vector.shape_cast %114 : vector<1x8x8x4xf32> to vector<8x8x4xf32>
    %116 = vector.shape_cast %115 : vector<8x8x4xf32> to vector<64x4xf32>
    %117 = arith.truncf %116 : vector<64x4xf32> to vector<64x4xbf16>
    %c5 = arith.constant 5 : index
    %c0_91 = arith.constant 0 : index
    %c0_92 = arith.constant 0 : index
    %118 = vector.load %arg9[%c5, %c0_91, %c0_92] : memref<27x4x4xbf16, #tpu.memory_space<vmem>>, vector<1x4x4xbf16>
    %119 = vector.shape_cast %118 : vector<1x4x4xbf16> to vector<4x4xbf16>
    %cst_93 = arith.constant dense<0.000000e+00> : vector<64x4xf32>
    %120 = tpu.matmul %117, %119, %cst_93 {dimension_numbers = #tpu.dot_dimension_numbers<[1], [0], [0], [1], [0, 0, 1, 1], [], []>} : vector<64x4xbf16>, vector<4x4xbf16>, vector<64x4xf32> -> vector<64x4xf32>
    %121 = arith.addf %113, %120 : vector<64x4xf32>
    %c0_94 = arith.constant 0 : index
    %c2_95 = arith.constant 2 : index
    %c0_96 = arith.constant 0 : index
    %c0_97 = arith.constant 0 : index
    %122 = vector.load %arg14[%c0_94, %c2_95, %c0_96, %c0_97] : memref<3x10x10x4xf32, #tpu.memory_space<vmem>>, vector<1x8x8x4xf32>
    %123 = vector.shape_cast %122 : vector<1x8x8x4xf32> to vector<8x8x4xf32>
    %124 = vector.shape_cast %123 : vector<8x8x4xf32> to vector<64x4xf32>
    %125 = arith.truncf %124 : vector<64x4xf32> to vector<64x4xbf16>
    %c6 = arith.constant 6 : index
    %c0_98 = arith.constant 0 : index
    %c0_99 = arith.constant 0 : index
    %126 = vector.load %arg9[%c6, %c0_98, %c0_99] : memref<27x4x4xbf16, #tpu.memory_space<vmem>>, vector<1x4x4xbf16>
    %127 = vector.shape_cast %126 : vector<1x4x4xbf16> to vector<4x4xbf16>
    %cst_100 = arith.constant dense<0.000000e+00> : vector<64x4xf32>
    %128 = tpu.matmul %125, %127, %cst_100 {dimension_numbers = #tpu.dot_dimension_numbers<[1], [0], [0], [1], [0, 0, 1, 1], [], []>} : vector<64x4xbf16>, vector<4x4xbf16>, vector<64x4xf32> -> vector<64x4xf32>
    %129 = arith.addf %121, %128 : vector<64x4xf32>
    %c0_101 = arith.constant 0 : index
    %c2_102 = arith.constant 2 : index
    %c1_103 = arith.constant 1 : index
    %c0_104 = arith.constant 0 : index
    %130 = vector.load %arg14[%c0_101, %c2_102, %c1_103, %c0_104] : memref<3x10x10x4xf32, #tpu.memory_space<vmem>>, vector<1x8x8x4xf32>
    %131 = vector.shape_cast %130 : vector<1x8x8x4xf32> to vector<8x8x4xf32>
    %132 = vector.shape_cast %131 : vector<8x8x4xf32> to vector<64x4xf32>
    %133 = arith.truncf %132 : vector<64x4xf32> to vector<64x4xbf16>
    %c7 = arith.constant 7 : index
    %c0_105 = arith.constant 0 : index
    %c0_106 = arith.constant 0 : index
    %134 = vector.load %arg9[%c7, %c0_105, %c0_106] : memref<27x4x4xbf16, #tpu.memory_space<vmem>>, vector<1x4x4xbf16>
    %135 = vector.shape_cast %134 : vector<1x4x4xbf16> to vector<4x4xbf16>
    %cst_107 = arith.constant dense<0.000000e+00> : vector<64x4xf32>
    %136 = tpu.matmul %133, %135, %cst_107 {dimension_numbers = #tpu.dot_dimension_numbers<[1], [0], [0], [1], [0, 0, 1, 1], [], []>} : vector<64x4xbf16>, vector<4x4xbf16>, vector<64x4xf32> -> vector<64x4xf32>
    %137 = arith.addf %129, %136 : vector<64x4xf32>
    %c0_108 = arith.constant 0 : index
    %c2_109 = arith.constant 2 : index
    %c2_110 = arith.constant 2 : index
    %c0_111 = arith.constant 0 : index
    %138 = vector.load %arg14[%c0_108, %c2_109, %c2_110, %c0_111] : memref<3x10x10x4xf32, #tpu.memory_space<vmem>>, vector<1x8x8x4xf32>
    %139 = vector.shape_cast %138 : vector<1x8x8x4xf32> to vector<8x8x4xf32>
    %140 = vector.shape_cast %139 : vector<8x8x4xf32> to vector<64x4xf32>
    %141 = arith.truncf %140 : vector<64x4xf32> to vector<64x4xbf16>
    %c8 = arith.constant 8 : index
    %c0_112 = arith.constant 0 : index
    %c0_113 = arith.constant 0 : index
    %142 = vector.load %arg9[%c8, %c0_112, %c0_113] : memref<27x4x4xbf16, #tpu.memory_space<vmem>>, vector<1x4x4xbf16>
    %143 = vector.shape_cast %142 : vector<1x4x4xbf16> to vector<4x4xbf16>
    %cst_114 = arith.constant dense<0.000000e+00> : vector<64x4xf32>
    %144 = tpu.matmul %141, %143, %cst_114 {dimension_numbers = #tpu.dot_dimension_numbers<[1], [0], [0], [1], [0, 0, 1, 1], [], []>} : vector<64x4xbf16>, vector<4x4xbf16>, vector<64x4xf32> -> vector<64x4xf32>
    %145 = arith.addf %137, %144 : vector<64x4xf32>
    %c1_115 = arith.constant 1 : index
    %c0_116 = arith.constant 0 : index
    %c0_117 = arith.constant 0 : index
    %c0_118 = arith.constant 0 : index
    %146 = vector.load %arg14[%c1_115, %c0_116, %c0_117, %c0_118] : memref<3x10x10x4xf32, #tpu.memory_space<vmem>>, vector<1x8x8x4xf32>
    %147 = vector.shape_cast %146 : vector<1x8x8x4xf32> to vector<8x8x4xf32>
    %148 = vector.shape_cast %147 : vector<8x8x4xf32> to vector<64x4xf32>
    %149 = arith.truncf %148 : vector<64x4xf32> to vector<64x4xbf16>
    %c9 = arith.constant 9 : index
    %c0_119 = arith.constant 0 : index
    %c0_120 = arith.constant 0 : index
    %150 = vector.load %arg9[%c9, %c0_119, %c0_120] : memref<27x4x4xbf16, #tpu.memory_space<vmem>>, vector<1x4x4xbf16>
    %151 = vector.shape_cast %150 : vector<1x4x4xbf16> to vector<4x4xbf16>
    %cst_121 = arith.constant dense<0.000000e+00> : vector<64x4xf32>
    %152 = tpu.matmul %149, %151, %cst_121 {dimension_numbers = #tpu.dot_dimension_numbers<[1], [0], [0], [1], [0, 0, 1, 1], [], []>} : vector<64x4xbf16>, vector<4x4xbf16>, vector<64x4xf32> -> vector<64x4xf32>
    %153 = arith.addf %145, %152 : vector<64x4xf32>
    %c1_122 = arith.constant 1 : index
    %c0_123 = arith.constant 0 : index
    %c1_124 = arith.constant 1 : index
    %c0_125 = arith.constant 0 : index
    %154 = vector.load %arg14[%c1_122, %c0_123, %c1_124, %c0_125] : memref<3x10x10x4xf32, #tpu.memory_space<vmem>>, vector<1x8x8x4xf32>
    %155 = vector.shape_cast %154 : vector<1x8x8x4xf32> to vector<8x8x4xf32>
    %156 = vector.shape_cast %155 : vector<8x8x4xf32> to vector<64x4xf32>
    %157 = arith.truncf %156 : vector<64x4xf32> to vector<64x4xbf16>
    %c10 = arith.constant 10 : index
    %c0_126 = arith.constant 0 : index
    %c0_127 = arith.constant 0 : index
    %158 = vector.load %arg9[%c10, %c0_126, %c0_127] : memref<27x4x4xbf16, #tpu.memory_space<vmem>>, vector<1x4x4xbf16>
    %159 = vector.shape_cast %158 : vector<1x4x4xbf16> to vector<4x4xbf16>
    %cst_128 = arith.constant dense<0.000000e+00> : vector<64x4xf32>
    %160 = tpu.matmul %157, %159, %cst_128 {dimension_numbers = #tpu.dot_dimension_numbers<[1], [0], [0], [1], [0, 0, 1, 1], [], []>} : vector<64x4xbf16>, vector<4x4xbf16>, vector<64x4xf32> -> vector<64x4xf32>
    %161 = arith.addf %153, %160 : vector<64x4xf32>
    %c1_129 = arith.constant 1 : index
    %c0_130 = arith.constant 0 : index
    %c2_131 = arith.constant 2 : index
    %c0_132 = arith.constant 0 : index
    %162 = vector.load %arg14[%c1_129, %c0_130, %c2_131, %c0_132] : memref<3x10x10x4xf32, #tpu.memory_space<vmem>>, vector<1x8x8x4xf32>
    %163 = vector.shape_cast %162 : vector<1x8x8x4xf32> to vector<8x8x4xf32>
    %164 = vector.shape_cast %163 : vector<8x8x4xf32> to vector<64x4xf32>
    %165 = arith.truncf %164 : vector<64x4xf32> to vector<64x4xbf16>
    %c11 = arith.constant 11 : index
    %c0_133 = arith.constant 0 : index
    %c0_134 = arith.constant 0 : index
    %166 = vector.load %arg9[%c11, %c0_133, %c0_134] : memref<27x4x4xbf16, #tpu.memory_space<vmem>>, vector<1x4x4xbf16>
    %167 = vector.shape_cast %166 : vector<1x4x4xbf16> to vector<4x4xbf16>
    %cst_135 = arith.constant dense<0.000000e+00> : vector<64x4xf32>
    %168 = tpu.matmul %165, %167, %cst_135 {dimension_numbers = #tpu.dot_dimension_numbers<[1], [0], [0], [1], [0, 0, 1, 1], [], []>} : vector<64x4xbf16>, vector<4x4xbf16>, vector<64x4xf32> -> vector<64x4xf32>
    %169 = arith.addf %161, %168 : vector<64x4xf32>
    %c1_136 = arith.constant 1 : index
    %c1_137 = arith.constant 1 : index
    %c0_138 = arith.constant 0 : index
    %c0_139 = arith.constant 0 : index
    %170 = vector.load %arg14[%c1_136, %c1_137, %c0_138, %c0_139] : memref<3x10x10x4xf32, #tpu.memory_space<vmem>>, vector<1x8x8x4xf32>
    %171 = vector.shape_cast %170 : vector<1x8x8x4xf32> to vector<8x8x4xf32>
    %172 = vector.shape_cast %171 : vector<8x8x4xf32> to vector<64x4xf32>
    %173 = arith.truncf %172 : vector<64x4xf32> to vector<64x4xbf16>
    %c12 = arith.constant 12 : index
    %c0_140 = arith.constant 0 : index
    %c0_141 = arith.constant 0 : index
    %174 = vector.load %arg9[%c12, %c0_140, %c0_141] : memref<27x4x4xbf16, #tpu.memory_space<vmem>>, vector<1x4x4xbf16>
    %175 = vector.shape_cast %174 : vector<1x4x4xbf16> to vector<4x4xbf16>
    %cst_142 = arith.constant dense<0.000000e+00> : vector<64x4xf32>
    %176 = tpu.matmul %173, %175, %cst_142 {dimension_numbers = #tpu.dot_dimension_numbers<[1], [0], [0], [1], [0, 0, 1, 1], [], []>} : vector<64x4xbf16>, vector<4x4xbf16>, vector<64x4xf32> -> vector<64x4xf32>
    %177 = arith.addf %169, %176 : vector<64x4xf32>
    %c1_143 = arith.constant 1 : index
    %c1_144 = arith.constant 1 : index
    %c1_145 = arith.constant 1 : index
    %c0_146 = arith.constant 0 : index
    %178 = vector.load %arg14[%c1_143, %c1_144, %c1_145, %c0_146] : memref<3x10x10x4xf32, #tpu.memory_space<vmem>>, vector<1x8x8x4xf32>
    %179 = vector.shape_cast %178 : vector<1x8x8x4xf32> to vector<8x8x4xf32>
    %180 = vector.shape_cast %179 : vector<8x8x4xf32> to vector<64x4xf32>
    %181 = arith.truncf %180 : vector<64x4xf32> to vector<64x4xbf16>
    %c13 = arith.constant 13 : index
    %c0_147 = arith.constant 0 : index
    %c0_148 = arith.constant 0 : index
    %182 = vector.load %arg9[%c13, %c0_147, %c0_148] : memref<27x4x4xbf16, #tpu.memory_space<vmem>>, vector<1x4x4xbf16>
    %183 = vector.shape_cast %182 : vector<1x4x4xbf16> to vector<4x4xbf16>
    %cst_149 = arith.constant dense<0.000000e+00> : vector<64x4xf32>
    %184 = tpu.matmul %181, %183, %cst_149 {dimension_numbers = #tpu.dot_dimension_numbers<[1], [0], [0], [1], [0, 0, 1, 1], [], []>} : vector<64x4xbf16>, vector<4x4xbf16>, vector<64x4xf32> -> vector<64x4xf32>
    %185 = arith.addf %177, %184 : vector<64x4xf32>
    %c1_150 = arith.constant 1 : index
    %c1_151 = arith.constant 1 : index
    %c2_152 = arith.constant 2 : index
    %c0_153 = arith.constant 0 : index
    %186 = vector.load %arg14[%c1_150, %c1_151, %c2_152, %c0_153] : memref<3x10x10x4xf32, #tpu.memory_space<vmem>>, vector<1x8x8x4xf32>
    %187 = vector.shape_cast %186 : vector<1x8x8x4xf32> to vector<8x8x4xf32>
    %188 = vector.shape_cast %187 : vector<8x8x4xf32> to vector<64x4xf32>
    %189 = arith.truncf %188 : vector<64x4xf32> to vector<64x4xbf16>
    %c14 = arith.constant 14 : index
    %c0_154 = arith.constant 0 : index
    %c0_155 = arith.constant 0 : index
    %190 = vector.load %arg9[%c14, %c0_154, %c0_155] : memref<27x4x4xbf16, #tpu.memory_space<vmem>>, vector<1x4x4xbf16>
    %191 = vector.shape_cast %190 : vector<1x4x4xbf16> to vector<4x4xbf16>
    %cst_156 = arith.constant dense<0.000000e+00> : vector<64x4xf32>
    %192 = tpu.matmul %189, %191, %cst_156 {dimension_numbers = #tpu.dot_dimension_numbers<[1], [0], [0], [1], [0, 0, 1, 1], [], []>} : vector<64x4xbf16>, vector<4x4xbf16>, vector<64x4xf32> -> vector<64x4xf32>
    %193 = arith.addf %185, %192 : vector<64x4xf32>
    %c1_157 = arith.constant 1 : index
    %c2_158 = arith.constant 2 : index
    %c0_159 = arith.constant 0 : index
    %c0_160 = arith.constant 0 : index
    %194 = vector.load %arg14[%c1_157, %c2_158, %c0_159, %c0_160] : memref<3x10x10x4xf32, #tpu.memory_space<vmem>>, vector<1x8x8x4xf32>
    %195 = vector.shape_cast %194 : vector<1x8x8x4xf32> to vector<8x8x4xf32>
    %196 = vector.shape_cast %195 : vector<8x8x4xf32> to vector<64x4xf32>
    %197 = arith.truncf %196 : vector<64x4xf32> to vector<64x4xbf16>
    %c15 = arith.constant 15 : index
    %c0_161 = arith.constant 0 : index
    %c0_162 = arith.constant 0 : index
    %198 = vector.load %arg9[%c15, %c0_161, %c0_162] : memref<27x4x4xbf16, #tpu.memory_space<vmem>>, vector<1x4x4xbf16>
    %199 = vector.shape_cast %198 : vector<1x4x4xbf16> to vector<4x4xbf16>
    %cst_163 = arith.constant dense<0.000000e+00> : vector<64x4xf32>
    %200 = tpu.matmul %197, %199, %cst_163 {dimension_numbers = #tpu.dot_dimension_numbers<[1], [0], [0], [1], [0, 0, 1, 1], [], []>} : vector<64x4xbf16>, vector<4x4xbf16>, vector<64x4xf32> -> vector<64x4xf32>
    %201 = arith.addf %193, %200 : vector<64x4xf32>
    %c1_164 = arith.constant 1 : index
    %c2_165 = arith.constant 2 : index
    %c1_166 = arith.constant 1 : index
    %c0_167 = arith.constant 0 : index
    %202 = vector.load %arg14[%c1_164, %c2_165, %c1_166, %c0_167] : memref<3x10x10x4xf32, #tpu.memory_space<vmem>>, vector<1x8x8x4xf32>
    %203 = vector.shape_cast %202 : vector<1x8x8x4xf32> to vector<8x8x4xf32>
    %204 = vector.shape_cast %203 : vector<8x8x4xf32> to vector<64x4xf32>
    %205 = arith.truncf %204 : vector<64x4xf32> to vector<64x4xbf16>
    %c16 = arith.constant 16 : index
    %c0_168 = arith.constant 0 : index
    %c0_169 = arith.constant 0 : index
    %206 = vector.load %arg9[%c16, %c0_168, %c0_169] : memref<27x4x4xbf16, #tpu.memory_space<vmem>>, vector<1x4x4xbf16>
    %207 = vector.shape_cast %206 : vector<1x4x4xbf16> to vector<4x4xbf16>
    %cst_170 = arith.constant dense<0.000000e+00> : vector<64x4xf32>
    %208 = tpu.matmul %205, %207, %cst_170 {dimension_numbers = #tpu.dot_dimension_numbers<[1], [0], [0], [1], [0, 0, 1, 1], [], []>} : vector<64x4xbf16>, vector<4x4xbf16>, vector<64x4xf32> -> vector<64x4xf32>
    %209 = arith.addf %201, %208 : vector<64x4xf32>
    %c1_171 = arith.constant 1 : index
    %c2_172 = arith.constant 2 : index
    %c2_173 = arith.constant 2 : index
    %c0_174 = arith.constant 0 : index
    %210 = vector.load %arg14[%c1_171, %c2_172, %c2_173, %c0_174] : memref<3x10x10x4xf32, #tpu.memory_space<vmem>>, vector<1x8x8x4xf32>
    %211 = vector.shape_cast %210 : vector<1x8x8x4xf32> to vector<8x8x4xf32>
    %212 = vector.shape_cast %211 : vector<8x8x4xf32> to vector<64x4xf32>
    %213 = arith.truncf %212 : vector<64x4xf32> to vector<64x4xbf16>
    %c17 = arith.constant 17 : index
    %c0_175 = arith.constant 0 : index
    %c0_176 = arith.constant 0 : index
    %214 = vector.load %arg9[%c17, %c0_175, %c0_176] : memref<27x4x4xbf16, #tpu.memory_space<vmem>>, vector<1x4x4xbf16>
    %215 = vector.shape_cast %214 : vector<1x4x4xbf16> to vector<4x4xbf16>
    %cst_177 = arith.constant dense<0.000000e+00> : vector<64x4xf32>
    %216 = tpu.matmul %213, %215, %cst_177 {dimension_numbers = #tpu.dot_dimension_numbers<[1], [0], [0], [1], [0, 0, 1, 1], [], []>} : vector<64x4xbf16>, vector<4x4xbf16>, vector<64x4xf32> -> vector<64x4xf32>
    %217 = arith.addf %209, %216 : vector<64x4xf32>
    %c2_178 = arith.constant 2 : index
    %c0_179 = arith.constant 0 : index
    %c0_180 = arith.constant 0 : index
    %c0_181 = arith.constant 0 : index
    %218 = vector.load %arg14[%c2_178, %c0_179, %c0_180, %c0_181] : memref<3x10x10x4xf32, #tpu.memory_space<vmem>>, vector<1x8x8x4xf32>
    %219 = vector.shape_cast %218 : vector<1x8x8x4xf32> to vector<8x8x4xf32>
    %220 = vector.shape_cast %219 : vector<8x8x4xf32> to vector<64x4xf32>
    %221 = arith.truncf %220 : vector<64x4xf32> to vector<64x4xbf16>
    %c18 = arith.constant 18 : index
    %c0_182 = arith.constant 0 : index
    %c0_183 = arith.constant 0 : index
    %222 = vector.load %arg9[%c18, %c0_182, %c0_183] : memref<27x4x4xbf16, #tpu.memory_space<vmem>>, vector<1x4x4xbf16>
    %223 = vector.shape_cast %222 : vector<1x4x4xbf16> to vector<4x4xbf16>
    %cst_184 = arith.constant dense<0.000000e+00> : vector<64x4xf32>
    %224 = tpu.matmul %221, %223, %cst_184 {dimension_numbers = #tpu.dot_dimension_numbers<[1], [0], [0], [1], [0, 0, 1, 1], [], []>} : vector<64x4xbf16>, vector<4x4xbf16>, vector<64x4xf32> -> vector<64x4xf32>
    %225 = arith.addf %217, %224 : vector<64x4xf32>
    %c2_185 = arith.constant 2 : index
    %c0_186 = arith.constant 0 : index
    %c1_187 = arith.constant 1 : index
    %c0_188 = arith.constant 0 : index
    %226 = vector.load %arg14[%c2_185, %c0_186, %c1_187, %c0_188] : memref<3x10x10x4xf32, #tpu.memory_space<vmem>>, vector<1x8x8x4xf32>
    %227 = vector.shape_cast %226 : vector<1x8x8x4xf32> to vector<8x8x4xf32>
    %228 = vector.shape_cast %227 : vector<8x8x4xf32> to vector<64x4xf32>
    %229 = arith.truncf %228 : vector<64x4xf32> to vector<64x4xbf16>
    %c19 = arith.constant 19 : index
    %c0_189 = arith.constant 0 : index
    %c0_190 = arith.constant 0 : index
    %230 = vector.load %arg9[%c19, %c0_189, %c0_190] : memref<27x4x4xbf16, #tpu.memory_space<vmem>>, vector<1x4x4xbf16>
    %231 = vector.shape_cast %230 : vector<1x4x4xbf16> to vector<4x4xbf16>
    %cst_191 = arith.constant dense<0.000000e+00> : vector<64x4xf32>
    %232 = tpu.matmul %229, %231, %cst_191 {dimension_numbers = #tpu.dot_dimension_numbers<[1], [0], [0], [1], [0, 0, 1, 1], [], []>} : vector<64x4xbf16>, vector<4x4xbf16>, vector<64x4xf32> -> vector<64x4xf32>
    %233 = arith.addf %225, %232 : vector<64x4xf32>
    %c2_192 = arith.constant 2 : index
    %c0_193 = arith.constant 0 : index
    %c2_194 = arith.constant 2 : index
    %c0_195 = arith.constant 0 : index
    %234 = vector.load %arg14[%c2_192, %c0_193, %c2_194, %c0_195] : memref<3x10x10x4xf32, #tpu.memory_space<vmem>>, vector<1x8x8x4xf32>
    %235 = vector.shape_cast %234 : vector<1x8x8x4xf32> to vector<8x8x4xf32>
    %236 = vector.shape_cast %235 : vector<8x8x4xf32> to vector<64x4xf32>
    %237 = arith.truncf %236 : vector<64x4xf32> to vector<64x4xbf16>
    %c20 = arith.constant 20 : index
    %c0_196 = arith.constant 0 : index
    %c0_197 = arith.constant 0 : index
    %238 = vector.load %arg9[%c20, %c0_196, %c0_197] : memref<27x4x4xbf16, #tpu.memory_space<vmem>>, vector<1x4x4xbf16>
    %239 = vector.shape_cast %238 : vector<1x4x4xbf16> to vector<4x4xbf16>
    %cst_198 = arith.constant dense<0.000000e+00> : vector<64x4xf32>
    %240 = tpu.matmul %237, %239, %cst_198 {dimension_numbers = #tpu.dot_dimension_numbers<[1], [0], [0], [1], [0, 0, 1, 1], [], []>} : vector<64x4xbf16>, vector<4x4xbf16>, vector<64x4xf32> -> vector<64x4xf32>
    %241 = arith.addf %233, %240 : vector<64x4xf32>
    %c2_199 = arith.constant 2 : index
    %c1_200 = arith.constant 1 : index
    %c0_201 = arith.constant 0 : index
    %c0_202 = arith.constant 0 : index
    %242 = vector.load %arg14[%c2_199, %c1_200, %c0_201, %c0_202] : memref<3x10x10x4xf32, #tpu.memory_space<vmem>>, vector<1x8x8x4xf32>
    %243 = vector.shape_cast %242 : vector<1x8x8x4xf32> to vector<8x8x4xf32>
    %244 = vector.shape_cast %243 : vector<8x8x4xf32> to vector<64x4xf32>
    %245 = arith.truncf %244 : vector<64x4xf32> to vector<64x4xbf16>
    %c21 = arith.constant 21 : index
    %c0_203 = arith.constant 0 : index
    %c0_204 = arith.constant 0 : index
    %246 = vector.load %arg9[%c21, %c0_203, %c0_204] : memref<27x4x4xbf16, #tpu.memory_space<vmem>>, vector<1x4x4xbf16>
    %247 = vector.shape_cast %246 : vector<1x4x4xbf16> to vector<4x4xbf16>
    %cst_205 = arith.constant dense<0.000000e+00> : vector<64x4xf32>
    %248 = tpu.matmul %245, %247, %cst_205 {dimension_numbers = #tpu.dot_dimension_numbers<[1], [0], [0], [1], [0, 0, 1, 1], [], []>} : vector<64x4xbf16>, vector<4x4xbf16>, vector<64x4xf32> -> vector<64x4xf32>
    %249 = arith.addf %241, %248 : vector<64x4xf32>
    %c2_206 = arith.constant 2 : index
    %c1_207 = arith.constant 1 : index
    %c1_208 = arith.constant 1 : index
    %c0_209 = arith.constant 0 : index
    %250 = vector.load %arg14[%c2_206, %c1_207, %c1_208, %c0_209] : memref<3x10x10x4xf32, #tpu.memory_space<vmem>>, vector<1x8x8x4xf32>
    %251 = vector.shape_cast %250 : vector<1x8x8x4xf32> to vector<8x8x4xf32>
    %252 = vector.shape_cast %251 : vector<8x8x4xf32> to vector<64x4xf32>
    %253 = arith.truncf %252 : vector<64x4xf32> to vector<64x4xbf16>
    %c22 = arith.constant 22 : index
    %c0_210 = arith.constant 0 : index
    %c0_211 = arith.constant 0 : index
    %254 = vector.load %arg9[%c22, %c0_210, %c0_211] : memref<27x4x4xbf16, #tpu.memory_space<vmem>>, vector<1x4x4xbf16>
    %255 = vector.shape_cast %254 : vector<1x4x4xbf16> to vector<4x4xbf16>
    %cst_212 = arith.constant dense<0.000000e+00> : vector<64x4xf32>
    %256 = tpu.matmul %253, %255, %cst_212 {dimension_numbers = #tpu.dot_dimension_numbers<[1], [0], [0], [1], [0, 0, 1, 1], [], []>} : vector<64x4xbf16>, vector<4x4xbf16>, vector<64x4xf32> -> vector<64x4xf32>
    %257 = arith.addf %249, %256 : vector<64x4xf32>
    %c2_213 = arith.constant 2 : index
    %c1_214 = arith.constant 1 : index
    %c2_215 = arith.constant 2 : index
    %c0_216 = arith.constant 0 : index
    %258 = vector.load %arg14[%c2_213, %c1_214, %c2_215, %c0_216] : memref<3x10x10x4xf32, #tpu.memory_space<vmem>>, vector<1x8x8x4xf32>
    %259 = vector.shape_cast %258 : vector<1x8x8x4xf32> to vector<8x8x4xf32>
    %260 = vector.shape_cast %259 : vector<8x8x4xf32> to vector<64x4xf32>
    %261 = arith.truncf %260 : vector<64x4xf32> to vector<64x4xbf16>
    %c23 = arith.constant 23 : index
    %c0_217 = arith.constant 0 : index
    %c0_218 = arith.constant 0 : index
    %262 = vector.load %arg9[%c23, %c0_217, %c0_218] : memref<27x4x4xbf16, #tpu.memory_space<vmem>>, vector<1x4x4xbf16>
    %263 = vector.shape_cast %262 : vector<1x4x4xbf16> to vector<4x4xbf16>
    %cst_219 = arith.constant dense<0.000000e+00> : vector<64x4xf32>
    %264 = tpu.matmul %261, %263, %cst_219 {dimension_numbers = #tpu.dot_dimension_numbers<[1], [0], [0], [1], [0, 0, 1, 1], [], []>} : vector<64x4xbf16>, vector<4x4xbf16>, vector<64x4xf32> -> vector<64x4xf32>
    %265 = arith.addf %257, %264 : vector<64x4xf32>
    %c2_220 = arith.constant 2 : index
    %c2_221 = arith.constant 2 : index
    %c0_222 = arith.constant 0 : index
    %c0_223 = arith.constant 0 : index
    %266 = vector.load %arg14[%c2_220, %c2_221, %c0_222, %c0_223] : memref<3x10x10x4xf32, #tpu.memory_space<vmem>>, vector<1x8x8x4xf32>
    %267 = vector.shape_cast %266 : vector<1x8x8x4xf32> to vector<8x8x4xf32>
    %268 = vector.shape_cast %267 : vector<8x8x4xf32> to vector<64x4xf32>
    %269 = arith.truncf %268 : vector<64x4xf32> to vector<64x4xbf16>
    %c24 = arith.constant 24 : index
    %c0_224 = arith.constant 0 : index
    %c0_225 = arith.constant 0 : index
    %270 = vector.load %arg9[%c24, %c0_224, %c0_225] : memref<27x4x4xbf16, #tpu.memory_space<vmem>>, vector<1x4x4xbf16>
    %271 = vector.shape_cast %270 : vector<1x4x4xbf16> to vector<4x4xbf16>
    %cst_226 = arith.constant dense<0.000000e+00> : vector<64x4xf32>
    %272 = tpu.matmul %269, %271, %cst_226 {dimension_numbers = #tpu.dot_dimension_numbers<[1], [0], [0], [1], [0, 0, 1, 1], [], []>} : vector<64x4xbf16>, vector<4x4xbf16>, vector<64x4xf32> -> vector<64x4xf32>
    %273 = arith.addf %265, %272 : vector<64x4xf32>
    %c2_227 = arith.constant 2 : index
    %c2_228 = arith.constant 2 : index
    %c1_229 = arith.constant 1 : index
    %c0_230 = arith.constant 0 : index
    %274 = vector.load %arg14[%c2_227, %c2_228, %c1_229, %c0_230] : memref<3x10x10x4xf32, #tpu.memory_space<vmem>>, vector<1x8x8x4xf32>
    %275 = vector.shape_cast %274 : vector<1x8x8x4xf32> to vector<8x8x4xf32>
    %276 = vector.shape_cast %275 : vector<8x8x4xf32> to vector<64x4xf32>
    %277 = arith.truncf %276 : vector<64x4xf32> to vector<64x4xbf16>
    %c25 = arith.constant 25 : index
    %c0_231 = arith.constant 0 : index
    %c0_232 = arith.constant 0 : index
    %278 = vector.load %arg9[%c25, %c0_231, %c0_232] : memref<27x4x4xbf16, #tpu.memory_space<vmem>>, vector<1x4x4xbf16>
    %279 = vector.shape_cast %278 : vector<1x4x4xbf16> to vector<4x4xbf16>
    %cst_233 = arith.constant dense<0.000000e+00> : vector<64x4xf32>
    %280 = tpu.matmul %277, %279, %cst_233 {dimension_numbers = #tpu.dot_dimension_numbers<[1], [0], [0], [1], [0, 0, 1, 1], [], []>} : vector<64x4xbf16>, vector<4x4xbf16>, vector<64x4xf32> -> vector<64x4xf32>
    %281 = arith.addf %273, %280 : vector<64x4xf32>
    %c2_234 = arith.constant 2 : index
    %c2_235 = arith.constant 2 : index
    %c2_236 = arith.constant 2 : index
    %c0_237 = arith.constant 0 : index
    %282 = vector.load %arg14[%c2_234, %c2_235, %c2_236, %c0_237] : memref<3x10x10x4xf32, #tpu.memory_space<vmem>>, vector<1x8x8x4xf32>
    %283 = vector.shape_cast %282 : vector<1x8x8x4xf32> to vector<8x8x4xf32>
    %284 = vector.shape_cast %283 : vector<8x8x4xf32> to vector<64x4xf32>
    %285 = arith.truncf %284 : vector<64x4xf32> to vector<64x4xbf16>
    %c26 = arith.constant 26 : index
    %c0_238 = arith.constant 0 : index
    %c0_239 = arith.constant 0 : index
    %286 = vector.load %arg9[%c26, %c0_238, %c0_239] : memref<27x4x4xbf16, #tpu.memory_space<vmem>>, vector<1x4x4xbf16>
    %287 = vector.shape_cast %286 : vector<1x4x4xbf16> to vector<4x4xbf16>
    %cst_240 = arith.constant dense<0.000000e+00> : vector<64x4xf32>
    %288 = tpu.matmul %285, %287, %cst_240 {dimension_numbers = #tpu.dot_dimension_numbers<[1], [0], [0], [1], [0, 0, 1, 1], [], []>} : vector<64x4xbf16>, vector<4x4xbf16>, vector<64x4xf32> -> vector<64x4xf32>
    %289 = arith.addf %281, %288 : vector<64x4xf32>
    %c0_241 = arith.constant 0 : index
    %c0_242 = arith.constant 0 : index
    %290 = vector.load %arg10[%c0_241, %c0_242] : memref<1x4xf32, #tpu.memory_space<vmem>>, vector<1x4xf32>
    %291 = vector.broadcast %290 : vector<1x4xf32> to vector<64x4xf32>
    %292 = arith.addf %289, %291 : vector<64x4xf32>
    %cst_243 = arith.constant 0.000000e+00 : f32
    %293 = vector.broadcast %cst_243 : f32 to vector<64x4xf32>
    %294 = arith.maximumf %292, %293 : vector<64x4xf32>
    %295 = arith.truncf %294 : vector<64x4xf32> to vector<64x4xbf16>
    %c0_244 = arith.constant 0 : index
    %c0_245 = arith.constant 0 : index
    %296 = vector.load %arg11[%c0_244, %c0_245] : memref<4x16xbf16, #tpu.memory_space<vmem>>, vector<4x16xbf16>
    %cst_246 = arith.constant dense<0.000000e+00> : vector<64x16xf32>
    %297 = tpu.matmul %295, %296, %cst_246 {dimension_numbers = #tpu.dot_dimension_numbers<[1], [0], [0], [1], [0, 0, 1, 1], [], []>} : vector<64x4xbf16>, vector<4x16xbf16>, vector<64x16xf32> -> vector<64x16xf32>
    %c0_247 = arith.constant 0 : index
    %c0_248 = arith.constant 0 : index
    %298 = vector.load %arg12[%c0_247, %c0_248] : memref<1x16xf32, #tpu.memory_space<vmem>>, vector<1x16xf32>
    %299 = vector.broadcast %298 : vector<1x16xf32> to vector<64x16xf32>
    %300 = arith.addf %297, %299 : vector<64x16xf32>
    %c0_249 = arith.constant 0 : index
    %c0_250 = arith.constant 0 : index
    %c0_251 = arith.constant 0 : index
    %c0_252 = arith.constant 0 : index
    %301 = vector.load %arg5[%c0_249, %c0_250, %c0_251, %c0_252] : memref<1x1x64x16xf32, #tpu.memory_space<vmem>>, vector<1x1x64x16xf32>
    %302 = vector.shape_cast %301 : vector<1x1x64x16xf32> to vector<64x16xf32>
    %303 = arith.addf %300, %302 : vector<64x16xf32>
    %cst_253 = arith.constant 0.000000e+00 : f32
    %304 = vector.broadcast %cst_253 : f32 to vector<64x16xf32>
    %305 = arith.maximumf %303, %304 : vector<64x16xf32>
    %c0_254 = arith.constant 0 : index
    %c0_255 = arith.constant 0 : index
    %c0_256 = arith.constant 0 : index
    %c0_257 = arith.constant 0 : index
    %306 = vector.load %arg13[%c0_254, %c0_255, %c0_256, %c0_257] : memref<1x1x64x16xf32, #tpu.memory_space<vmem>>, vector<1x1x64x16xf32>
    %307 = vector.shape_cast %306 : vector<1x1x64x16xf32> to vector<64x16xf32>
    %308 = vector.shape_cast %305 : vector<64x16xf32> to vector<1x1x64x16xf32>
    tpu.vector_store %arg13[%c0_254, %c0_255, %c0_256, %c0_257], %308 {strides = array<i32>} : memref<1x1x64x16xf32, #tpu.memory_space<vmem>>, vector<1x1x64x16xf32>,
    return
  }
  func.func @transform_0(%arg0: i32, %arg1: i32) -> (i32, i32, i32, i32) {
    %c0_i32 = arith.constant 0 : i32
    %c0_i32_0 = arith.constant 0 : i32
    %c0_i32_1 = arith.constant 0 : i32
    return %arg0, %arg1, %c0_i32, %c0_i32_0 : i32, i32, i32, i32
  }
  func.func @transform_1(%arg0: i32, %arg1: i32) -> (i32, i32, i32, i32) {
    %c1_i32 = arith.constant 1 : i32
    %0 = arith.addi %arg1, %c1_i32 : i32
    %c0_i32 = arith.constant 0 : i32
    %c0_i32_0 = arith.constant 0 : i32
    %c0_i32_1 = arith.constant 0 : i32
    return %arg0, %0, %c0_i32, %c0_i32_0 : i32, i32, i32, i32
  }
  func.func @transform_2(%arg0: i32, %arg1: i32) -> (i32, i32, i32, i32) {
    %c2_i32 = arith.constant 2 : i32
    %0 = arith.addi %arg1, %c2_i32 : i32
    %c0_i32 = arith.constant 0 : i32
    %c0_i32_0 = arith.constant 0 : i32
    %c0_i32_1 = arith.constant 0 : i32
    return %arg0, %0, %c0_i32, %c0_i32_0 : i32, i32, i32, i32
  }
  func.func @transform_3(%arg0: i32, %arg1: i32) -> (i32, i32, i32, i32) {
    %c0_i32 = arith.constant 0 : i32
    %c0_i32_0 = arith.constant 0 : i32
    %c0_i32_1 = arith.constant 0 : i32
    return %arg0, %arg1, %c0_i32, %c0_i32_0 : i32, i32, i32, i32
  }
  func.func @transform_4(%arg0: i32, %arg1: i32) -> (i32, i32) {
    %c0_i32 = arith.constant 0 : i32
    %c0_i32_0 = arith.constant 0 : i32
    %c0_i32_1 = arith.constant 0 : i32
    return %c0_i32, %c0_i32_0 : i32, i32
  }
  func.func @transform_5(%arg0: i32, %arg1: i32) -> (i32, i32) {
    %c0_i32 = arith.constant 0 : i32
    %c0_i32_0 = arith.constant 0 : i32
    %c0_i32_1 = arith.constant 0 : i32
    return %c0_i32, %c0_i32_0 : i32, i32
  }
  func.func @transform_6(%arg0: i32, %arg1: i32) -> (i32, i32) {
    %c0_i32 = arith.constant 0 : i32
    %c0_i32_0 = arith.constant 0 : i32
    %c0_i32_1 = arith.constant 0 : i32
    return %c0_i32, %c0_i32_0 : i32, i32
  }
  func.func @transform_7(%arg0: i32, %arg1: i32) -> (i32, i32, i32) {
    %c0_i32 = arith.constant 0 : i32
    %c0_i32_0 = arith.constant 0 : i32
    %c0_i32_1 = arith.constant 0 : i32
    %c0_i32_2 = arith.constant 0 : i32
    return %c0_i32, %c0_i32_0, %c0_i32_1 : i32, i32, i32
  }
  func.func @transform_8(%arg0: i32, %arg1: i32) -> (i32, i32) {
    %c0_i32 = arith.constant 0 : i32
    %c0_i32_0 = arith.constant 0 : i32
    %c0_i32_1 = arith.constant 0 : i32
    return %c0_i32, %c0_i32_0 : i32, i32
  }
  func.func @transform_9(%arg0: i32, %arg1: i32) -> (i32, i32) {
    %c0_i32 = arith.constant 0 : i32
    %c0_i32_0 = arith.constant 0 : i32
    %c0_i32_1 = arith.constant 0 : i32
    return %c0_i32, %c0_i32_0 : i32, i32
  }
  func.func @transform_10(%arg0: i32, %arg1: i32) -> (i32, i32) {
    %c0_i32 = arith.constant 0 : i32
    %c0_i32_0 = arith.constant 0 : i32
    %c0_i32_1 = arith.constant 0 : i32
    return %c0_i32, %c0_i32_0 : i32, i32
  }
  func.func @transform_11(%arg0: i32, %arg1: i32) -> (i32, i32, i32, i32) {
    %c0_i32 = arith.constant 0 : i32
    %c0_i32_0 = arith.constant 0 : i32
    %c0_i32_1 = arith.constant 0 : i32
    return %arg0, %arg1, %c0_i32, %c0_i32_0 : i32, i32, i32, i32
  }
}

</mosaic_0001>

<bundles_post_ra>
// kernel: bottleneck_forward.1
= control target key start
LH: loop header
LB: loop body
LE: loop exit
PB: predicated region body
PF: predicated region fallthrough
CT: control target
= control target key end

     0   :  { %s9544_s0 = inlined_call_operand.hbm [shape: bf16[2,10,100,16], index: 0, kind: input, shape index: {}, may-alias: {0,1,2}]   ;;  %s9545_s1 = inlined_call_operand.hbm [shape: bf16[2,10,100,16], index: 1, kind: input, shape index: {}, may-alias: {0,1,2}]   ;;  %s9546_s2 = inlined_call_operand.hbm [shape: bf16[2,10,100,16], index: 2, kind: input, shape index: {}, may-alias: {0,1,2}]   ;;  %s9547_s3 = inlined_call_operand.hbm [shape: f32[2,8,64,16], index: 3, kind: input, shape index: {}]   ;;  %s9548_s4 = inlined_call_operand.hbm [shape: f32[100,1], index: 4, kind: input, shape index: {}]   ;;  %s9549_s5 = inlined_call_operand.hbm [shape: bf16[16,4], index: 5, kind: input, shape index: {}]   ;;  %s9550_s6 = inlined_call_operand.hbm [shape: f32[1,4], index: 6, kind: input, shape index: {}]   ;;  %s9551_s7 = inlined_call_operand.hbm [shape: bf16[27,4,4], index: 7, kind: input, shape index: {}]   ;;  %s9552_s8 = inlined_call_operand.hbm [shape: f32[1,4], index: 8, kind: input, shape index: {}]   ;;  %s9553_s9 = inlined_call_operand.hbm [shape: bf16[4,16], index: 9, kind: input, shape index: {}]   ;;  %s9554_s10 = inlined_call_operand.hbm [shape: f32[1,16], index: 10, kind: input, shape index: {}]   ;;  %s9555_s11 = inlined_call_operand.hbm [shape: f32[2,8,64,16], index: 11, kind: output, shape index: {}]  }
   0x1   :  { %9594 = sst [smem:[#allocation49_spill]] %s9544_s0 }
   0x2   :  { %9595 = sst [smem:[#allocation50_spill]] %s9545_s1 }
   0x3   :  { %9596 = sst [smem:[#allocation51_spill]] %s9546_s2 }
   0x4   :  { %9597 = sst [smem:[#allocation52_spill]] %s9547_s3 }
   0x5   :  { %9598 = sst [smem:[#allocation53_spill]] %s9548_s4 }
   0x6   :  { %9599 = sst [smem:[#allocation54_spill]] %s9549_s5 }
   0x7   :  { %9600 = sst [smem:[#allocation55_spill]] %s9550_s6 }
   0x8   :  { %9601 = sst [smem:[#allocation56_spill]] %s9551_s7 }
   0x9   :  { %9602 = sst [smem:[#allocation57_spill]] %s9552_s8 }
   0xa   :  { %9603 = sst [smem:[#allocation58_spill]] %s9553_s9 }
   0xb   :  { %9604 = sst [smem:[#allocation59_spill]] %s9554_s10 }
   0xc   :  { %9605 = sst [smem:[#allocation60_spill]] %s9555_s11 }
   0xd   :  { %16 = vsyncpa [#allocation4], 0 }
   0xe   :  { %18 = vsyncpa [#allocation4 + $0x1], 0 }
   0xf   :  { %19 = vsyncpa [#allocation7], 0 }
  0x10   :  { %21 = vsyncpa [#allocation7 + $0x1], 0 }
  0x11   :  { %22 = vsyncpa [#allocation10], 0 }
  0x12   :  { %24 = vsyncpa [#allocation10 + $0x1], 0 }
  0x13   :  { %25 = vsyncpa [#allocation13], 0 }
  0x14   :  { %26 = vsyncpa [#allocation16], 0 }
  0x15   :  { %27 = vsyncpa [#allocation19], 0 }
  0x16   :  { %28 = vsyncpa [#allocation5], 0 }
  0x17   :  { %30 = vsyncpa [#allocation5 + $0x1], 0  ;;  %s7848_s17 = smov 0   ;;  %s7850_s18 = smov 0  }
  0x18   :  { %s7852_s19 = smov 0   ;;  %s7854_s20 = smov 0  }
  0x19   :  { %s7856_s21 = smov 0   ;;  %s7858_s22 = smov 0  }
  0x1a   :  { %s7860_s23 = smov 0   ;;  %s7862_s24 = smov 0  }
  0x1b   :  { %s7864_s25 = smov 0   ;;  %s7866_s26 = smov 0  }
  0x1c   :  { %s7868_s27 = smov 0   ;;  %s7870_s28 = smov 0  }
  0x1d   :  { %s7872_s29 = smov 0   ;;  %s7874_s30 = smov 0  }
  0x1e LB: > { %9606 = sst [smem:[#allocation31_spill]] %s7710_s17  ;;  %s7919_s12 = sadd.s32 4294967295, %s7762_s30   ;;  %s7762_s30 = sphi %s7874_s30, %s36_s30   ;;  %s7758_s29 = sphi %s7872_s29, %s9721_s29   ;;  %s7754_s28 = sphi %s7870_s28, %s9720_s28   ;;  %s7750_s27 = sphi %s7868_s27, %s9719_s27   ;;  %s7746_s26 = sphi %s7866_s26, %s9718_s26   ;;  %s7742_s25 = sphi %s7864_s25, %s9711_s25   ;;  %s7738_s24 = sphi %s7862_s24, %s9710_s24   ;;  %s7734_s23 = sphi %s7860_s23, %s9709_s23   ;;  %s7730_s22 = sphi %s7858_s22, %s9717_s22   ;;  %s7726_s21 = sphi %s7856_s21, %s9716_s21   ;;  %s7722_s20 = sphi %s7854_s20, %s9715_s20   ;;  %s7718_s19 = sphi %s7852_s19, %s9714_s19   ;;  %s7714_s18 = sphi %s7850_s18, %s9707_s18   ;;  %s7710_s17 = sphi %s7848_s17, %s9706_s17  }
  0x1f   : > { %9607 = sst [smem:[#allocation32_spill]] %s7714_s18  ;;  %p6044_p0 = scmp.ge.s32.totalorder %s7762_s30, 1 }
  0x20   : > { %9608 = sst [smem:[#allocation33_spill]] %s7718_s19  ;;  %p9562_p1 = scmp.eq.s32.totalorder %s7919_s12, 0 }
  0x21   : > { %9609 = sst [smem:[#allocation34_spill]] %s7734_s23  ;;  %p344_p2 = scmp.lt.s32.totalorder %s7762_s30, 17 }
  0x22   : > { %9610 = sst [smem:[#allocation35_spill]] %s7738_s24  ;;  %s7764_s14 = smov [#allocation11]  }
  0x23   : > { %9611 = sst [smem:[#allocation36_spill]] %s7742_s25  ;;  %p7924_p3 = pnand %p6044_p0, %p344_p2 }
  0x24   : > { %9612 = sst [smem:[#allocation37_spill]] %s7746_s26  ;;  %s356_s15 = sshll.u32 %s7764_s14, 4  ;;  %s357_s15 = int_to_ptr.vmem [resolvable:$true] %s356_s15 }
  0x25   : > { %9613 = sst [smem:[#allocation38_spill]] %s7750_s27  ;;  %p7057_p4 = pneg %p7924_p3 }
  0x26   : > { %s9614_s13 = scalar_select %p7924_p3, 1, 0 }
  0x27   : > { %p7932_p5 = pnand %p7057_p4, %p9562_p1  ;;  %s7765_s11 = smov [#allocation12]  }
  0x28   : > { %9615 = sst [smem:[#allocation39_spill]] %s9614_s13  ;;  %s369_s27 = sshll.u32 %s7765_s11, 4  ;;  %s7936_s27 = int_to_ptr.vmem [resolvable:$true] %s369_s27 }
  0x29   : > { %s9616_s16 = scalar_select %p7932_p5, 1, 0 }
  0x2a   : > { %s9617_s4 = sld [smem:[#allocation53_spill]]  ;;  %p7946_p7 = pneg %p7932_p5 }
  0x30   : > { %s7270_s2 = scalar_lea.hbm %s9617_s4, 1664 }
  0x31   : > { %p7271_p6 = scmp.ne.s32.totalorder %s9617_s4, %s7270_s2  ;;  %p7277_p10 = scmp.lt.u32.totalorder %s7270_s2, %s9617_s4 }
  0x33   : > { %p7273_p8 = pnand %p7946_p7, %p7271_p6 }
  0x35   : > { %p7274_p9 = pneg %p7273_p8 }
  0x37   : > { %p7279_p11 = pnand %p7277_p10, %p7274_p9 }
  0x39   : > { %7282 = shalt.err (!%p7279_p11)
}
  0x3a   : > { %s7283_s3 = scalar_lea.vmem %s357_s15, 1664  ;;  %p7291_p2 = scmp.lt.s32.totalorder %s357_s15, %s357_s15 }
  0x3b   : > { %p7284_p12 = scmp.ne.s32.totalorder %s357_s15, %s7283_s3  ;;  %p7292_p4 = scmp.lt.s32.totalorder %s7283_s3, %s7283_s3 }
  0x3d   : > { %p7286_p13 = pnand %p7284_p12, %p7946_p7  ;;  %p7293_p1 = por %p7292_p4, %p7291_p2 }
  0x3f   : > { %p7287_p0 = pneg %p7286_p13 }
  0x41   : > { %p7294_p3 = pnand %p7293_p1, %p7287_p0 }
  0x43   : > { %7297 = shalt.err (!%p7294_p3)
}
  0x44   : > { %s9567_s17 = smov 128   ;;  %s9568_s18 = smov 8  }
  0x45   : > { %7060 = dma.hbm_to_vmem [thread:$0]  (!%p7932_p5), %s9617_s4, 1664, %s357_s15, [#allocation10], %s9567_s17, %s9567_s17, %s9568_s18  }
  0x46   : > { %s9619_s5 = sld [smem:[#allocation54_spill]] }
  0x4c   : > { %s7298_s19 = scalar_lea.hbm %s9619_s5, 128 }
  0x4d   : > { %p7299_p1 = scmp.ne.s32.totalorder %s9619_s5, %s7298_s19  ;;  %p7305_p8 = scmp.lt.u32.totalorder %s7298_s19, %s9619_s5 }
  0x4f   : > { %p7301_p3 = pnand %p7299_p1, %p7946_p7 }
  0x51   : > { %p7302_p6 = pneg %p7301_p3 }
  0x53   : > { %p7307_p9 = pnand %p7305_p8, %p7302_p6 }
  0x55   : > { %7310 = shalt.err (!%p7307_p9)
}
  0x56   : > { %s7311_s15 = scalar_lea.vmem %s7936_s27, 128  ;;  %p7319_p13 = scmp.lt.s32.totalorder %s7936_s27, %s7936_s27 }
  0x57   : > { %p7312_p10 = scmp.ne.s32.totalorder %s7936_s27, %s7311_s15  ;;  %p7320_p0 = scmp.lt.s32.totalorder %s7311_s15, %s7311_s15 }
  0x59   : > { %p7314_p11 = pnand %p7312_p10, %p7946_p7  ;;  %p7321_p2 = por %p7320_p0, %p7319_p13 }
  0x5b   : > { %p7315_p12 = pneg %p7314_p11 }
  0x5d   : > { %p7322_p4 = pnand %p7321_p2, %p7315_p12 }
  0x5f   : > { %7325 = shalt.err (!%p7322_p4)
}
  0x60   : > { %s9569_s0 = smov 64   ;;  %s9571_s19 = smov 4  }
  0x61   : > { %7063 = dma.hbm_to_vmem [thread:$0]  (!%p7932_p5), %s9619_s5, 128, %s7936_s27, [#allocation13], %s9569_s0, %s9569_s0, %s9571_s19  }
  0x62   : > { %s7770_s2 = smov [#allocation15]   ;;  %s9620_s7 = sld [smem:[#allocation56_spill]] }
  0x63   : > { %s393_s26 = sshll.u32 %s7770_s2, 4  ;;  %s394_s26 = int_to_ptr.vmem [resolvable:$true] %s393_s26 }
  0x68   : > { %s7326_s3 = scalar_lea.hbm %s9620_s7, 864 }
  0x69   : > { %p7327_p1 = scmp.ne.s32.totalorder %s9620_s7, %s7326_s3  ;;  %p7333_p8 = scmp.lt.u32.totalorder %s7326_s3, %s9620_s7 }
  0x6b   : > { %p7329_p3 = pnand %p7327_p1, %p7946_p7 }
  0x6d   : > { %p7330_p6 = pneg %p7329_p3 }
  0x6f   : > { %p7335_p9 = pnand %p7333_p8, %p7330_p6 }
  0x71   : > { %7338 = shalt.err (!%p7335_p9)
}
  0x72   : > { %s7339_s27 = scalar_lea.vmem %s394_s26, 864  ;;  %p7347_p13 = scmp.lt.s32.totalorder %s394_s26, %s394_s26 }
  0x73   : > { %p7340_p10 = scmp.ne.s32.totalorder %s394_s26, %s7339_s27  ;;  %p7348_p0 = scmp.lt.s32.totalorder %s7339_s27, %s7339_s27 }
  0x75   : > { %p7342_p11 = pnand %p7340_p10, %p7946_p7  ;;  %p7349_p2 = por %p7348_p0, %p7347_p13 }
  0x77   : > { %p7343_p12 = pneg %p7342_p11 }
  0x79   : > { %p7350_p4 = pnand %p7349_p2, %p7343_p12 }
  0x7b   : > { %7353 = shalt.err (!%p7350_p4)
}
  0x7c   : > { %s7771_s17 = smov 32   ;;  %s7772_s23 = smov 2  }
  0x7d   : > { %7069 = dma.hbm_to_vmem [thread:$0]  (!%p7932_p5), %s9620_s7, 864, %s394_s26, [#allocation16], %s7771_s17, %s7771_s17, %s7772_s23  }
  0x7e   : > { %s7773_s24 = smov [#allocation18]   ;;  %s9621_s9 = sld [smem:[#allocation58_spill]] }
  0x7f   : > { %s418_s2 = sshll.u32 %s7773_s24, 4  ;;  %s419_s2 = int_to_ptr.vmem [resolvable:$true] %s418_s2 }
  0x84   : > { %s7354_s3 = scalar_lea.hbm %s9621_s9, 32 }
  0x85   : > { %p7355_p1 = scmp.ne.s32.totalorder %s9621_s9, %s7354_s3  ;;  %p7361_p8 = scmp.lt.u32.totalorder %s7354_s3, %s9621_s9 }
  0x87   : > { %p7357_p3 = pnand %p7355_p1, %p7946_p7 }
  0x89   : > { %p7358_p6 = pneg %p7357_p3 }
  0x8b   : > { %p7363_p9 = pnand %p7361_p8, %p7358_p6 }
  0x8d   : > { %7366 = shalt.err (!%p7363_p9)
}
  0x8e   : > { %s7367_s26 = scalar_lea.vmem %s419_s2, 32  ;;  %p7375_p13 = scmp.lt.s32.totalorder %s419_s2, %s419_s2 }
  0x8f   : > { %p7368_p10 = scmp.ne.s32.totalorder %s419_s2, %s7367_s26  ;;  %p7376_p0 = scmp.lt.s32.totalorder %s7367_s26, %s7367_s26 }
  0x91   : > { %p7370_p11 = pnand %p7368_p10, %p7946_p7  ;;  %p7377_p2 = por %p7376_p0, %p7375_p13 }
  0x93   : > { %p7371_p12 = pneg %p7370_p11 }
  0x95   : > { %p7378_p4 = pnand %p7377_p2, %p7371_p12 }
  0x97   : > { %7381 = shalt.err (!%p7378_p4)
}
  0x98   : > { %7075 = dma.hbm_to_vmem [thread:$0]  (!%p7932_p5), %s9621_s9, 32, %s419_s2, [#allocation19]  }
  0x99   : > { %s45_s0 = sadd.s32 1, %s7754_s28  ;;  %s48_s19 = sadd.s32 1, %s7758_s29 }
  0x9a   : > { %p46_p1 = scmp.ge.s32.totalorder %s45_s0, 8  ;;  %p9577_p3 = scmp.eq.s32.totalorder %s7762_s30, 0 }
  0x9b   : > { %s87_s4 = sadd.s32 1, %s7730_s22  ;;  %p94_p6 = scmp.ne.s32.totalorder %s7730_s22, %s7726_s21 }
  0x9c   : > { %s8033_s18 = scalar_select %p46_p1, 0, %s45_s0  }
  0x9d   : > { %s9723_s19 = smov (!%p46_p1, %s48_s19), %s7758_s29  ;;  %p8039_p8 = por %p94_p6, %p9577_p3 }
  0x9e   : > { %9622 = sst [smem:[#allocation40_spill]] %s8033_s18  ;;  %s81_s24 = sadd.s32 1, %s8033_s18 }
  0x9f   : > { %p50_p9 = scmp.ge.s32.totalorder %s9723_s19, 2  ;;  %s83_s13 = ssub.s32 %s45_s0, %s81_s24 }
  0xa0   : > { %p100_p10 = scmp.ne.s32.totalorder %s7726_s21, %s7722_s20  ;;  %p9625_p11 = scmp.eq.s32.totalorder %s7919_s12, 0 }
  0xa1   : > { %s9725_s19 = smov (%p50_p9, %s9723_s19), 0  ;;  %p9576_p13 = scmp.lt.s32.totalorder %s7762_s30, 16 }
  0xa2   : > { %9624 = sst [smem:[#allocation41_spill]] %s9725_s19  ;;  %p8050_p12 = por %p100_p10, %p9625_p11 }
  0xa3   : > { %s8057_s15 = ssub.s32 %s7758_s29, %s9725_s19  ;;  %s7012_s27 = smul.u32 13, %s7754_s28 }
  0xa4   : > { %s9626_s3 = scalar_select %p8050_p12, 1, 0 }
  0xa5   : > { %s84_s26 = sor.u32 %s83_s13, %s8057_s15  ;;  %s7013_s17 = smul.u32 130, %s7758_s29 }
  0xa6   : > { %9627 = sst [smem:[#allocation42_spill]] %s9626_s3  ;;  %p85_p0 = scmp.eq.s32.totalorder %s84_s26, 0 }
  0xa7   : > { %s9581_s20 = sand.u32 1, %s7762_s30   ;;  %s450_s23 = sadd.s32 %s7013_s17, %s7012_s27 }
  0xa8   : > { %s8064_s0 = scalar_select %p85_p0, %s7730_s22, %s87_s4  }
  0xa9   : > { %s8066_s24 = sshll.u32 %s450_s23, 6  ;;  %s465_s11 = sand.u32 1, %s7730_s22  }
  0xaa   : > { %9628 = sst [smem:[#allocation43_spill]] %s8064_s0  ;;  %s7014_s5 = smul.u32 52, %s465_s11 }
  0xab   : > { %s9629_s1 = sld [smem:[#allocation50_spill]]  ;;  %p8079_p2 = pnand %p9576_p13, %p8039_p8 }
  0xac   : > { %s467_s4 = scalar_lea.vmem [#allocation6], %s7014_s5  ;;  %s8087_s7 = scalar_lea.sflag [#allocation7], %s9581_s20 }
  0xad   : > { %s477_s27 = sshll.u32 %s467_s4, 4  ;;  %p7384_p1 = pneg %p8079_p2  ;;  %s8083_s27 = int_to_ptr.vmem [resolvable:$true] %s477_s27 }
  0xb1   : > { %s5860_s19 = scalar_lea.hbm %s9629_s1, %s8066_s24  ;;  %s7387_s26 = scalar_lea.hbm %s9629_s1, 16640 }
  0xb2   : > { %s8073_s3 = scalar_lea.hbm %s5860_s19, 832  ;;  %s7412_s9 = scalar_lea.hbm %s5860_s19, 1664 }
  0xb3   : > { %p7383_p4 = scmp.ne.s32.totalorder %s8073_s3, %s7412_s9  ;;  %p7388_p9 = scmp.lt.u32.totalorder %s8073_s3, %s9629_s1 }
  0xb4   : > { %p7389_p10 = scmp.lt.u32.totalorder %s7387_s26, %s7412_s9  ;;  %p7391_p0 = scmp.lt.u32.totalorder %s7412_s9, %s8073_s3 }
  0xb5   : > { %p7385_p6 = pnand %p7384_p1, %p7383_p4 }
  0xb6   : > { %p7390_p11 = por %p7389_p10, %p7388_p9 }
  0xb7   : > { %p7386_p8 = pneg %p7385_p6 }
  0xb8   : > { %p7392_p13 = por %p7391_p0, %p7390_p11 }
  0xba   : > { %p7393_p3 = pnand %p7392_p13, %p7386_p8 }
  0xbc   : > { %7396 = shalt.err (!%p7393_p3)
}
  0xbd   : > { %s7397_s19 = scalar_lea.vmem %s8083_s27, 832  ;;  %s7774_s23 = smov [#allocation6]  }
  0xbe   : > { %p7398_p4 = scmp.ne.s32.totalorder %s8083_s27, %s7397_s19  ;;  %s7402_s4 = sshll.u32 %s7774_s23, 4  ;;  %s7403_s4 = int_to_ptr.vmem [resolvable:$false] %s7402_s4 }
  0xbf   : > { %s7404_s2 = scalar_lea.vmem %s7403_s4, 1664  ;;  %p7405_p5 = scmp.lt.s32.totalorder %s8083_s27, %s7403_s4 }
  0xc0   : > { %p7400_p6 = pnand %p7398_p4, %p7384_p1  ;;  %p7406_p9 = scmp.lt.s32.totalorder %s7404_s2, %s7397_s19 }
  0xc2   : > { %p7401_p12 = pneg %p7400_p6  ;;  %p7407_p10 = por %p7406_p9, %p7405_p5 }
  0xc4   : > { %p7408_p11 = pnand %p7407_p10, %p7401_p12 }
  0xc6   : > { %7411 = shalt.err (!%p7408_p11)
}
  0xc7   : > { %s9631_s9 = smov 4   ;;  %s9632_s11 = smov 64  }
  0xc8   : > { %7085 = dma.hbm_to_vmem [thread:$0]  (!%p8079_p2), %s8073_s3, 832, %s8083_s27, %s8087_s7, %s9632_s11, %s9632_s11, %s9631_s9  }
  0xc9   : > { %s7775_s26 = smov [#allocation14]   ;;  %s7776_s5 = smov [#allocation17]  }
  0xca   : > { %s383_s17 = sshll.u32 %s7775_s26, 4  ;;  %s407_s23 = sshll.u32 %s7776_s5, 4  ;;  %s384_s17 = int_to_ptr.vmem [resolvable:$true] %s383_s17  ;;  %s408_s23 = int_to_ptr.vmem [resolvable:$true] %s407_s23 }
  0xcb   : > { %s9633_s6 = sld [smem:[#allocation55_spill]] }
  0xd1   : > { %s7413_s2 = scalar_lea.hbm %s9633_s6, 16 }
  0xd2   : > { %p7414_p5 = scmp.ne.s32.totalorder %s9633_s6, %s7413_s2  ;;  %p7420_p13 = scmp.lt.u32.totalorder %s7413_s2, %s9633_s6 }
  0xd4   : > { %p7416_p3 = pnand %p7414_p5, %p7946_p7 }
  0xd6   : > { %p7417_p12 = pneg %p7416_p3 }
  0xd8   : > { %p7422_p2 = pnand %p7420_p13, %p7417_p12 }
  0xda   : > { %7425 = shalt.err (!%p7422_p2)
}
  0xdb   : > { %s7426_s3 = scalar_lea.vmem %s384_s17, 16  ;;  %s7433_s27 = scalar_lea.vmem %s384_s17, 32 }
  0xdc   : > { %p7427_p1 = scmp.ne.s32.totalorder %s384_s17, %s7426_s3  ;;  %p7434_p4 = scmp.lt.s32.totalorder %s384_s17, %s384_s17 }
  0xdd   : > { %p7435_p6 = scmp.lt.s32.totalorder %s7433_s27, %s7426_s3 }
  0xde   : > { %p7429_p8 = pnand %p7427_p1, %p7946_p7 }
  0xdf   : > { %p7436_p9 = por %p7435_p6, %p7434_p4 }
  0xe0   : > { %p7430_p0 = pneg %p7429_p8 }
  0xe2   : > { %p7437_p10 = pnand %p7436_p9, %p7430_p0 }
  0xe4   : > { %7440 = shalt.err (!%p7437_p10)
}
  0xe5   : > { %p9634_p11 = scmp.ne.s32.totalorder %s9616_s16, 0  ;;  %s9635_s8 = sld [smem:[#allocation57_spill]] }
  0xe7   : > { %7066 = dma.hbm_to_vmem [thread:$0]  (!%p9634_p11), %s9633_s6, 16, %s384_s17, [#allocation13]  }
  0xeb   : > { %s7441_s5 = scalar_lea.hbm %s9635_s8, 16 }
  0xec   : > { %p7442_p5 = scmp.ne.s32.totalorder %s9635_s8, %s7441_s5  ;;  %p7448_p13 = scmp.lt.u32.totalorder %s7441_s5, %s9635_s8 }
  0xee   : > { %p7444_p3 = pnand %p7442_p5, %p7946_p7 }
  0xf0   : > { %p7445_p12 = pneg %p7444_p3 }
  0xf2   : > { %p7450_p2 = pnand %p7448_p13, %p7445_p12 }
  0xf4   : > { %7453 = shalt.err (!%p7450_p2)
}
  0xf5   : > { %s7454_s3 = scalar_lea.vmem %s408_s23, 16  ;;  %s7461_s17 = scalar_lea.vmem %s408_s23, 32 }
  0xf6   : > { %p7455_p1 = scmp.ne.s32.totalorder %s408_s23, %s7454_s3  ;;  %p7462_p4 = scmp.lt.s32.totalorder %s408_s23, %s408_s23 }
  0xf7   : > { %p7463_p6 = scmp.lt.s32.totalorder %s7461_s17, %s7454_s3 }
  0xf8   : > { %p7457_p8 = pnand %p7455_p1, %p7946_p7 }
  0xf9   : > { %p7464_p9 = por %p7463_p6, %p7462_p4 }
  0xfa   : > { %p7458_p0 = pneg %p7457_p8 }
  0xfc   : > { %p7465_p10 = pnand %p7464_p9, %p7458_p0 }
  0xfe   : > { %7468 = shalt.err (!%p7465_p10)
}
  0xff   : > { %7072 = dma.hbm_to_vmem [thread:$0]  (!%p9634_p11), %s9635_s8, 16, %s408_s23, [#allocation16]  }
 0x100   : > { %s7777_s20 = smov [#allocation20]   ;;  %s9636_s10 = sld [smem:[#allocation59_spill]] }
 0x101   : > { %s429_s0 = sshll.u32 %s7777_s20, 4  ;;  %s430_s0 = int_to_ptr.vmem [resolvable:$true] %s429_s0 }
 0x106   : > { %s7469_s4 = scalar_lea.hbm %s9636_s10, 16 }
 0x107   : > { %p7470_p5 = scmp.ne.s32.totalorder %s9636_s10, %s7469_s4  ;;  %p7476_p13 = scmp.lt.u32.totalorder %s7469_s4, %s9636_s10 }
 0x109   : > { %p7472_p3 = pnand %p7470_p5, %p7946_p7 }
 0x10b   : > { %p7473_p12 = pneg %p7472_p3 }
 0x10d   : > { %p7478_p2 = pnand %p7476_p13, %p7473_p12 }
 0x10f   : > { %7481 = shalt.err (!%p7478_p2)
}
 0x110   : > { %s7482_s23 = scalar_lea.vmem %s430_s0, 16  ;;  %s7489_s17 = scalar_lea.vmem %s430_s0, 32 }
 0x111   : > { %p7483_p1 = scmp.ne.s32.totalorder %s430_s0, %s7482_s23  ;;  %p7490_p4 = scmp.lt.s32.totalorder %s430_s0, %s430_s0 }
 0x112   : > { %p7491_p6 = scmp.lt.s32.totalorder %s7489_s17, %s7482_s23 }
 0x113   : > { %p7485_p8 = pnand %p7483_p1, %p7946_p7 }
 0x114   : > { %p7492_p9 = por %p7491_p6, %p7490_p4 }
 0x115   : > { %p7486_p0 = pneg %p7485_p8 }
 0x117   : > { %p7493_p10 = pnand %p7492_p9, %p7486_p0 }
 0x119   : > { %7496 = shalt.err (!%p7493_p10)
}
 0x11a   : > { %s9637_s20 = sld [smem:[#allocation35_spill]]  ;;  %s9638_s14 = sld [smem:[#allocation34_spill]] }
 0x11b   : > { %7078 = dma.hbm_to_vmem [thread:$0]  (!%p9634_p11), %s9636_s10, 16, %s430_s0, [#allocation19]  }
 0x11c   : > { %s6043_s16 = sadd.s32 4294967294, %s7762_s30   ;;  %s53_s26 = ssub.s32 %s7754_s28, %s8033_s18 }
 0x11d   : > { %s54_s5 = sor.u32 %s53_s26, %s8057_s15  ;;  %s57_s4 = sadd.s32 1, %s7742_s25 }
 0x11e   : > { %p55_p7 = scmp.eq.s32.totalorder %s54_s5, 0  ;;  %p331_p12 = scmp.eq.s32.totalorder %s7919_s12, 15 }
 0x11f   : > { %p9640_p13 = scmp.eq.s32.totalorder %s7762_s30, 0  ;;  %p9641_p1 = scmp.eq.s32.totalorder %s7919_s12, 0 }
 0x120   : > { %p64_p5 = scmp.ne.s32.totalorder %s7742_s25, %s9637_s20  ;;  %p70_p3 = scmp.ne.s32.totalorder %s9637_s20, %s9638_s14 }
 0x121   : > { %s8182_s19 = scalar_select %p55_p7, %s7742_s25, %s57_s4  }
 0x122   : > { %p66_p2 = por %p9640_p13, %p64_p5  ;;  %p8188_p8 = por %p9641_p1, %p70_p3 }
 0x123   : > { %9639 = sst [smem:[#allocation44_spill]] %s8182_s19  ;;  %p8192_p0 = por %p331_p12, %p64_p5 }
 0x124   : > { %s9642_s2 = scalar_select %p8188_p8, 1, 0 }
 0x125   : > { %s9643_s0 = scalar_select %p8192_p0, 1, 0 }
 0x126   : > { %p337_p11 = scmp.eq.s32.totalorder %s6043_s16, 15  ;;  %s8197_s13 = sand.u32 1, %s7742_s25  }
 0x127   : > { %9644 = sst [smem:[#allocation45_spill]] %s9643_s0  ;;  %s9645_s17 = sld [smem:[#allocation49_spill]] }
 0x128   : > { %p8205_p4 = por %p337_p11, %p70_p3  ;;  %s7011_s14 = smul.u32 52, %s8197_s13 }
 0x129   : > { %p9648_p6 = scmp.lt.s32.totalorder %s7762_s30, 16  ;;  %s441_s4 = scalar_lea.sflag [#allocation4], %s8197_s13 }
 0x12a   : > { %s9647_s20 = scalar_select %p8205_p4, 1, 0 }
 0x12b   : > { %p8212_p9 = pnand %p9648_p6, %p66_p2  ;;  %s444_s26 = scalar_lea.vmem [#allocation3], %s7011_s14 }
 0x12c   : > { %s453_s5 = sshll.u32 %s444_s26, 4  ;;  %s8216_s5 = int_to_ptr.vmem [resolvable:$true] %s453_s5 }
 0x12d   : > { %s9646_s1 = smov %s9645_s17  ;;  %s8203_s27 = scalar_lea.hbm %s9645_s17, %s8066_s24 }
 0x12e   : > { %s7497_s3 = scalar_lea.hbm %s8203_s27, 832  ;;  %p9588_p7 = pneg %p8212_p9 }
 0x12f   : > { %p7498_p10 = scmp.ne.s32.totalorder %s8203_s27, %s7497_s3  ;;  %s7502_s6 = scalar_lea.hbm %s9646_s1, 16640 }
 0x130   : > { %p7503_p12 = scmp.lt.u32.totalorder %s8203_s27, %s9646_s1  ;;  %p7504_p13 = scmp.lt.u32.totalorder %s7502_s6, %s7497_s3 }
 0x131   : > { %p7500_p5 = pnand %p9588_p7, %p7498_p10  ;;  %p7506_p1 = scmp.lt.u32.totalorder %s7497_s3, %s8203_s27 }
 0x132   : > { %p7505_p2 = por %p7504_p13, %p7503_p12 }
 0x133   : > { %p7501_p3 = pneg %p7500_p5 }
 0x134   : > { %p7507_p11 = por %p7506_p1, %p7505_p2 }
 0x136   : > { %p7508_p6 = pnand %p7507_p11, %p7501_p3 }
 0x138   : > { %7511 = shalt.err (!%p7508_p6)
}
 0x139   : > { %s7512_s14 = scalar_lea.vmem %s8216_s5, 832  ;;  %s7778_s26 = smov [#allocation3]  }
 0x13a   : > { %p7513_p10 = scmp.ne.s32.totalorder %s8216_s5, %s7512_s14  ;;  %s7517_s23 = sshll.u32 %s7778_s26, 4  ;;  %s7518_s23 = int_to_ptr.vmem [resolvable:$false] %s7517_s23 }
 0x13b   : > { %s7519_s8 = scalar_lea.vmem %s7518_s23, 1664  ;;  %p7520_p0 = scmp.lt.s32.totalorder %s8216_s5, %s7518_s23 }
 0x13c   : > { %p7515_p5 = pnand %p7513_p10, %p9588_p7  ;;  %p7521_p12 = scmp.lt.s32.totalorder %s7519_s8, %s7512_s14 }
 0x13e   : > { %p7516_p4 = pneg %p7515_p5  ;;  %p7522_p13 = por %p7521_p12, %p7520_p0 }
 0x140   : > { %p7523_p2 = pnand %p7522_p13, %p7516_p4 }
 0x142   : > { %7526 = shalt.err (!%p7523_p2)
}
 0x143   : > { %s9650_s6 = sld [smem:[#allocation33_spill]]  ;;  %s9651_s10 = sld [smem:[#allocation32_spill]] }
 0x144   : > { %s9652_s3 = sld [smem:[#allocation31_spill]]  ;;  %s111_s17 = sadd.s32 2, %s8033_s18 }
 0x145   : > { %7082 = dma.hbm_to_vmem [thread:$0]  (!%p8212_p9), %s8203_s27, 832, %s8216_s5, %s441_s4, %s9632_s11, %s9632_s11, %s9631_s9  }
 0x146   : > { %s9653_s26 = sadd.s32 2, %s7754_s28  ;;  %p9654_p1 = scmp.eq.s32.totalorder %s7762_s30, 0 }
 0x147   : > { %s113_s23 = ssub.s32 %s9653_s26, %s111_s17  ;;  %p9655_p6 = scmp.eq.s32.totalorder %s7919_s12, 0 }
 0x148   : > { %s114_s8 = sor.u32 %s113_s23, %s8057_s15  ;;  %s9657_s18 = sld [smem:[#allocation51_spill]] }
 0x149   : > { %s117_s14 = sadd.s32 1, %s9650_s6  ;;  %p124_p0 = scmp.ne.s32.totalorder %s9650_s6, %s9651_s10 }
 0x14a   : > { %p130_p4 = scmp.ne.s32.totalorder %s9651_s10, %s9652_s3  ;;  %p115_p3 = scmp.eq.s32.totalorder %s114_s8, 0 }
 0x14b   : > { %p126_p11 = por %p124_p0, %p9654_p1  ;;  %s489_s19 = sand.u32 1, %s9650_s6  }
 0x14c   : > { %p8262_p10 = por %p130_p4, %p9655_p6  ;;  %s9727_s6 = smov (!%p115_p3, %s9650_s6), %s117_s14 }
 0x14d   : > { %s7015_s27 = smul.u32 52, %s489_s19  ;;  %p9659_p5 = scmp.lt.s32.totalorder %s7762_s30, 16 }
 0x14e   : > { %s9656_s1 = scalar_select %p8262_p10, 1, 0 }
 0x14f   : > { %s9658_s0 = smov %s9657_s18  ;;  %s5869_s25 = scalar_lea.hbm %s9657_s18, %s8066_s24 }
 0x150   : > { %s8274_s17 = scalar_lea.hbm %s5869_s25, 1664  ;;  %p8278_p12 = pnand %p9659_p5, %p126_p11 }
 0x151   : > { %s6056_s10 = sshll.u32 %s8197_s13, 6  ;;  %s491_s3 = scalar_lea.vmem [#allocation8], %s7015_s27 }
 0x152   : > { %s501_s14 = sshll.u32 %s491_s3, 4  ;;  %s7557_s19 = scalar_lea.hbm %s5869_s25, 2496  ;;  %s8283_s14 = int_to_ptr.vmem [resolvable:$true] %s501_s14 }
 0x153   : > { %p7528_p13 = scmp.ne.s32.totalorder %s8274_s17, %s7557_s19  ;;  %p7529_p2 = pneg %p8278_p12 }
 0x154   : > { %s7532_s26 = scalar_lea.hbm %s9658_s0, 16640  ;;  %p7533_p3 = scmp.lt.u32.totalorder %s8274_s17, %s9658_s0 }
 0x155   : > { %p7530_p0 = pnand %p7529_p2, %p7528_p13  ;;  %p7534_p1 = scmp.lt.u32.totalorder %s7532_s26, %s7557_s19 }
 0x156   : > { %p7536_p6 = scmp.lt.u32.totalorder %s7557_s19, %s8274_s17 }
 0x157   : > { %p7531_p4 = pneg %p7530_p0  ;;  %p7535_p11 = por %p7534_p1, %p7533_p3 }
 0x159   : > { %p7537_p5 = por %p7536_p6, %p7535_p11 }
 0x15b   : > { %p7538_p7 = pnand %p7537_p5, %p7531_p4 }
 0x15d   : > { %7541 = shalt.err (!%p7538_p7)
}
 0x15e   : > { %s7542_s25 = scalar_lea.vmem %s8283_s14, 832  ;;  %s7779_s27 = smov [#allocation8]  }
 0x15f   : > { %p7543_p13 = scmp.ne.s32.totalorder %s8283_s14, %s7542_s25  ;;  %s7547_s5 = sshll.u32 %s7779_s27, 4  ;;  %s7548_s5 = int_to_ptr.vmem [resolvable:$false] %s7547_s5 }
 0x160   : > { %s7549_s4 = scalar_lea.vmem %s7548_s5, 1664  ;;  %p7550_p8 = scmp.lt.s32.totalorder %s8283_s14, %s7548_s5 }
 0x161   : > { %p7545_p0 = pnand %p7543_p13, %p7529_p2  ;;  %p7551_p3 = scmp.lt.s32.totalorder %s7549_s4, %s7542_s25 }
 0x163   : > { %p7546_p10 = pneg %p7545_p0  ;;  %p7552_p1 = por %p7551_p3, %p7550_p8 }
 0x165   : > { %p7553_p11 = pnand %p7552_p1, %p7546_p10 }
 0x167   : > { %7556 = shalt.err (!%p7553_p11)
}
 0x168   : > { %7088 = dma.hbm_to_vmem [thread:$0]  (!%p8278_p12), %s8274_s17, 832, %s8283_s14, %s8087_s7, %s9632_s11, %s9632_s11, %s9631_s9  }
 0x169   : > { %s6057_s3 = sshll.u32 %s7754_s28, 3  ;;  %s6058_s19 = sshll.u32 %s7758_s29, 6 }
 0x16a   : > { %s521_s18 = sadd.s32 %s6058_s19, %s6057_s3  ;;  %s515_s24 = scalar_lea.vmem [#allocation9], %s6056_s10 }
 0x16b   : > { %s524_s26 = sshll.u32 %s515_s24, 4  ;;  %s6059_s23 = sshll.u32 %s521_s18, 7  ;;  %s8317_s26 = int_to_ptr.vmem [resolvable:$true] %s524_s26 }
 0x16c   : > { %s9661_s25 = sld [smem:[#allocation52_spill]]  ;;  %s9663_s4 = sand.u32 1, %s7762_s30  }
 0x16d   : > { %s8326_s7 = scalar_lea.sflag [#allocation10], %s9663_s4  ;;  %p9664_p7 = pneg %p8212_p9 }
 0x172   : > { %s9662_s5 = smov %s9661_s25  ;;  %s8322_s27 = scalar_lea.hbm %s9661_s25, %s6059_s23 }
 0x173   : > { %s7558_s9 = scalar_lea.hbm %s8322_s27, 1024  ;;  %s7563_s17 = scalar_lea.hbm %s9662_s5, 16384 }
 0x174   : > { %p7559_p8 = scmp.ne.s32.totalorder %s8322_s27, %s7558_s9  ;;  %p7564_p2 = scmp.lt.u32.totalorder %s8322_s27, %s9662_s5 }
 0x175   : > { %p7565_p4 = scmp.lt.u32.totalorder %s7563_s17, %s7558_s9  ;;  %p7567_p5 = scmp.lt.u32.totalorder %s7558_s9, %s8322_s27 }
 0x176   : > { %p7561_p10 = pnand %p7559_p8, %p9664_p7 }
 0x177   : > { %p7566_p6 = por %p7565_p4, %p7564_p2 }
 0x178   : > { %p7562_p12 = pneg %p7561_p10 }
 0x179   : > { %p7568_p13 = por %p7567_p5, %p7566_p6 }
 0x17b   : > { %p7569_p0 = pnand %p7568_p13, %p7562_p12 }
 0x17d   : > { %7572 = shalt.err (!%p7569_p0)
}
 0x17e   : > { %s7573_s3 = scalar_lea.vmem %s8317_s26, 1024  ;;  %p9665_p1 = pmov %p9664_p7 }
 0x17f   : > { %p7574_p3 = scmp.ne.s32.totalorder %s8317_s26, %s7573_s3  ;;  %s7780_s19 = smov [#allocation9]  }
 0x180   : > { %s7578_s18 = sshll.u32 %s7780_s19, 4  ;;  %s7579_s18 = int_to_ptr.vmem [resolvable:$false] %s7578_s18 }
 0x181   : > { %p7576_p11 = pnand %p7574_p3, %p9665_p1  ;;  %s7580_s24 = scalar_lea.vmem %s7579_s18, 2048 }
 0x182   : > { %p7581_p7 = scmp.lt.s32.totalorder %s8317_s26, %s7579_s18  ;;  %p7582_p10 = scmp.lt.s32.totalorder %s7580_s24, %s7573_s3 }
 0x183   : > { %p7577_p8 = pneg %p7576_p11 }
 0x184   : > { %p7583_p2 = por %p7582_p10, %p7581_p7 }
 0x186   : > { %p7584_p4 = pnand %p7583_p2, %p7577_p8 }
 0x188   : > { %7587 = shalt.err (!%p7584_p4)
}
 0x189   : > { %s9666_s23 = smov 8   ;;  %s9667_s15 = smov 128  }
 0x18a   : > { %7091 = dma.hbm_to_vmem [thread:$0]  (!%p8212_p9), %s8322_s27, 1024, %s8317_s26, %s8326_s7, %s9667_s15, %s9667_s15, %s9666_s23  }
 0x18b   : > { %s9668_s8 = sld [smem:[#allocation39_spill]] }
 0x191   : > { %p9669_p12 = scmp.ne.s32.totalorder %s9668_s8, 0 }
 0x193   : > { %536 = sbr.rel (%p9669_p12) target bundleno = 1528 (0x5f8), region = 64 }
 0x19a   : > { %s9670_s25 = sld [smem:[#allocation35_spill]]  ;;  %p9671_p6 = scmp.ne.s32.totalorder %s9642_s2, 0 }
 0x1a0   : > { %s8358_s4 = sand.u32 1, %s9670_s25  }
 0x1a1   : > { %s7016_s9 = smul.u32 52, %s8358_s4  ;;  %s539_s11 = scalar_lea.sflag [#allocation4], %s8358_s4 }
 0x1a3   : > { %s8362_s13 = scalar_lea.vmem [#allocation3], %s7016_s9 }
 0x1a4   : > { %7673 = dma.done.wait (%p9671_p6), %s539_s11, 832  }
 0x1a5   : > { %7675 = vsyncadd (%p9671_p6), %s539_s11, 4294966464  ;;  %s9672_s16 = sld [smem:[#allocation42_spill]]  ;;  %s547_s26 = sand.u32 1, %s7919_s12  }
 0x1a6   : > { %s549_s27 = sand.u32 1, %s7726_s21   ;;  %s548_s17 = scalar_lea.sflag [#allocation7], %s547_s26 }
 0x1a7   : > { %s7017_s7 = smul.u32 52, %s549_s27 }
 0x1a9   : > { %s8370_s10 = scalar_lea.vmem [#allocation6], %s7017_s7 }
 0x1ab   : > { %p9673_p9 = scmp.ne.s32.totalorder %s9672_s16, 0 }
 0x1ad   : > { %7677 = dma.done.wait (%p9673_p9), %s548_s17, 832  }
 0x1ae   : > { %7679 = vsyncadd (%p9673_p9), %s548_s17, 4294966464  ;;  %s9674_s14 = sld [smem:[#allocation32_spill]]  ;;  %p9675_p5 = scmp.ne.s32.totalorder %s9656_s1, 0 }
 0x1b4   : > { %s558_s3 = sand.u32 1, %s9674_s14  }
 0x1b5   : > { %s7018_s19 = smul.u32 52, %s558_s3 }
 0x1b7   : > { %s8377_s18 = scalar_lea.vmem [#allocation8], %s7018_s19 }
 0x1b8   : > { %7681 = dma.done.wait (%p9675_p5), %s548_s17, 832  }
 0x1b9   : > { %7683 = vsyncadd (%p9675_p5), %s548_s17, 4294966464  ;;  %s6061_s24 = sshll.u32 %s8358_s4, 6  ;;  %s566_s23 = scalar_lea.sflag [#allocation10], %s547_s26 }
 0x1ba   : > { %s8386_s15 = scalar_lea.vmem [#allocation9], %s6061_s24 }
 0x1bb   : > { %7685 = dma.done.wait (%p9671_p6), %s566_s23, 1024  }
 0x1bc   : > { %7687 = vsyncadd (%p9671_p6), %s566_s23, 4294966272  ;;  %p9676_p13 = scmp.eq.s32.totalorder %s7919_s12, 0 }
 0x1be   : > { %7689 = dma.done.wait (%p9676_p13), [#allocation10], 1664   ;;  %p9677_p0 = pmov %p9676_p13 }
 0x1c0   : > { %7691 = vsyncadd (%p9677_p0), [#allocation10], 4294965632  ;;  %p9678_p3 = pmov %p9677_p0 }
 0x1c1   : > { %p9679_p1 = pmov %p9677_p0 }
 0x1c2   : > { %7693 = dma.done.wait (%p9678_p3), [#allocation13], 144  }
 0x1c3   : > { %7695 = vsyncadd (%p9679_p1), [#allocation13], 4294967152  ;;  %p9680_p11 = pmov %p9677_p0 }
 0x1c4   : > { %p9681_p8 = pmov %p9677_p0 }
 0x1c5   : > { %7697 = dma.done.wait (%p9680_p11), [#allocation16], 880  }
 0x1c6   : > { %7699 = vsyncadd (%p9681_p8), [#allocation16], 4294966416  ;;  %p9682_p7 = pmov %p9677_p0 }
 0x1c7   : > { %p9683_p10 = pmov %p9677_p0 }
 0x1c8   : > { %7701 = dma.done.wait (%p9682_p7), [#allocation19], 48  }
 0x1c9   : > { %7703 = vsyncadd (%p9683_p10), [#allocation19], 4294967248  ;;  %v7781_v0 = vmov 0.0   ;;  %vm7782_vm0 = vmmov 0   ;;  %v7783_v1 = vmov 0   ;;  %v7245_v2 = vld [vmem:[#allocation12] sm:$0xff]   ;;  %v966_v57 = vlaneseq }
 0x1ca   : > { %6405 = vmatprep.subr.bf16.mxu0 %v7781_v0  ;;  %6407 = vmatprep.mubr.msk.bf16.mxu0 %vm7782_vm0, %v7781_v0  ;;  %v7246_v3 = vld [vmem:[%s8362_s13] sm:$0xff]   ;;  %vm728_vm1 = vcmask 130048   ;;  %v7248_v5 = vld [vmem:[%s8362_s13 + $0x8] sm:$0xff]   ;;  %v7249_v11 = vld [vmem:[%s8362_s13 + $0x10] sm:$0xff]   ;;  %vm2941_vm2 = vcmask 1041408   ;;  %s9684_s12 = sld [smem:[#allocation37_spill]] }
 0x1cb   : > { %7243 = vset.pattern.permute.xlu0 %v7783_v1  ;;  %7244 = vset.pattern.permute.xlu1 %v7783_v1  ;;  %v7247_v4 = vld [vmem:[#allocation12] sm:$0xff]   ;;  %v656_v6 = vld [vmem:[#allocation11 + $0x10] sm:$0xff]  ;;  %v657_v8 = vld [vmem:[#allocation11 + $0x18] sm:$0xff]  ;;  %v7784_v55 = vmov 1983009808   ;;  %vm1436_vm3 = vcmask 25600  }
 0x1cc   : > { %6406 = vmatpush3.bf16.msra.mxu0 %v7245_v2  ;;  %863 = vperm.xlu0 %7243, %v656_v6   ;;  %v659_v7 = vld [vmem:[#allocation11 + $0x28] sm:$0xff]  ;;  %v660_v9 = vld [vmem:[#allocation11 + $0x30] sm:$0xff]  ;;  %v658_v10 = vld [vmem:[#allocation11 + $0x20] sm:$0xff]  ;;  %v964_v56 = vunpack.c.l.s4 %v7784_v55  ;;  %vm1434_vm4 = vcmask 31744   ;;  %s9436_s14 = scalar_lea.vmem [#allocation21], %s6061_s24  ;;  %s9700_s23 = sld [smem:[#allocation45_spill]] }
 0x1cd   : > { %6435 = vmatprep.subr.bf16.mxu0 %v7781_v0  ;;  %878 = vperm.xlu1 %7244, %v659_v7   ;;  %v661_v12 = vld [vmem:[#allocation11 + $0x38] sm:$0xff]  ;;  %v662_v13 = vld [vmem:[#allocation11 + $0x40] sm:$0xff]  ;;  %v664_v14 = vld [vmem:[#allocation11 + $0x50] sm:$0xff]  ;;  %s5809_s24 = sshll.u32 %s9436_s14, 4  ;;  %s5794_s25 = scalar_lea.sflag [#allocation5], %s8358_s4  ;;  %s9455_s24 = int_to_ptr.vmem [resolvable:$true] %s5809_s24 }
 0x1ce   : > { %v7250_v15 = vld [vmem:[%s8362_s13 + $0x18] sm:$0xff]   ;;  %v663_v17 = vld [vmem:[#allocation11 + $0x48] sm:$0xff]  ;;  %v8497_v42 = vld [vmem:[#allocation15] sm:$0x3]  ;;  %v965_v63 = vunpack.c.0.s8 %v964_v56  ;;  %s7588_s9 = scalar_lea.vmem %s9455_s24, 1024 }
 0x1cf   : > { %6408 = vmatmul.mubr.msk.bf16.vlgmr.msra.gmra.mrb[0].mxu0 %vm728_vm1, %v7246_v3  ;;  %v665_v16 = vld [vmem:[#allocation11 + $0x58] sm:$0xff]  ;;  %v666_v18 = vld [vmem:[#allocation11 + $0x60] sm:$0xf]  ;;  %v655_v20 = vld [vmem:[#allocation11 + $0x8] sm:$0xff]  ;;  %p7589_p1 = scmp.ne.s32.totalorder %s9455_s24, %s7588_s9 }
 0x1d0   : > { %6436 = vmatpush3.bf16.msra.mxu0 %v7247_v4  ;;  %6411 = vmatprep.mubr.msk.bf16.mxu0 %vm7782_vm0, %v7781_v0  ;;  %v654_v19 = vld [vmem:[#allocation11] sm:$0xff]  ;;  %v7253_v23 = vld [vmem:[%s8362_s13 + $0x30] ss:$0 sps:$4 sm:$0x33]   ;;  %v2928_v35 = vld [vmem:[#allocation15 + $0x2] sm:$0x3] }
 0x1d1   : > { %6465 = vmatprep.subr.bf16.mxu0 %v7781_v0  ;;  %868 = vperm.xlu0 %7243, %v657_v8   ;;  %v7251_v21 = vld [vmem:[%s8362_s13 + $0x20] sm:$0xff]   ;;  %v7252_v22 = vld [vmem:[%s8362_s13 + $0x28] sm:$0xff]   ;;  %v7255_v26 = vld [vmem:[%s8370_s10 + $0x8] sm:$0xff]   ;;  %v2943_v36 = vsel %vm2941_vm2, %v2928_v35, 0  ;;  %p929_p2 = scmp.ge.s32.totalorder %s9684_s12, 1  ;;  %p930_p4 = scmp.le.s32.totalorder %s9684_s12, 8 }
 0x1d2   : > { %883 = vperm.xlu1 %7244, %v660_v9   ;;  %v7254_v24 = vld [vmem:[%s8370_s10] sm:$0xff]   ;;  %v7256_v27 = vld [vmem:[%s8370_s10 + $0x10] sm:$0xff]   ;;  %v7257_v28 = vld [vmem:[%s8370_s10 + $0x18] sm:$0xff]   ;;  %s1652_s8 = sadd.s32 1, %s9684_s12  ;;  %s2375_s16 = sadd.s32 2, %s9684_s12 }
 0x1d3   : > { %v7261_v25 = vld [vmem:[#allocation12] sm:$0xff]   ;;  %v7260_v31 = vld [vmem:[%s8370_s10 + $0x30] ss:$0 sps:$4 sm:$0x33]   ;;  %v3717_v38 = vld [vmem:[#allocation15 + $0x10] sm:$0x3]  ;;  %p931_p12 = pnand %p930_p4, %p929_p2 }
 0x1d4   : > { %v7258_v29 = vld [vmem:[%s8370_s10 + $0x20] sm:$0xff]   ;;  %v7259_v30 = vld [vmem:[%s8370_s10 + $0x28] sm:$0xff]   ;;  %v7263_v33 = vld [vmem:[%s8377_s18 + $0x8] sm:$0xff]   ;;  %6991 = vmatprep.subr.msk.bf16.mxu1 %vm2941_vm2, %v3717_v38  ;;  %v3731_v39 = vsel %vm2941_vm2, %v3717_v38, 0  ;;  %p8634_p6 = scmp.ge.s32.totalorder %s1652_s8, 1  ;;  %p8638_p9 = scmp.le.s32.totalorder %s1652_s8, 8 }
 0x1d5   : > { %873 = vperm.xlu0 %7243, %v658_v10   ;;  %v7262_v32 = vld [vmem:[%s8377_s18] sm:$0xff]   ;;  %v7264_v34 = vld [vmem:[%s8377_s18 + $0x10] sm:$0xff]   ;;  %v7265_v37 = vld [vmem:[%s8377_s18 + $0x18] sm:$0xff]   ;;  %6576 = vmatpush3.bf16.msra.mxu1 %v3731_v39  ;;  %s6086_s2 = scalar_select %p931_p12, 0, 1 }
 0x1d6   : > { %888 = vperm.xlu1 %7244, %v661_v12   ;;  %v7266_v40 = vld [vmem:[%s8377_s18 + $0x20] sm:$0xff]   ;;  %v7267_v41 = vld [vmem:[%s8377_s18 + $0x28] sm:$0xff]   ;;  %v7268_v43 = vld [vmem:[%s8377_s18 + $0x30] ss:$0 sps:$4 sm:$0x33]   ;;  %p1655_p5 = pnand %p8638_p9, %p8634_p6  ;;  %p8909_p13 = scmp.ge.s32.totalorder %s2375_s16, 1 }
 0x1d7   : > { %6412 = vmatmul.mubr.msk.bf16.gmra.mrb[4].mxu0 %vm728_vm1, %v7248_v5  ;;  %v8509_v47 = vld [vmem:[#allocation15 + $0x12] sm:$0x3]  ;;  %v8529_v58 = vld [vmem:[#allocation14] ss:$0 sm:$0xff]  ;;  %s934_s1 = scvt.s32.f32 %s6086_s2  ;;  %p8913_p0 = scmp.le.s32.totalorder %s2375_s16, 8 }
 0x1d8   : > { %6415 = vmatprep.mubr.msk.bf16.mxu0 %vm7782_vm0, %v7781_v0  ;;  %6992 = vmatprep.subr.msk.bf16.mxu1 %vm2941_vm2, %v8509_v47  ;;  %s8685_s11 = scalar_select %p1655_p5, 0, 1 }
 0x1d9   : > { %893 = vperm.xlu0 %7243, %v662_v13   ;;  %v8537_v6 = vstv %s934_s1  ;;  %p2378_p3 = pnand %p8913_p0, %p8909_p13  ;;  %s9699_s10 = sld [smem:[#allocation38_spill]] }
 0x1da   : > { %903 = vperm.xlu1 %7244, %v664_v14   ;;  %s1658_s13 = scvt.s32.f32 %s8685_s11  ;;  %s6236_s3 = sshll.u32 %s9684_s12, 3 }
 0x1db   : > { %s8967_s7 = scalar_select %p2378_p3, 0, 1 }
 0x1dc   : > { %s9701_s1 = sld [smem:[#allocation60_spill]]  ;;  %p9702_p11 = scmp.ne.s32.totalorder %s9700_s23, 0 }
 0x1dd   : > { %908 = vperm.xlu0 %7243, %v665_v16   ;;  %s2381_s17 = scvt.s32.f32 %s8967_s7  ;;  %s7785_s11 = smov [#allocation21]  }
 0x1de   : > { %898 = vperm.xlu1 %7244, %v663_v17   ;;  %p7590_p8 = pnand %p7589_p1, %p9702_p11 }
 0x1df   : > { %6416 = vmatmul.mubr.msk.bf16.gmra.mrb[8].mxu0 %vm728_vm1, %v7249_v11  ;;  %s6237_s19 = sshll.u32 %s9699_s10, 6 }
 0x1e0   : > { %6419 = vmatprep.mubr.msk.bf16.mxu0 %vm7782_vm0, %v7781_v0  ;;  %s5806_s18 = sadd.s32 %s6237_s19, %s6236_s3  ;;  %p7591_p7 = pneg %p7590_p8 }
 0x1e1   : > { %913 = vperm.xlu0 %7243, %v666_v18   ;;  %s6238_s12 = sshll.u32 %s5806_s18, 7 }
 0x1e2   : > { %853 = vperm.xlu1 %7244, %v654_v19   ;;  %s9462_s8 = scalar_lea.hbm %s9701_s1, %s6238_s12 }
 0x1e5   : > { %858 = vperm.xlu0 %7243, %v655_v20  }
 0x1e7   : > { %6420 = vmatmul.mubr.msk.bf16.gmra.mrb[12].mxu0 %vm728_vm1, %v7250_v15 }
 0x1e8   : > { %6423 = vmatprep.mubr.msk.bf16.mxu0 %vm7782_vm0, %v7781_v0 }
 0x1ef   : > { %6424 = vmatmul.mubr.msk.bf16.gmra.mrb[16].mxu0 %vm728_vm1, %v7251_v21 }
 0x1f0   : > { %6427 = vmatprep.mubr.msk.bf16.mxu0 %vm7782_vm0, %v7781_v0 }
 0x1f7   : > { %6428 = vmatmul.mubr.msk.bf16.gmra.mrb[20].mxu0 %vm728_vm1, %v7252_v22 }
 0x1f8   : > { %6431 = vmatprep.mubr.msk.bf16.mxu0 %vm7782_vm0, %v7781_v0 }
 0x1ff   : > { %6432 = vmatmul.mubr.msk.bf16.gmra.mrb[24].mxu0 %vm728_vm1, %v7253_v23 }
 0x200   : > { %6437 = vmatprep.mubr.msk.bf16.mxu0 %vm7782_vm0, %v7781_v0 }
 0x207   : > { %6438 = vmatmul.mubr.msk.bf16.vlgmr.msra.gmra.mrb[28].mxu0 %vm728_vm1, %v7254_v24 }
 0x208   : > { %6441 = vmatprep.mubr.msk.bf16.mxu0 %vm7782_vm0, %v7781_v0  ;;  %6466 = vmatpush3.bf16.msra.mxu0 %v7261_v25 }
 0x209   : > { %6983 = vmatprep.subr.msk.bf16.mxu0 %vm2941_vm2, %v2928_v35 }
 0x20f   : > { %6442 = vmatmul.mubr.msk.bf16.gmra.mrb[32].mxu0 %vm728_vm1, %v7255_v26 }
 0x210   : > { %6445 = vmatprep.mubr.msk.bf16.mxu0 %vm7782_vm0, %v7781_v0 }
 0x217   : > { %6446 = vmatmul.mubr.msk.bf16.gmra.mrb[36].mxu0 %vm728_vm1, %v7256_v27 }
 0x218   : > { %6449 = vmatprep.mubr.msk.bf16.mxu0 %vm7782_vm0, %v7781_v0 }
 0x21f   : > { %6450 = vmatmul.mubr.msk.bf16.gmra.mrb[40].mxu0 %vm728_vm1, %v7257_v28 }
 0x220   : > { %6453 = vmatprep.mubr.msk.bf16.mxu0 %vm7782_vm0, %v7781_v0 }
 0x227   : > { %6454 = vmatmul.mubr.msk.bf16.gmra.mrb[44].mxu0 %vm728_vm1, %v7258_v29 }
 0x228   : > { %6457 = vmatprep.mubr.msk.bf16.mxu0 %vm7782_vm0, %v7781_v0 }
 0x22f   : > { %6458 = vmatmul.mubr.msk.bf16.gmra.mrb[48].mxu0 %vm728_vm1, %v7259_v30 }
 0x230   : > { %6461 = vmatprep.mubr.msk.bf16.mxu0 %vm7782_vm0, %v7781_v0 }
 0x237   : > { %6462 = vmatmul.mubr.msk.bf16.gmra.mrb[52].mxu0 %vm728_vm1, %v7260_v31 }
 0x238   : > { %6467 = vmatprep.mubr.msk.bf16.mxu0 %vm7782_vm0, %v7781_v0 }
 0x23f   : > { %6468 = vmatmul.mubr.msk.bf16.vlgmr.msra.gmra.mrb[56].mxu0 %vm728_vm1, %v7262_v32 }
 0x240   : > { %6471 = vmatprep.mubr.msk.bf16.mxu0 %vm7782_vm0, %v7781_v0  ;;  %6496 = vmatpush3.bf16.msra.mxu0 %v2943_v36 }
 0x241   : > { %6984 = vmatprep.subr.msk.bf16.mxu0 %vm2941_vm2, %v8497_v42 }
 0x247   : > { %6472 = vmatmul.mubr.msk.bf16.gmra.mrb[60].mxu0 %vm728_vm1, %v7263_v33 }
 0x248   : > { %6475 = vmatprep.mubr.msk.bf16.mxu0 %vm7782_vm0, %v7781_v0 }
 0x24b   : > { %v8503_v44 = vpop.permute.xlu0 %863 }
 0x24c   : > { %v8505_v45 = vpop.permute.xlu1 %878 }
 0x24f   : > { %6476 = vmatmul.mubr.msk.bf16.gmra.mrb[64].mxu0 %vm728_vm1, %v7264_v34 }
 0x250   : > { %6479 = vmatprep.mubr.msk.bf16.mxu0 %vm7782_vm0, %v7781_v0  ;;  %v8507_v46 = vpop.permute.xlu0 %868 }
 0x251   : > { %v8513_v48 = vpop.permute.xlu1 %883 }
 0x254   : > { %v8515_v49 = vpop.permute.xlu0 %873 }
 0x255   : > { %v8517_v50 = vpop.permute.xlu1 %888 }
 0x257   : > { %6480 = vmatmul.mubr.msk.bf16.gmra.mrb[68].mxu0 %vm728_vm1, %v7265_v37 }
 0x258   : > { %6483 = vmatprep.mubr.msk.bf16.mxu0 %vm7782_vm0, %v7781_v0  ;;  %v8519_v51 = vpop.permute.xlu0 %893 }
 0x259   : > { %v8523_v52 = vpop.permute.xlu1 %903 }
 0x25c   : > { %v8525_v53 = vpop.permute.xlu0 %908 }
 0x25d   : > { %v8527_v54 = vpop.permute.xlu1 %898 }
 0x25f   : > { %6484 = vmatmul.mubr.msk.bf16.gmra.mrb[72].mxu0 %vm728_vm1, %v7266_v40 }
 0x260   : > { %6487 = vmatprep.mubr.msk.bf16.mxu0 %vm7782_vm0, %v7781_v0  ;;  %v8531_v59 = vpop.permute.xlu0 %913 }
 0x261   : > { %v8534_v2 = vpop.permute.xlu1 %853 }
 0x264   : > { %v8539_v7 = vpop.permute.xlu0 %858 }
 0x267   : > { %6488 = vmatmul.mubr.msk.bf16.gmra.mrb[76].mxu0 %vm728_vm1, %v7267_v41 }
 0x268   : > { %6491 = vmatprep.mubr.msk.bf16.mxu0 %vm7782_vm0, %v7781_v0  ;;  %v967_v0 = vshrl.u32 %v966_v57, 7 }
 0x26a   : > { %v8541_v9 = vsub.s32 %v965_v63, %v967_v0 }
 0x26f   : > { %6492 = vmatmul.mubr.msk.bf16.gmra.mrb[80].mxu0 %vm728_vm1, %v7268_v43 }
 0x2a2   : > { %v784_v60 = vpop.f32.mrb[0].mxu0 }
 0x2a3   : > { %v785_v61 = vadd.f32 %v8529_v58, %v784_v60  ;;  %v6409_v62 = vpop.f32.mrb[1].mxu0 }
 0x2a4   : > { %v787_v1 = vpop.f32.mrb[2].mxu0 }
 0x2a5   : > { %v838_v3 = vmax.f32 %v785_v61, 0.0  ;;  %v788_v4 = vadd.f32 %v8529_v58, %v787_v1  ;;  %v6410_v5 = vpop.f32.mrb[3].mxu0 }
 0x2a7   : > { %v839_v8 = vmax.f32 %v788_v4, 0.0  ;;  %v916_v10 = vmul.f32 %v8534_v2, %v838_v3 }
 0x2a9   : > { %v936_v11 = vmul.f32 %v8537_v6, %v916_v10  ;;  %v917_v12 = vmul.f32 %v8539_v7, %v839_v8 }
 0x2aa   : > { %v792_v13 = vpop.f32.mrb[4].mxu0 }
 0x2ab   : > { %v962_v14 = vcombine.high %v936_v11, %v936_v11  ;;  %v969_v15 = vrot.slane %v936_v11, %v8541_v9  ;;  %v937_v16 = vmul.f32 %v8537_v6, %v917_v12  ;;  %v793_v17 = vadd.f32 %v8529_v58, %v792_v13  ;;  %v6413_v18 = vpop.f32.mrb[5].mxu0 }
 0x2ac   : > { %v795_v19 = vpop.f32.mrb[6].mxu0 }
 0x2ad   : > { %v976_v20 = vrot.slane %v962_v14, %v8541_v9  ;;  %v977_v21 = vcombine.high %v969_v15, %v969_v15  ;;  %v979_v22 = vcombine.high %v937_v16, %v937_v16  ;;  %v986_v23 = vrot.slane %v937_v16, %v8541_v9  ;;  %v6414_v24 = vpop.f32.mrb[7].mxu0 }
 0x2ae   : > { %v840_v25 = vmax.f32 %v793_v17, 0.0  ;;  %v796_v26 = vadd.f32 %v8529_v58, %v795_v19 }
 0x2af   : > { %v978_v27 = vcombine.high %v976_v20, %v976_v20  ;;  %v1174_v28 = vcombine.low %v969_v15, %v977_v21  ;;  %v993_v29 = vrot.slane %v979_v22, %v8541_v9  ;;  %v994_v30 = vcombine.high %v986_v23, %v986_v23 }
 0x2b0   : > { %v1197_v31 = vrot.slane %v986_v23, %v8541_v9  ;;  %v918_v32 = vmul.f32 %v8503_v44, %v840_v25  ;;  %v841_v33 = vmax.f32 %v796_v26, 0.0 }
 0x2b1   : > { %v1175_v34 = vcombine.low %v976_v20, %v978_v27  ;;  %v1182_v38 = vrot.slane %v1174_v28, %v8541_v9  ;;  %v1198_v40 = vcombine.low %v994_v30, %v993_v29  ;;  %v995_v55 = vcombine.high %v993_v29, %v993_v29 }
 0x2b2   : > { %1437 = vst.msk [vmem:[#allocation2 + $0x8] sm:$0x3] %vm1436_vm3, %v1197_v31  ;;  %v938_v35 = vmul.f32 %v8537_v6, %v918_v32  ;;  %v919_v36 = vmul.f32 %v8507_v46, %v841_v33  ;;  %v800_v37 = vpop.f32.mrb[8].mxu0 }
 0x2b3   : > { %v1189_v39 = vrot.slane %v1175_v34, %v8541_v9  ;;  %v801_v41 = vadd.f32 %v8529_v58, %v800_v37  ;;  %v6417_v43 = vpop.f32.mrb[9].mxu0  ;;  %v1206_v10 = vrot.slane %v1198_v40, %v8541_v9 }
 0x2b4   : > { %v996_v56 = vcombine.high %v938_v35, %v938_v35  ;;  %v1003_v57 = vrot.slane %v938_v35, %v8541_v9  ;;  %v939_v60 = vmul.f32 %v8537_v6, %v919_v36  ;;  %v803_v61 = vpop.f32.mrb[10].mxu0 }
 0x2b5   : > { %v1190_v62 = vcombine.low %v1182_v38, %v1189_v39  ;;  %v842_v63 = vmax.f32 %v801_v41, 0.0  ;;  %v804_v0 = vadd.f32 %v8529_v58, %v803_v61  ;;  %v6418_v1 = vpop.f32.mrb[11].mxu0 }
 0x2b6   : > { %v1010_v3 = vrot.slane %v996_v56, %v8541_v9  ;;  %v1011_v4 = vcombine.high %v1003_v57, %v1003_v57  ;;  %v1199_v5 = vcombine.low %v995_v55, %v1003_v57  ;;  %v1013_v8 = vcombine.high %v939_v60, %v939_v60 }
 0x2b7   : > { %1435 = vst.msk [vmem:[#allocation2] sm:$0xff] %vm1434_vm4, %v1190_v62  ;;  %v1020_v11 = vrot.slane %v939_v60, %v8541_v9  ;;  %v920_v12 = vmul.f32 %v8515_v49, %v842_v63  ;;  %v843_v13 = vmax.f32 %v804_v0, 0.0 }
 0x2b8   : > { %v1012_v14 = vcombine.high %v1010_v3, %v1010_v3  ;;  %v1213_v15 = vrot.slane %v1199_v5, %v8541_v9  ;;  %v1221_v16 = vrot.slane %v1011_v4, %v8541_v9  ;;  %v1027_v17 = vrot.slane %v1013_v8, %v8541_v9 }
 0x2b9   : > { %v1028_v18 = vcombine.high %v1020_v11, %v1020_v11  ;;  %v940_v19 = vmul.f32 %v8537_v6, %v920_v12  ;;  %v921_v20 = vmul.f32 %v8505_v45, %v843_v13 }
 0x2ba   : > { %v1214_v21 = vcombine.low %v1206_v10, %v1213_v15  ;;  %v1222_v22 = vcombine.low %v1010_v3, %v1012_v14  ;;  %1439 = vst.msk [vmem:[#allocation2 + $0x18] sm:$0x3] %vm1436_vm3, %v1221_v16  ;;  %v1245_v23 = vrot.slane %v1027_v17, %v8541_v9  ;;  %v1029_v24 = vcombine.high %v1027_v17, %v1027_v17  ;;  %v808_v25 = vpop.f32.mrb[12].mxu0 }
 0x2bb   : > { %v1223_v26 = vcombine.low %v1020_v11, %v1028_v18  ;;  %v1030_v27 = vcombine.high %v940_v19, %v940_v19  ;;  %v1037_v28 = vrot.slane %v940_v19, %v8541_v9  ;;  %v941_v29 = vmul.f32 %v8537_v6, %v921_v20  ;;  %v6421_v30 = vpop.f32.mrb[13].mxu0 }
 0x2bc   : > { %v1230_v31 = vrot.slane %v1222_v22, %v8541_v9  ;;  %1438 = vst.msk [vmem:[#allocation2 + $0x10] sm:$0xff] %vm1434_vm4, %v1214_v21  ;;  %v809_v32 = vadd.f32 %v8529_v58, %v808_v25  ;;  %v811_v33 = vpop.f32.mrb[14].mxu0 }
 0x2bd   : > { %1441 = vst.msk [vmem:[#allocation2 + $0x28] sm:$0x3] %vm1436_vm3, %v1245_v23  ;;  %v1237_v34 = vrot.slane %v1223_v26, %v8541_v9  ;;  %v1044_v35 = vrot.slane %v1030_v27, %v8541_v9  ;;  %v1045_v36 = vcombine.high %v1037_v28, %v1037_v28  ;;  %v1246_v37 = vcombine.low %v1029_v24, %v1037_v28  ;;  %v6422_v38 = vpop.f32.mrb[15].mxu0 }
 0x2be   : > { %v1047_v39 = vcombine.high %v941_v29, %v941_v29  ;;  %v1054_v40 = vrot.slane %v941_v29, %v8541_v9  ;;  %v844_v41 = vmax.f32 %v809_v32, 0.0  ;;  %v812_v43 = vadd.f32 %v8529_v58, %v811_v33  ;;  %v2915_v21 = vld [vmem:[#allocation2 + $0x1] sm:$0xff] }
 0x2bf   : > { %v1238_v55 = vcombine.low %v1230_v31, %v1237_v34  ;;  %v1046_v56 = vcombine.high %v1044_v35, %v1044_v35  ;;  %v1247_v57 = vcombine.low %v1045_v36, %v1044_v35  ;;  %v1254_v0 = vrot.slane %v1246_v37, %v8541_v9 }
 0x2c0   : > { %v1061_v60 = vrot.slane %v1047_v39, %v8541_v9  ;;  %v1062_v61 = vcombine.high %v1054_v40, %v1054_v40  ;;  %v922_v62 = vmul.f32 %v8513_v48, %v844_v41  ;;  %v845_v63 = vmax.f32 %v812_v43, 0.0 }
 0x2c1   : > { %1440 = vst.msk [vmem:[#allocation2 + $0x20] sm:$0xff] %vm1434_vm4, %v1238_v55  ;;  %v1261_v1 = vrot.slane %v1247_v57, %v8541_v9  ;;  %v1269_v3 = vrot.slane %v1046_v56, %v8541_v9 }
 0x2c2   : > { %v1063_v4 = vcombine.high %v1061_v60, %v1061_v60  ;;  %v1270_v5 = vcombine.low %v1054_v40, %v1062_v61  ;;  %v942_v8 = vmul.f32 %v8537_v6, %v922_v62  ;;  %v923_v10 = vmul.f32 %v8517_v50, %v845_v63  ;;  %v816_v11 = vpop.f32.mrb[16].mxu0 }
 0x2c3   : > { %v1262_v12 = vcombine.low %v1254_v0, %v1261_v1  ;;  %1443 = vst.msk [vmem:[#allocation2 + $0x38] sm:$0x3] %vm1436_vm3, %v1269_v3  ;;  %v817_v13 = vadd.f32 %v8529_v58, %v816_v11  ;;  %v6425_v14 = vpop.f32.mrb[17].mxu0  ;;  %v8596_v15 = vld [vmem:[#allocation2 + $0x11] sm:$0xff] }
 0x2c4   : > { %v1271_v16 = vcombine.low %v1061_v60, %v1063_v4  ;;  %v1278_v17 = vrot.slane %v1270_v5, %v8541_v9  ;;  %v1064_v18 = vcombine.high %v942_v8, %v942_v8  ;;  %v1071_v19 = vrot.slane %v942_v8, %v8541_v9  ;;  %v819_v20 = vpop.f32.mrb[18].mxu0 }
 0x2c5   : > { %1442 = vst.msk [vmem:[#allocation2 + $0x30] sm:$0xff] %vm1434_vm4, %v1262_v12  ;;  %v943_v22 = vmul.f32 %v8537_v6, %v923_v10  ;;  %v846_v23 = vmax.f32 %v817_v13, 0.0  ;;  %v820_v24 = vadd.f32 %v8529_v58, %v819_v20  ;;  %v6426_v25 = vpop.f32.mrb[19].mxu0  ;;  %v2923_v26 = vpack.c.bf16 %v8596_v15, %v2915_v21 }
 0x2c6   : > { %v1285_v27 = vrot.slane %v1271_v16, %v8541_v9  ;;  %v1078_v28 = vrot.slane %v1064_v18, %v8541_v9  ;;  %v1079_v29 = vcombine.high %v1071_v19, %v1071_v19  ;;  %v1293_v30 = vrot.slane %v1071_v19, %v8541_v9 }
 0x2c7   : > { %v1081_v31 = vcombine.high %v943_v22, %v943_v22  ;;  %v1088_v32 = vrot.slane %v943_v22, %v8541_v9  ;;  %v924_v33 = vmul.f32 %v8519_v51, %v846_v23  ;;  %v847_v34 = vmax.f32 %v820_v24, 0.0  ;;  %6497 = vmatprep.mubr.msk.bf16.mxu0 %vm1434_vm4, %v2923_v26 }
 0x2c8   : > { %v1286_v35 = vcombine.low %v1278_v17, %v1285_v27  ;;  %v1294_v36 = vcombine.low %v1079_v29, %v1078_v28  ;;  %1445 = vst.msk [vmem:[#allocation2 + $0x48] sm:$0x3] %vm1436_vm3, %v1293_v30  ;;  %v1080_v37 = vcombine.high %v1078_v28, %v1078_v28  ;;  %v8614_v43 = vld [vmem:[#allocation2 + $0x21] sm:$0xff]  ;;  %v3023_v60 = vsel %vm2941_vm2, %v8497_v42, 0 }
 0x2c9   : > { %v1095_v38 = vrot.slane %v1081_v31, %v8541_v9  ;;  %v1096_v39 = vcombine.high %v1088_v32, %v1088_v32  ;;  %v944_v40 = vmul.f32 %v8537_v6, %v924_v33  ;;  %v925_v41 = vmul.f32 %v8527_v54, %v847_v34  ;;  %v8647_v30 = vld [vmem:[#allocation2 + $0x22] sm:$0xff] }
 0x2ca   : > { %1444 = vst.msk [vmem:[#allocation2 + $0x40] sm:$0xff] %vm1434_vm4, %v1286_v35  ;;  %v1302_v55 = vrot.slane %v1294_v36, %v8541_v9  ;;  %v1295_v56 = vcombine.low %v1080_v37, %v1088_v32  ;;  %v824_v57 = vpop.f32.mrb[20].mxu0 }
 0x2cb   : > { %v1097_v61 = vcombine.high %v1095_v38, %v1095_v38  ;;  %v1317_v62 = vrot.slane %v1096_v39, %v8541_v9  ;;  %v1098_v63 = vcombine.high %v944_v40, %v944_v40  ;;  %v1105_v0 = vrot.slane %v944_v40, %v8541_v9  ;;  %v6429_v1 = vpop.f32.mrb[21].mxu0  ;;  %v8662_v40 = vld [vmem:[#allocation15 + $0x4] sm:$0x3] }
 0x2cc   : > { %v1309_v3 = vrot.slane %v1295_v56, %v8541_v9  ;;  %v945_v4 = vmul.f32 %v8537_v6, %v925_v41  ;;  %v825_v5 = vadd.f32 %v8529_v58, %v824_v57  ;;  %v827_v8 = vpop.f32.mrb[22].mxu0  ;;  %v8632_v20 = vld [vmem:[#allocation2 + $0x31] sm:$0xff] }
 0x2cd   : > { %v1318_v11 = vcombine.low %v1095_v38, %v1097_v61  ;;  %1447 = vst.msk [vmem:[#allocation2 + $0x58] sm:$0x3] %vm1436_vm3, %v1317_v62  ;;  %v1112_v42 = vrot.slane %v1098_v63, %v8541_v9  ;;  %v1113_v12 = vcombine.high %v1105_v0, %v1105_v0  ;;  %v828_v13 = vadd.f32 %v8529_v58, %v827_v8  ;;  %v6430_v14 = vpop.f32.mrb[23].mxu0  ;;  %v3705_v21 = vld [vmem:[#allocation2 + $0x32] sm:$0xff] }
 0x2ce   : > { %v1310_v16 = vcombine.low %v1302_v55, %v1309_v3  ;;  %v1115_v17 = vcombine.high %v945_v4, %v945_v4  ;;  %v1122_v18 = vrot.slane %v945_v4, %v8541_v9  ;;  %v848_v19 = vmax.f32 %v825_v5, 0.0 }
 0x2cf   : > { %v1326_v22 = vrot.slane %v1318_v11, %v8541_v9  ;;  %v1319_v23 = vcombine.low %v1105_v0, %v1113_v12  ;;  %v1341_v24 = vrot.slane %v1112_v42, %v8541_v9  ;;  %v1114_v25 = vcombine.high %v1112_v42, %v1112_v42 }
 0x2d0   : > { %1446 = vst.msk [vmem:[#allocation2 + $0x50] sm:$0xff] %vm1434_vm4, %v1310_v16  ;;  %v1129_v26 = vrot.slane %v1115_v17, %v8541_v9  ;;  %v1130_v27 = vcombine.high %v1122_v18, %v1122_v18  ;;  %v926_v28 = vmul.f32 %v8523_v52, %v848_v19  ;;  %v849_v29 = vmax.f32 %v828_v13, 0.0 }
 0x2d1   : > { %v1333_v31 = vrot.slane %v1319_v23, %v8541_v9  ;;  %1449 = vst.msk [vmem:[#allocation2 + $0x68] sm:$0x3] %vm1436_vm3, %v1341_v24  ;;  %v1342_v32 = vcombine.low %v1114_v25, %v1122_v18  ;;  %v2924_v33 = vpack.c.bf16 %v8632_v20, %v8614_v43  ;;  %v8654_v34 = vpack.c.bf16 %v3705_v21, %v8647_v30  ;;  %v8669_v61 = vld [vmem:[#allocation2 + $0x41] sm:$0xff] }
 0x2d2   : > { %v1131_v35 = vcombine.high %v1129_v26, %v1129_v26  ;;  %v1343_v36 = vcombine.low %v1130_v27, %v1129_v26  ;;  %v946_v37 = vmul.f32 %v8537_v6, %v926_v28  ;;  %v927_v38 = vmul.f32 %v8525_v53, %v849_v29  ;;  %v832_v39 = vpop.f32.mrb[24].mxu0  ;;  %v8693_v18 = vld [vmem:[#allocation2 + $0x42] sm:$0xff] }
 0x2d3   : > { %v1334_v41 = vcombine.low %v1326_v22, %v1333_v31  ;;  %v1350_v55 = vrot.slane %v1342_v32, %v8541_v9  ;;  %6498 = vmatmul.mubr.msk.bf16.vlgmr.msra.gmra.mrb[84].mxu0 %vm1434_vm4, %v2924_v33  ;;  %6577 = vmatprep.mubr.msk.bf16.mxu1 %vm1434_vm4, %v8654_v34  ;;  %v833_v56 = vadd.f32 %v8529_v58, %v832_v39  ;;  %v6433_v57 = vpop.f32.mrb[25].mxu0  ;;  %v3833_v21 = vsel %vm2941_vm2, %v8509_v47, 0  ;;  %v8709_v31 = vld [vmem:[#allocation15 + $0x14] sm:$0x3] }
 0x2d4   : > { %v1357_v62 = vrot.slane %v1343_v36, %v8541_v9  ;;  %v1365_v63 = vrot.slane %v1131_v35, %v8541_v9  ;;  %v1132_v0 = vcombine.high %v946_v37, %v946_v37  ;;  %v1139_v1 = vrot.slane %v946_v37, %v8541_v9  ;;  %v835_v3 = vpop.f32.mrb[26].mxu0  ;;  %6506 = vmatpush3.bf16.msra.mxu0 %v3023_v60 }
 0x2d5   : > { %1448 = vst.msk [vmem:[#allocation2 + $0x60] sm:$0xff] %vm1434_vm4, %v1334_v41  ;;  %v947_v4 = vmul.f32 %v8537_v6, %v927_v38  ;;  %v850_v5 = vmax.f32 %v833_v56, 0.0  ;;  %v6434_v8 = vpop.f32.mrb[27].mxu0  ;;  %6985 = vmatprep.subr.msk.bf16.mxu0 %vm2941_vm2, %v8662_v40  ;;  %v8725_v3 = vstv %s1658_s13  ;;  %s7592_s13 = sshll.u32 %s7785_s11, 4  ;;  %s7593_s13 = int_to_ptr.vmem [resolvable:$false] %s7592_s13 }
 0x2d6   : > { %v1358_v11 = vcombine.low %v1350_v55, %v1357_v62  ;;  %1451 = vst.msk [vmem:[#allocation2 + $0x78] sm:$0x3] %vm1436_vm3, %v1365_v63  ;;  %v1146_v42 = vrot.slane %v1132_v0, %v8541_v9  ;;  %v1147_v12 = vcombine.high %v1139_v1, %v1139_v1  ;;  %s7594_s16 = scalar_lea.vmem %s7593_s13, 2048  ;;  %p7595_p10 = scmp.lt.s32.totalorder %s9455_s24, %s7593_s13 }
 0x2d7   : > { %v1149_v13 = vcombine.high %v947_v4, %v947_v4  ;;  %v1156_v14 = vrot.slane %v947_v4, %v8541_v9  ;;  %v928_v16 = vmul.f32 %v8531_v59, %v850_v5  ;;  %v8691_v17 = vld [vmem:[#allocation2 + $0x51] sm:$0xff]  ;;  %p7596_p2 = scmp.lt.s32.totalorder %s7594_s16, %s7588_s9 }
 0x2d8   : > { %v8695_v19 = vld [vmem:[#allocation2 + $0x52] sm:$0xff]  ;;  %1450 = vst.msk [vmem:[#allocation2 + $0x70] sm:$0xff] %vm1434_vm4, %v1358_v11  ;;  %v1148_v22 = vcombine.high %v1146_v42, %v1146_v42  ;;  %v1366_v23 = vcombine.low %v1139_v1, %v1147_v12  ;;  %v2925_v24 = vpack.c.bf16 %v8691_v17, %v8669_v61 }
 0x2d9   : > { %v8704_v25 = vpack.c.bf16 %v8695_v19, %v8693_v18  ;;  %v1163_v26 = vrot.slane %v1149_v13, %v8541_v9  ;;  %v1164_v27 = vcombine.high %v1156_v14, %v1156_v14  ;;  %v1389_v28 = vrot.slane %v1156_v14, %v8541_v9  ;;  %v8728_v5 = vld [vmem:[#allocation2 + $0x10] sm:$0xff]  ;;  %p7597_p4 = por %p7596_p2, %p7595_p10 }
 0x2da   : > { %v948_v29 = vmul.f32 %v8537_v6, %v928_v16  ;;  %v1367_v47 = vcombine.low %v1146_v42, %v1148_v22  ;;  %6501 = vmatprep.mubr.msk.bf16.mxu0 %vm1434_vm4, %v2925_v24  ;;  %v1572_v32 = vpop.f32.mrb[28].mxu0  ;;  %v1374_v6 = vrot.slane %v1366_v23, %v8541_v9  ;;  %v2902_v24 = vld [vmem:[#allocation2] sm:$0xff] }
 0x2db   : > { %6578 = vmatmul.mubr.msk.bf16.vlgmr.msra.gmra.mrb[0].mxu1 %vm1434_vm4, %v8704_v25  ;;  %v1390_v33 = vcombine.low %v1164_v27, %v1163_v26  ;;  %1453 = vst.msk [vmem:[#allocation2 + $0x88] sm:$0x3] %vm1436_vm3, %v1389_v28  ;;  %v1165_v35 = vcombine.high %v1163_v26, %v1163_v26  ;;  %v1573_v37 = vadd.f32 %v8529_v58, %v1572_v32  ;;  %v6439_v38 = vpop.f32.mrb[29].mxu0  ;;  %p7598_p12 = pnand %p7597_p4, %p7591_p7 }
 0x2dc   : > { %v1172_v36 = vrot.slane %v948_v29, %v8541_v9  ;;  %6586 = vmatpush3.bf16.msra.mxu1 %v3833_v21  ;;  %v1381_v39 = vrot.slane %v1367_v47, %v8541_v9  ;;  %v1575_v41 = vpop.f32.mrb[30].mxu0  ;;  %v8720_v55 = vld [vmem:[#allocation2 + $0x62] sm:$0xff]  ;;  %v2910_v28 = vpack.c.bf16 %v8728_v5, %v2902_v24 }
 0x2dd   : > { %6993 = vmatprep.subr.msk.bf16.mxu1 %vm2941_vm2, %v8709_v31  ;;  %v1626_v62 = vmax.f32 %v1573_v37, 0.0  ;;  %v6440_v63 = vpop.f32.mrb[31].mxu0  ;;  %v1398_v1 = vrot.slane %v1390_v33, %v8541_v9  ;;  %v1576_v4 = vadd.f32 %v8529_v58, %v1575_v41  ;;  %v8733_v12 = vld [vmem:[#allocation2 + $0x61] sm:$0xff] }
 0x2de   : > { %v1173_v56 = vcombine.high %v1172_v36, %v1172_v36  ;;  %v1391_v57 = vcombine.low %v1165_v35, %v1172_v36  ;;  %v1382_v0 = vcombine.low %v1374_v6, %v1381_v39 }
 0x2df   : > { %v1639_v42 = vmul.f32 %v1626_v62, %v8534_v2  ;;  %v8735_v13 = vld [vmem:[#allocation2 + $0x71] sm:$0xff]  ;;  %v1627_v21 = vmax.f32 %v1576_v4, 0.0  ;;  %v3117_v4 = vsel %vm2941_vm2, %v8662_v40, 0 }
 0x2e0   : > { %v1405_v8 = vrot.slane %v1391_v57, %v8541_v9  ;;  %v1413_v11 = vrot.slane %v1173_v56, %v8541_v9  ;;  %v8737_v14 = vld [vmem:[#allocation2 + $0x72] sm:$0xff]  ;;  %1452 = vst.msk [vmem:[#allocation2 + $0x80] sm:$0xff] %vm1434_vm4, %v1382_v0  ;;  %v2926_v22 = vpack.c.bf16 %v8735_v13, %v8733_v12 }
 0x2e1   : > { %v8746_v23 = vpack.c.bf16 %v8737_v14, %v8720_v55  ;;  %v1660_v27 = vmul.f32 %v8725_v3, %v1639_v42  ;;  %v1640_v29 = vmul.f32 %v1627_v21, %v8539_v7  ;;  %v8762_v62 = vld [vmem:[#allocation2 + $0x30] sm:$0xff] }
 0x2e2   : > { %v1406_v26 = vcombine.low %v1398_v1, %v1405_v8  ;;  %1455 = vst.msk [vmem:[#allocation2 + $0x98] sm:$0x3] %vm1436_vm3, %v1413_v11  ;;  %6502 = vmatmul.mubr.msk.bf16.gmra.mrb[88].mxu0 %vm1434_vm4, %v2926_v22  ;;  %v1580_v47 = vpop.f32.mrb[32].mxu0  ;;  %v8765_v1 = vld [vmem:[#allocation2 + $0x50] sm:$0xff]  ;;  %v8770_v22 = vld [vmem:[#allocation2 + $0x20] sm:$0xff] }
 0x2e3   : > { %6581 = vmatprep.mubr.msk.bf16.mxu1 %vm1434_vm4, %v8746_v23  ;;  %v1686_v32 = vcombine.high %v1660_v27, %v1660_v27  ;;  %v1693_v33 = vrot.slane %v1660_v27, %v8541_v9  ;;  %v1581_v35 = vadd.f32 %v8529_v58, %v1580_v47  ;;  %6507 = vmatprep.mubr.msk.bf16.mxu0 %vm1434_vm4, %v2910_v28  ;;  %v6443_v36 = vpop.f32.mrb[33].mxu0  ;;  %v8780_v47 = vld [vmem:[#allocation2 + $0x40] sm:$0xff] }
 0x2e4   : > { %1454 = vst.msk [vmem:[#allocation2 + $0x90] sm:$0xff] %vm1434_vm4, %v1406_v26  ;;  %v1661_v37 = vmul.f32 %v8725_v3, %v1640_v29  ;;  %v1583_v38 = vpop.f32.mrb[34].mxu0  ;;  %v8778_v29 = vpack.c.bf16 %v8762_v62, %v8770_v22  ;;  %v8788_v36 = vld [vmem:[#allocation2 + $0x70] sm:$0xff] }
 0x2e5   : > { %v1700_v6 = vrot.slane %v1686_v32, %v8541_v9  ;;  %v1701_v39 = vcombine.high %v1693_v33, %v1693_v33  ;;  %v1628_v41 = vmax.f32 %v1581_v35, 0.0  ;;  %v1584_v56 = vadd.f32 %v8529_v58, %v1583_v38  ;;  %v6444_v57 = vpop.f32.mrb[35].mxu0 }
 0x2e6   : > { %v1703_v63 = vcombine.high %v1661_v37, %v1661_v37  ;;  %v1710_v0 = vrot.slane %v1661_v37, %v8541_v9  ;;  %9687 = vst [vmem:[#allocation46_spill] sm:$0xff] %v8778_v29  ;;  %v8786_v35 = vpack.c.bf16 %v8765_v1, %v8780_v47 }
 0x2e7   : > { %v1702_v8 = vcombine.high %v1700_v6, %v1700_v6  ;;  %v1898_v11 = vcombine.low %v1693_v33, %v1701_v39  ;;  %v1641_v42 = vmul.f32 %v1628_v41, %v8503_v44  ;;  %v1629_v21 = vmax.f32 %v1584_v56, 0.0  ;;  %v8772_v24 = vld [vmem:[#allocation2 + $0x82] sm:$0xff]  ;;  %v8794_v56 = vld [vmem:[#allocation15 + $0x6] sm:$0x3] }
 0x2e8   : > { %v1717_v26 = vrot.slane %v1703_v63, %v8541_v9  ;;  %v1718_v27 = vcombine.high %v1710_v0, %v1710_v0  ;;  %v1921_v28 = vrot.slane %v1710_v0, %v8541_v9  ;;  %9688 = vst [vmem:[#allocation47_spill] sm:$0xff] %v8786_v35 }
 0x2e9   : > { %v1899_v40 = vcombine.low %v1700_v6, %v1702_v8  ;;  %v1662_v32 = vmul.f32 %v8725_v3, %v1641_v42  ;;  %v1642_v33 = vmul.f32 %v1629_v21, %v8507_v46  ;;  %v1906_v37 = vrot.slane %v1898_v11, %v8541_v9  ;;  %v8803_v21 = vld [vmem:[#allocation2 + $0x60] sm:$0xff] }
 0x2ea   : > { %v1922_v38 = vcombine.low %v1718_v27, %v1717_v26  ;;  %2160 = vst.msk [vmem:[#allocation2 + $0xa8] sm:$0x3] %vm1436_vm3, %v1921_v28  ;;  %v1719_v39 = vcombine.high %v1717_v26, %v1717_v26  ;;  %6508 = vmatmul.mubr.msk.bf16.vlgmr.msra.gmra.mrb[84].mxu0 %vm1434_vm4, %v8778_v29  ;;  %v1588_v6 = vpop.f32.mrb[36].mxu0  ;;  %v8809_v57 = vpack.c.bf16 %v8788_v36, %v8803_v21 }
 0x2eb   : > { %v3711_v41 = vld [vmem:[#allocation2 + $0x92] sm:$0xff]  ;;  %v1913_v63 = vrot.slane %v1899_v40, %v8541_v9  ;;  %v1720_v0 = vcombine.high %v1662_v32, %v1662_v32  ;;  %v1727_v8 = vrot.slane %v1662_v32, %v8541_v9  ;;  %v1663_v11 = vmul.f32 %v8725_v3, %v1642_v33  ;;  %6511 = vmatprep.mubr.msk.bf16.mxu0 %vm1434_vm4, %v8786_v35  ;;  %v6447_v42 = vpop.f32.mrb[37].mxu0 }
 0x2ec   : > { %v1589_v26 = vadd.f32 %v8529_v58, %v1588_v6  ;;  %v1591_v27 = vpop.f32.mrb[38].mxu0  ;;  %v3715_v28 = vpack.c.bf16 %v3711_v41, %v8772_v24  ;;  %9689 = vst [vmem:[#allocation48_spill] sm:$0xff] %v8809_v57  ;;  %6516 = vmatpush3.bf16.msra.mxu0 %v3117_v4  ;;  %v8817_v35 = vld [vmem:[#allocation2 + $0x12] sm:$0xff]  ;;  %v1930_v4 = vrot.slane %v1922_v38, %v8541_v9 }
 0x2ed   : > { %v1914_v40 = vcombine.low %v1906_v37, %v1913_v63  ;;  %v1734_v32 = vrot.slane %v1720_v0, %v8541_v9  ;;  %v1735_v33 = vcombine.high %v1727_v8, %v1727_v8  ;;  %v1923_v16 = vcombine.low %v1719_v39, %v1727_v8  ;;  %v6448_v60 = vpop.f32.mrb[39].mxu0  ;;  %6986 = vmatprep.subr.msk.bf16.mxu0 %vm2941_vm2, %v8794_v56 }
 0x2ee   : > { %v1737_v42 = vcombine.high %v1663_v11, %v1663_v11  ;;  %v1744_v6 = vrot.slane %v1663_v11, %v8541_v9  ;;  %v1630_v10 = vmax.f32 %v1589_v26, 0.0  ;;  %v1592_v41 = vadd.f32 %v8529_v58, %v1591_v27  ;;  %6582 = vmatmul.mubr.msk.bf16.gmra.mrb[4].mxu1 %vm1434_vm4, %v3715_v28  ;;  %v3090_v26 = vld [vmem:[#allocation2 + $0x2] sm:$0xff] }
 0x2ef   : > { %2159 = vst.msk [vmem:[#allocation2 + $0xa0] sm:$0xff] %vm1434_vm4, %v1914_v40  ;;  %v1736_v37 = vcombine.high %v1734_v32, %v1734_v32  ;;  %v1937_v60 = vrot.slane %v1923_v16, %v8541_v9  ;;  %v1945_v39 = vrot.slane %v1735_v33, %v8541_v9  ;;  %v3098_v40 = vpack.c.bf16 %v8817_v35, %v3090_v26 }
 0x2f0   : > { %v1751_v63 = vrot.slane %v1737_v42, %v8541_v9  ;;  %v1752_v0 = vcombine.high %v1744_v6, %v1744_v6  ;;  %v1643_v8 = vmul.f32 %v1630_v10, %v8515_v49  ;;  %v1631_v11 = vmax.f32 %v1592_v41, 0.0 }
 0x2f1   : > { %v1938_v27 = vcombine.low %v1930_v4, %v1937_v60  ;;  %v1946_v28 = vcombine.low %v1734_v32, %v1736_v37  ;;  %2162 = vst.msk [vmem:[#allocation2 + $0xb8] sm:$0x3] %vm1436_vm3, %v1945_v39 }
 0x2f2   : > { %v1947_v29 = vcombine.low %v1744_v6, %v1752_v0  ;;  %v1969_v38 = vrot.slane %v1751_v63, %v8541_v9  ;;  %v1664_v16 = vmul.f32 %v8725_v3, %v1643_v8  ;;  %6512 = vmatmul.mubr.msk.bf16.gmra.mrb[88].mxu0 %vm1434_vm4, %v8809_v57  ;;  %v1596_v33 = vpop.f32.mrb[40].mxu0  ;;  %v1644_v10 = vmul.f32 %v1631_v11, %v8505_v45 }
 0x2f3   : > { %v1954_v42 = vrot.slane %v1946_v28, %v8541_v9  ;;  %2161 = vst.msk [vmem:[#allocation2 + $0xb0] sm:$0xff] %vm1434_vm4, %v1938_v27  ;;  %v1597_v32 = vadd.f32 %v8529_v58, %v1596_v33  ;;  %6517 = vmatprep.mubr.msk.bf16.mxu0 %vm1434_vm4, %v3098_v40  ;;  %v6451_v41 = vpop.f32.mrb[41].mxu0  ;;  %v1753_v4 = vcombine.high %v1751_v63, %v1751_v63 }
 0x2f4   : > { %v1961_v6 = vrot.slane %v1947_v29, %v8541_v9  ;;  %2164 = vst.msk [vmem:[#allocation2 + $0xc8] sm:$0x3] %vm1436_vm3, %v1969_v38  ;;  %v1754_v37 = vcombine.high %v1664_v16, %v1664_v16  ;;  %v1761_v60 = vrot.slane %v1664_v16, %v8541_v9  ;;  %v1599_v39 = vpop.f32.mrb[42].mxu0  ;;  %v1665_v0 = vmul.f32 %v8725_v3, %v1644_v10 }
 0x2f5   : > { %v1632_v8 = vmax.f32 %v1597_v32, 0.0  ;;  %v1600_v26 = vadd.f32 %v8529_v58, %v1599_v39  ;;  %v6452_v11 = vpop.f32.mrb[43].mxu0  ;;  %v3220_v10 = vsel %vm2941_vm2, %v8794_v56, 0  ;;  %v3308_v56 = vld [vmem:[#allocation15 + $0x8] sm:$0x3] }
 0x2f6   : > { %v1962_v27 = vcombine.low %v1954_v42, %v1961_v6  ;;  %v1768_v28 = vrot.slane %v1754_v37, %v8541_v9  ;;  %v1769_v40 = vcombine.high %v1761_v60, %v1761_v60  ;;  %v1970_v33 = vcombine.low %v1753_v4, %v1761_v60 }
 0x2f7   : > { %v1771_v41 = vcombine.high %v1665_v0, %v1665_v0  ;;  %v1778_v29 = vrot.slane %v1665_v0, %v8541_v9  ;;  %v1645_v63 = vmul.f32 %v1632_v8, %v8513_v48  ;;  %v1633_v38 = vmax.f32 %v1600_v26, 0.0 }
 0x2f8   : > { %2163 = vst.msk [vmem:[#allocation2 + $0xc0] sm:$0xff] %vm1434_vm4, %v1962_v27  ;;  %v1770_v16 = vcombine.high %v1768_v28, %v1768_v28  ;;  %v1971_v57 = vcombine.low %v1769_v40, %v1768_v28  ;;  %v1978_v37 = vrot.slane %v1970_v33, %v8541_v9  ;;  %v3806_v33 = vld [vmem:[#allocation2 + $0xa0] sm:$0xff] }
 0x2f9   : > { %v1785_v32 = vrot.slane %v1771_v41, %v8541_v9  ;;  %v1786_v42 = vcombine.high %v1778_v29, %v1778_v29  ;;  %v1666_v6 = vmul.f32 %v8725_v3, %v1645_v63  ;;  %v1646_v4 = vmul.f32 %v1633_v38, %v8517_v50 }
 0x2fa   : > { %v1985_v60 = vrot.slane %v1971_v57, %v8541_v9  ;;  %v1993_v39 = vrot.slane %v1770_v16, %v8541_v9  ;;  %6518 = vmatmul.mubr.msk.bf16.vlgmr.msra.gmra.mrb[84].mxu0 %vm1434_vm4, %v8654_v34  ;;  %v1604_v0 = vpop.f32.mrb[44].mxu0  ;;  %v8855_v8 = vld [vmem:[#allocation2 + $0xb0] sm:$0xff] }
 0x2fb   : > { %v1787_v26 = vcombine.high %v1785_v32, %v1785_v32  ;;  %v1994_v11 = vcombine.low %v1778_v29, %v1786_v42  ;;  %v1788_v27 = vcombine.high %v1666_v6, %v1666_v6  ;;  %v1795_v28 = vrot.slane %v1666_v6, %v8541_v9  ;;  %6521 = vmatprep.mubr.msk.bf16.mxu0 %vm1434_vm4, %v8704_v25  ;;  %v6455_v40 = vpop.f32.mrb[45].mxu0 }
 0x2fc   : > { %v1986_v57 = vcombine.low %v1978_v37, %v1985_v60  ;;  %2166 = vst.msk [vmem:[#allocation2 + $0xd8] sm:$0x3] %vm1436_vm3, %v1993_v39  ;;  %v1667_v41 = vmul.f32 %v8725_v3, %v1646_v4  ;;  %v1605_v34 = vadd.f32 %v8529_v58, %v1604_v0  ;;  %v1607_v63 = vpop.f32.mrb[46].mxu0  ;;  %v3814_v38 = vpack.c.bf16 %v8855_v8, %v3806_v33 }
 0x2fd   : > { %6526 = vmatpush3.bf16.msra.mxu0 %v3220_v10  ;;  %v1995_v29 = vcombine.low %v1785_v32, %v1787_v26  ;;  %v2002_v16 = vrot.slane %v1994_v11, %v8541_v9  ;;  %v1802_v42 = vrot.slane %v1788_v27, %v8541_v9  ;;  %v1803_v6 = vcombine.high %v1795_v28, %v1795_v28  ;;  %v6456_v25 = vpop.f32.mrb[47].mxu0 }
 0x2fe   : > { %6987 = vmatprep.subr.msk.bf16.mxu0 %vm2941_vm2, %v3308_v56  ;;  %2165 = vst.msk [vmem:[#allocation2 + $0xd0] sm:$0xff] %vm1434_vm4, %v1986_v57  ;;  %v2017_v37 = vrot.slane %v1795_v28, %v8541_v9  ;;  %v1805_v4 = vcombine.high %v1667_v41, %v1667_v41  ;;  %v1812_v60 = vrot.slane %v1667_v41, %v8541_v9  ;;  %v1634_v39 = vmax.f32 %v1605_v34, 0.0 }
 0x2ff   : > { %6587 = vmatprep.mubr.msk.bf16.mxu1 %vm1434_vm4, %v3814_v38  ;;  %v2009_v10 = vrot.slane %v1995_v29, %v8541_v9  ;;  %v2018_v32 = vcombine.low %v1803_v6, %v1802_v42  ;;  %v1804_v0 = vcombine.high %v1802_v42, %v1802_v42  ;;  %v1608_v26 = vadd.f32 %v8529_v58, %v1607_v63 }
 0x300   : > { %2168 = vst.msk [vmem:[#allocation2 + $0xe8] sm:$0x3] %vm1436_vm3, %v2017_v37  ;;  %v1819_v11 = vrot.slane %v1805_v4, %v8541_v9  ;;  %v1820_v27 = vcombine.high %v1812_v60, %v1812_v60  ;;  %v1647_v40 = vmul.f32 %v1634_v39, %v8519_v51  ;;  %v3201_v41 = vpack.c.bf16 %v8770_v22, %v8728_v5 }
 0x301   : > { %v2010_v28 = vcombine.low %v2002_v16, %v2009_v10  ;;  %v2019_v33 = vcombine.low %v1804_v0, %v1812_v60  ;;  %v1635_v57 = vmax.f32 %v1608_v26, 0.0  ;;  %v8883_v42 = vsel %vm2941_vm2, %v3308_v56, 0  ;;  %v8900_v26 = vld [vmem:[#allocation2 + $0xc0] sm:$0xff] }
 0x302   : > { %v1821_v34 = vcombine.high %v1819_v11, %v1819_v11  ;;  %v2041_v38 = vrot.slane %v1820_v27, %v8541_v9  ;;  %v1668_v29 = vmul.f32 %v8725_v3, %v1647_v40  ;;  %6522 = vmatmul.mubr.msk.bf16.gmra.mrb[88].mxu0 %vm1434_vm4, %v8746_v23  ;;  %v1612_v63 = vpop.f32.mrb[48].mxu0  ;;  %v2026_v16 = vrot.slane %v2018_v32, %v8541_v9 }
 0x303   : > { %2167 = vst.msk [vmem:[#allocation2 + $0xe0] sm:$0xff] %vm1434_vm4, %v2010_v28  ;;  %v2033_v6 = vrot.slane %v2019_v33, %v8541_v9  ;;  %v1648_v5 = vmul.f32 %v1635_v57, %v8527_v54  ;;  %v1613_v22 = vadd.f32 %v8529_v58, %v1612_v63  ;;  %6527 = vmatprep.mubr.msk.bf16.mxu0 %vm1434_vm4, %v3201_v41  ;;  %v6459_v25 = vpop.f32.mrb[49].mxu0  ;;  %v3935_v60 = vsel %vm2941_vm2, %v8709_v31, 0  ;;  %v8920_v41 = vld [vmem:[#allocation15 + $0x16] sm:$0x3] }
 0x304   : > { %2170 = vst.msk [vmem:[#allocation2 + $0xf8] sm:$0x3] %vm1436_vm3, %v2041_v38  ;;  %v1822_v23 = vcombine.high %v1668_v29, %v1668_v29  ;;  %v1829_v56 = vrot.slane %v1668_v29, %v8541_v9  ;;  %v1615_v37 = vpop.f32.mrb[50].mxu0  ;;  %v3202_v4 = vpack.c.bf16 %v8780_v47, %v8762_v62  ;;  %v2042_v28 = vcombine.low %v1819_v11, %v1821_v34 }
 0x305   : > { %v2034_v39 = vcombine.low %v2026_v16, %v2033_v6  ;;  %v1669_v10 = vmul.f32 %v8725_v3, %v1648_v5  ;;  %v1636_v32 = vmax.f32 %v1613_v22, 0.0  ;;  %v1616_v0 = vadd.f32 %v8529_v58, %v1615_v37  ;;  %v8902_v27 = vld [vmem:[#allocation2 + $0xd0] sm:$0xff]  ;;  %v6460_v40 = vpop.f32.mrb[51].mxu0 }
 0x306   : > { %v1836_v33 = vrot.slane %v1822_v23, %v8541_v9  ;;  %v1837_v57 = vcombine.high %v1829_v56, %v1829_v56  ;;  %v8907_v62 = vpack.c.bf16 %v8902_v27, %v8900_v26  ;;  %v3203_v63 = vpack.c.bf16 %v8803_v21, %v8765_v1  ;;  %v8940_v1 = vld [vmem:[#allocation15 + $0xa] sm:$0x3] }
 0x307   : > { %2169 = vst.msk [vmem:[#allocation2 + $0xf0] sm:$0xff] %vm1434_vm4, %v2034_v39  ;;  %v1839_v58 = vcombine.high %v1669_v10, %v1669_v10  ;;  %v1846_v31 = vrot.slane %v1669_v10, %v8541_v9  ;;  %v1649_v47 = vmul.f32 %v1636_v32, %v8523_v52  ;;  %v1637_v11 = vmax.f32 %v1616_v0, 0.0  ;;  %v8944_v0 = vld [vmem:[#allocation2 + $0x80] sm:$0xff] }
 0x308   : > { %v2043_v34 = vcombine.low %v1829_v56, %v1837_v57  ;;  %v2065_v38 = vrot.slane %v1836_v33, %v8541_v9  ;;  %v1838_v29 = vcombine.high %v1836_v33, %v1836_v33  ;;  %6588 = vmatmul.mubr.msk.bf16.vlgmr.msra.gmra.mrb[0].mxu1 %vm1434_vm4, %v8907_v62  ;;  %v2050_v25 = vrot.slane %v2042_v28, %v8541_v9  ;;  %v7269_v33 = vld [vmem:[#allocation14] ss:$0 sm:$0xff] }
 0x309   : > { %v1853_v16 = vrot.slane %v1839_v58, %v8541_v9  ;;  %v1854_v6 = vcombine.high %v1846_v31, %v1846_v31  ;;  %v1670_v5 = vmul.f32 %v8725_v3, %v1649_v47  ;;  %v1650_v22 = vmul.f32 %v1637_v11, %v8525_v53  ;;  %6596 = vmatpush3.bf16.msra.mxu1 %v3935_v60 }
 0x30a   : > { %v2057_v23 = vrot.slane %v2043_v34, %v8541_v9  ;;  %2172 = vst.msk [vmem:[#allocation2 + $0x108] sm:$0x3] %vm1436_vm3, %v2065_v38  ;;  %v2066_v56 = vcombine.low %v1838_v29, %v1846_v31  ;;  %6528 = vmatmul.mubr.msk.bf16.vlgmr.msra.gmra.mrb[84].mxu0 %vm1434_vm4, %v3202_v4  ;;  %v1620_v37 = vpop.f32.mrb[52].mxu0  ;;  %6994 = vmatprep.subr.msk.bf16.mxu1 %vm2941_vm2, %v8920_v41 }
 0x30b   : > { %v1855_v21 = vcombine.high %v1853_v16, %v1853_v16  ;;  %v2067_v60 = vcombine.low %v1854_v6, %v1853_v16  ;;  %v1856_v39 = vcombine.high %v1670_v5, %v1670_v5  ;;  %v1863_v10 = vrot.slane %v1670_v5, %v8541_v9  ;;  %6531 = vmatprep.mubr.msk.bf16.mxu0 %vm1434_vm4, %v3203_v63  ;;  %v6463_v32 = vpop.f32.mrb[53].mxu0  ;;  %v8958_v6 = vld [vmem:[#allocation2 + $0xe0] sm:$0xff] }
 0x30c   : > { %v2058_v4 = vcombine.low %v2050_v25, %v2057_v23  ;;  %v2074_v40 = vrot.slane %v2066_v56, %v8541_v9  ;;  %v1671_v28 = vmul.f32 %v8725_v3, %v1650_v22  ;;  %v1621_v57 = vadd.f32 %v7269_v33, %v1620_v37  ;;  %v1623_v58 = vpop.f32.mrb[54].mxu0  ;;  %6536 = vmatpush3.bf16.msra.mxu0 %v8883_v42 }
 0x30d   : > { %v2081_v31 = vrot.slane %v2067_v60, %v8541_v9  ;;  %v2089_v47 = vrot.slane %v1855_v21, %v8541_v9  ;;  %v1870_v11 = vrot.slane %v1856_v39, %v8541_v9  ;;  %v1871_v34 = vcombine.high %v1863_v10, %v1863_v10  ;;  %v6464_v38 = vpop.f32.mrb[55].mxu0  ;;  %6988 = vmatprep.subr.msk.bf16.mxu0 %vm2941_vm2, %v8940_v1  ;;  %v8977_v39 = vld [vmem:[#allocation14] ss:$0 sm:$0xff] }
 0x30e   : > { %2171 = vst.msk [vmem:[#allocation2 + $0x100] sm:$0xff] %vm1434_vm4, %v2058_v4  ;;  %v1873_v29 = vcombine.high %v1671_v28, %v1671_v28  ;;  %v1880_v63 = vrot.slane %v1671_v28, %v8541_v9  ;;  %v1638_v16 = vmax.f32 %v1621_v57, 0.0  ;;  %v3204_v42 = vpack.c.bf16 %v8944_v0, %v8788_v36  ;;  %v8960_v5 = vld [vmem:[#allocation2 + $0xf0] sm:$0xff] }
 0x30f   : > { %v2082_v22 = vcombine.low %v2074_v40, %v2081_v31  ;;  %2174 = vst.msk [vmem:[#allocation2 + $0x118] sm:$0x3] %vm1436_vm3, %v2089_v47  ;;  %v1872_v25 = vcombine.high %v1870_v11, %v1870_v11  ;;  %v2090_v23 = vcombine.low %v1863_v10, %v1871_v34  ;;  %v8972_v56 = vpack.c.bf16 %v8960_v5, %v8958_v6 }
 0x310   : > { %v1887_v36 = vrot.slane %v1873_v29, %v8541_v9  ;;  %v1888_v37 = vcombine.high %v1880_v63, %v1880_v63  ;;  %v2113_v21 = vrot.slane %v1880_v63, %v8541_v9  ;;  %v1651_v60 = vmul.f32 %v1638_v16, %v8531_v59 }
 0x311   : > { %2173 = vst.msk [vmem:[#allocation2 + $0x110] sm:$0xff] %vm1434_vm4, %v2082_v22  ;;  %v2091_v32 = vcombine.low %v1870_v11, %v1872_v25  ;;  %6591 = vmatprep.mubr.msk.bf16.mxu1 %vm1434_vm4, %v8972_v56  ;;  %v2098_v40 = vrot.slane %v2090_v23, %v8541_v9  ;;  %v9692_v57 = vpack.c.bf16 %v8614_v43, %v8596_v15  ;;  %v8995_v22 = vstv %s2381_s17  ;;  %v8999_v25 = vld [vmem:[#allocation2 + $0xb1] sm:$0xff] }
 0x312   : > { %2176 = vst.msk [vmem:[#allocation2 + $0x128] sm:$0x3] %vm1436_vm3, %v2113_v21  ;;  %v1672_v10 = vmul.f32 %v8725_v3, %v1651_v60  ;;  %6532 = vmatmul.mubr.msk.bf16.gmra.mrb[88].mxu0 %vm1434_vm4, %v3204_v42  ;;  %v2295_v4 = vpop.f32.mrb[56].mxu0  ;;  %v2114_v31 = vcombine.low %v1888_v37, %v1887_v36  ;;  %v1889_v47 = vcombine.high %v1887_v36, %v1887_v36 }
 0x313   : > { %v2105_v28 = vrot.slane %v2091_v32, %v8541_v9  ;;  %v2296_v33 = vadd.f32 %v8977_v39, %v2295_v4  ;;  %6537 = vmatprep.mubr.msk.bf16.mxu0 %vm1434_vm4, %v9692_v57  ;;  %v6469_v58 = vpop.f32.mrb[57].mxu0  ;;  %v3908_v4 = vld [vmem:[#allocation2 + $0xa1] sm:$0xff]  ;;  %v3305_v57 = vpack.c.bf16 %v8733_v12, %v8691_v17 }
 0x314   : > { %v1896_v3 = vrot.slane %v1672_v10, %v8541_v9  ;;  %v2298_v11 = vpop.f32.mrb[58].mxu0  ;;  %v2122_v23 = vrot.slane %v2114_v31, %v8541_v9  ;;  %v3916_v58 = vpack.c.bf16 %v8999_v25, %v3908_v4 }
 0x315   : > { %v2106_v34 = vcombine.low %v2098_v40, %v2105_v28  ;;  %v2349_v38 = vmax.f32 %v2296_v33, 0.0  ;;  %v2299_v29 = vadd.f32 %v8977_v39, %v2298_v11  ;;  %v6470_v63 = vpop.f32.mrb[59].mxu0  ;;  %v9004_v21 = vld [vmem:[#allocation2 + $0x100] sm:$0xff]  ;;  %v9693_v28 = vpack.c.bf16 %v8669_v61, %v8632_v20  ;;  %v3513_v11 = vld [vmem:[#allocation15 + $0xc] sm:$0x3] }
 0x316   : > { %v1897_v16 = vcombine.high %v1896_v3, %v1896_v3  ;;  %v2115_v42 = vcombine.low %v1889_v47, %v1896_v3  ;;  %v9034_v63 = vld [vmem:[#allocation2 + $0x81] sm:$0xff] }
 0x317   : > { %2175 = vst.msk [vmem:[#allocation2 + $0x120] sm:$0xff] %vm1434_vm4, %v2106_v34  ;;  %v2362_v15 = vmul.f32 %v2349_v38, %v8534_v2  ;;  %v2350_v43 = vmax.f32 %v2299_v29, 0.0 }
 0x318   : > { %v2129_v36 = vrot.slane %v2115_v42, %v8541_v9  ;;  %v2137_v37 = vrot.slane %v1897_v16, %v8541_v9  ;;  %v9006_v60 = vld [vmem:[#allocation2 + $0x110] sm:$0xff] }
 0x319   : > { %v2383_v32 = vmul.f32 %v8995_v22, %v2362_v15  ;;  %v2363_v10 = vmul.f32 %v2350_v43, %v8539_v7  ;;  %v9012_v2 = vpack.c.bf16 %v9006_v60, %v9004_v21  ;;  %v3424_v7 = vsel %vm2941_vm2, %v8940_v1, 0  ;;  %v9037_v15 = vld [vmem:[#allocation2 + $0xd1] sm:$0xff] }
 0x31a   : > { %v2130_v40 = vcombine.low %v2122_v23, %v2129_v36  ;;  %2178 = vst.msk [vmem:[#allocation2 + $0x138] sm:$0x3] %vm1436_vm3, %v2137_v37  ;;  %6538 = vmatmul.mubr.msk.bf16.vlgmr.msra.gmra.mrb[84].mxu0 %vm1434_vm4, %v9693_v28  ;;  %v2303_v33 = vpop.f32.mrb[60].mxu0  ;;  %v3405_v43 = vpack.c.bf16 %v8647_v30, %v8817_v35  ;;  %v9041_v23 = vld [vmem:[#allocation2 + $0xf1] sm:$0xff]  ;;  %v4037_v36 = vsel %vm2941_vm2, %v8920_v41, 0  ;;  %v3306_v30 = vpack.c.bf16 %v9034_v63, %v8735_v13  ;;  %v9051_v35 = vld [vmem:[#allocation2 + $0xc1] sm:$0xff] }
 0x31b   : > { %v2409_v31 = vcombine.high %v2383_v32, %v2383_v32  ;;  %v2416_v47 = vrot.slane %v2383_v32, %v8541_v9  ;;  %v2384_v3 = vmul.f32 %v8995_v22, %v2363_v10  ;;  %6592 = vmatmul.mubr.msk.bf16.gmra.mrb[4].mxu1 %vm1434_vm4, %v9012_v2  ;;  %v2304_v20 = vadd.f32 %v8977_v39, %v2303_v33  ;;  %v6473_v61 = vpop.f32.mrb[61].mxu0  ;;  %v3399_v41 = vld [vmem:[#allocation2 + $0x32] sm:$0xff] }
 0x31c   : > { %2177 = vst.msk [vmem:[#allocation2 + $0x130] sm:$0xff] %vm1434_vm4, %v2130_v40  ;;  %6541 = vmatprep.mubr.msk.bf16.mxu0 %vm1434_vm4, %v3305_v57  ;;  %6597 = vmatprep.mubr.msk.bf16.mxu1 %vm1434_vm4, %v3916_v58  ;;  %v2306_v17 = vpop.f32.mrb[62].mxu0  ;;  %v9053_v57 = vld [vmem:[#allocation2 + $0xe1] sm:$0xff] }
 0x31d   : > { %v2423_v12 = vrot.slane %v2409_v31, %v8541_v9  ;;  %v2424_v1 = vcombine.high %v2416_v47, %v2416_v47  ;;  %v2426_v34 = vcombine.high %v2384_v3, %v2384_v3  ;;  %v2433_v38 = vrot.slane %v2384_v3, %v8541_v9  ;;  %v6474_v29 = vpop.f32.mrb[63].mxu0  ;;  %6546 = vmatpush3.bf16.msra.mxu0 %v3424_v7 }
 0x31e   : > { %v2351_v16 = vmax.f32 %v2304_v20, 0.0  ;;  %v2307_v42 = vadd.f32 %v8977_v39, %v2306_v17  ;;  %6989 = vmatprep.subr.msk.bf16.mxu0 %vm2941_vm2, %v3513_v11  ;;  %v9057_v7 = vpack.c.bf16 %v9037_v15, %v9051_v35  ;;  %v9061_v31 = vpack.c.bf16 %v9041_v23, %v9053_v57  ;;  %v9069_v17 = vld [vmem:[#allocation2 + $0xb2] sm:$0xff] }
 0x31f   : > { %v2425_v37 = vcombine.high %v2423_v12, %v2423_v12  ;;  %v2621_v32 = vcombine.low %v2416_v47, %v2424_v1  ;;  %v2440_v10 = vrot.slane %v2426_v34, %v8541_v9  ;;  %v2441_v4 = vcombine.high %v2433_v38, %v2433_v38 }
 0x320   : > { %v2644_v40 = vrot.slane %v2433_v38, %v8541_v9  ;;  %v2364_v28 = vmul.f32 %v2351_v16, %v8503_v44  ;;  %v2352_v33 = vmax.f32 %v2307_v42, 0.0  ;;  %v3406_v44 = vpack.c.bf16 %v8693_v18, %v3399_v41 }
 0x321   : > { %v2622_v58 = vcombine.low %v2423_v12, %v2425_v37  ;;  %v2629_v47 = vrot.slane %v2621_v32, %v8541_v9  ;;  %v2645_v3 = vcombine.low %v2441_v4, %v2440_v10  ;;  %v4126_v12 = vld [vmem:[#allocation15 + $0x18] sm:$0x3]  ;;  %v2442_v34 = vcombine.high %v2440_v10, %v2440_v10 }
 0x322   : > { %2883 = vst.msk [vmem:[#allocation2 + $0x148] sm:$0x3] %vm1436_vm3, %v2644_v40  ;;  %v2385_v13 = vmul.f32 %v8995_v22, %v2364_v28  ;;  %v2365_v20 = vmul.f32 %v2352_v33, %v8507_v46  ;;  %6542 = vmatmul.mubr.msk.bf16.gmra.mrb[88].mxu0 %vm1434_vm4, %v3306_v30  ;;  %v2311_v61 = vpop.f32.mrb[64].mxu0  ;;  %v4010_v37 = vld [vmem:[#allocation2 + $0xa2] sm:$0xff]  ;;  %v3527_v32 = vsel %vm2941_vm2, %v3513_v11, 0 }
 0x323   : > { %v2636_v1 = vrot.slane %v2622_v58, %v8541_v9  ;;  %6598 = vmatmul.mubr.msk.bf16.vlgmr.msra.gmra.mrb[0].mxu1 %vm1434_vm4, %v9057_v7  ;;  %v2312_v18 = vadd.f32 %v8977_v39, %v2311_v61  ;;  %6547 = vmatprep.mubr.msk.bf16.mxu0 %vm1434_vm4, %v3405_v43  ;;  %v6477_v38 = vpop.f32.mrb[65].mxu0  ;;  %v4018_v43 = vpack.c.bf16 %v9069_v17, %v4010_v37 }
 0x324   : > { %v2443_v29 = vcombine.high %v2385_v13, %v2385_v13  ;;  %v2450_v46 = vrot.slane %v2385_v13, %v8541_v9  ;;  %v2386_v16 = vmul.f32 %v8995_v22, %v2365_v20  ;;  %6601 = vmatprep.mubr.msk.bf16.mxu1 %vm1434_vm4, %v9061_v31  ;;  %6606 = vmatpush3.bf16.msra.mxu1 %v4037_v36  ;;  %v2314_v42 = vpop.f32.mrb[66].mxu0  ;;  %v9085_v13 = vld [vmem:[#allocation2 + $0x111] sm:$0xff] }
 0x325   : > { %v2637_v10 = vcombine.low %v2629_v47, %v2636_v1  ;;  %v2353_v4 = vmax.f32 %v2312_v18, 0.0  ;;  %v2315_v40 = vadd.f32 %v8977_v39, %v2314_v42  ;;  %v6478_v28 = vpop.f32.mrb[67].mxu0  ;;  %6995 = vmatprep.subr.msk.bf16.mxu1 %vm2941_vm2, %v4126_v12  ;;  %v2653_v11 = vrot.slane %v2645_v3, %v8541_v9 }
 0x326   : > { %v2457_v33 = vrot.slane %v2443_v29, %v8541_v9  ;;  %v2458_v30 = vcombine.high %v2450_v46, %v2450_v46  ;;  %v2646_v41 = vcombine.low %v2442_v34, %v2450_v46  ;;  %v2460_v58 = vcombine.high %v2386_v16, %v2386_v16  ;;  %v9094_v34 = vld [vmem:[#allocation2 + $0x101] sm:$0xff] }
 0x327   : > { %2882 = vst.msk [vmem:[#allocation2 + $0x140] sm:$0xff] %vm1434_vm4, %v2637_v10  ;;  %v2467_v36 = vrot.slane %v2386_v16, %v8541_v9  ;;  %v2366_v47 = vmul.f32 %v2353_v4, %v8515_v49  ;;  %v2354_v20 = vmax.f32 %v2315_v40, 0.0  ;;  %v9100_v3 = vpack.c.bf16 %v9085_v13, %v9094_v34 }
 0x328   : > { %v2459_v61 = vcombine.high %v2457_v33, %v2457_v33  ;;  %v2660_v1 = vrot.slane %v2646_v41, %v8541_v9  ;;  %v2668_v18 = vrot.slane %v2458_v30, %v8541_v9  ;;  %v2474_v38 = vrot.slane %v2460_v58, %v8541_v9  ;;  %v3615_v58 = vld [vmem:[#allocation15 + $0xe] sm:$0x3] }
 0x329   : > { %v2475_v29 = vcombine.high %v2467_v36, %v2467_v36  ;;  %v2387_v46 = vmul.f32 %v8995_v22, %v2366_v47  ;;  %v2367_v42 = vmul.f32 %v2354_v20, %v8505_v45  ;;  %v9118_v47 = vld [vmem:[#allocation2 + $0xd2] sm:$0xff]  ;;  %v4140_v20 = vsel %vm2941_vm2, %v4126_v12, 0 }
 0x32a   : > { %v2661_v49 = vcombine.low %v2653_v11, %v2660_v1  ;;  %v2669_v16 = vcombine.low %v2457_v33, %v2459_v61  ;;  %2885 = vst.msk [vmem:[#allocation2 + $0x158] sm:$0x3] %vm1436_vm3, %v2668_v18  ;;  %v2692_v37 = vrot.slane %v2474_v38, %v8541_v9  ;;  %v2476_v10 = vcombine.high %v2474_v38, %v2474_v38  ;;  %v2319_v4 = vpop.f32.mrb[68].mxu0 }
 0x32b   : > { %6548 = vmatmul.mubr.msk.bf16.vlgmr.msra.gmra.mrb[84].mxu0 %vm1434_vm4, %v3406_v44  ;;  %v2670_v40 = vcombine.low %v2467_v36, %v2475_v29  ;;  %v2477_v28 = vcombine.high %v2387_v46, %v2387_v46  ;;  %v2484_v30 = vrot.slane %v2387_v46, %v8541_v9  ;;  %v2388_v45 = vmul.f32 %v8995_v22, %v2367_v42  ;;  %v6481_v41 = vpop.f32.mrb[69].mxu0 }
 0x32c   : > { %6602 = vmatmul.mubr.msk.bf16.gmra.mrb[4].mxu1 %vm1434_vm4, %v9100_v3  ;;  %v2677_v33 = vrot.slane %v2669_v16, %v8541_v9  ;;  %2884 = vst.msk [vmem:[#allocation2 + $0x150] sm:$0xff] %vm1434_vm4, %v2661_v49  ;;  %v2320_v44 = vadd.f32 %v8977_v39, %v2319_v4  ;;  %v9694_v11 = vpack.c.bf16 %v8720_v55, %v8695_v19  ;;  %v2322_v36 = vpop.f32.mrb[70].mxu0  ;;  %v9127_v49 = vld [vmem:[#allocation2 + $0xf2] sm:$0xff] }
 0x32d   : > { %2887 = vst.msk [vmem:[#allocation2 + $0x168] sm:$0x3] %vm1436_vm3, %v2692_v37  ;;  %6607 = vmatprep.mubr.msk.bf16.mxu1 %vm1434_vm4, %v4018_v43  ;;  %v2684_v61 = vrot.slane %v2670_v40, %v8541_v9  ;;  %v2491_v1 = vrot.slane %v2477_v28, %v8541_v9  ;;  %v2492_v18 = vcombine.high %v2484_v30, %v2484_v30  ;;  %v6482_v29 = vpop.f32.mrb[71].mxu0  ;;  %v9125_v43 = vld [vmem:[#allocation2 + $0xc2] sm:$0xff] }
 0x32e   : > { %6551 = vmatprep.mubr.msk.bf16.mxu0 %vm1434_vm4, %v9694_v11  ;;  %v2693_v38 = vcombine.low %v2476_v10, %v2484_v30  ;;  %6556 = vmatpush3.bf16.msra.mxu0 %v3527_v32  ;;  %v2494_v46 = vcombine.high %v2388_v45, %v2388_v45  ;;  %v2501_v19 = vrot.slane %v2388_v45, %v8541_v9  ;;  %v2355_v55 = vmax.f32 %v2320_v44, 0.0  ;;  %v9136_v30 = vld [vmem:[#allocation2 + $0xe2] sm:$0xff]  ;;  %v9138_v45 = vld [vmem:[#allocation2 + $0x31] sm:$0xff] }
 0x32f   : > { %v2323_v42 = vadd.f32 %v8977_v39, %v2322_v36  ;;  %6990 = vmatprep.subr.msk.bf16.mxu0 %vm2941_vm2, %v3615_v58  ;;  %v2685_v12 = vcombine.low %v2677_v33, %v2684_v61  ;;  %v2493_v16 = vcombine.high %v2491_v1, %v2491_v1  ;;  %v2694_v37 = vcombine.low %v2492_v18, %v2491_v1  ;;  %v9154_v29 = vld [vmem:[#allocation2 + $0x21] sm:$0xff] }
 0x330   : > { %v9132_v10 = vpack.c.bf16 %v9118_v47, %v9125_v43  ;;  %v2508_v32 = vrot.slane %v2494_v46, %v8541_v9  ;;  %v2509_v4 = vcombine.high %v2501_v19, %v2501_v19  ;;  %v2368_v40 = vmul.f32 %v2355_v55, %v8513_v48  ;;  %v9696_v55 = vld [vmem:[#allocation46_spill] sm:$0xff] }
 0x331   : > { %v2356_v28 = vmax.f32 %v2323_v42, 0.0  ;;  %2886 = vst.msk [vmem:[#allocation2 + $0x160] sm:$0xff] %vm1434_vm4, %v2685_v12  ;;  %v2701_v41 = vrot.slane %v2693_v38, %v8541_v9  ;;  %v2708_v33 = vrot.slane %v2694_v37, %v8541_v9  ;;  %v2716_v44 = vrot.slane %v2493_v16, %v8541_v9  ;;  %v4228_v42 = vld [vmem:[#allocation15 + $0x1a] sm:$0x3] }
 0x332   : > { %v9146_v11 = vpack.c.bf16 %v9127_v49, %v9136_v30  ;;  %v2510_v36 = vcombine.high %v2508_v32, %v2508_v32  ;;  %v2717_v61 = vcombine.low %v2501_v19, %v2509_v4  ;;  %v2389_v48 = vmul.f32 %v8995_v22, %v2368_v40  ;;  %v2327_v38 = vpop.f32.mrb[72].mxu0 }
 0x333   : > { %v2369_v1 = vmul.f32 %v2356_v28, %v8517_v50  ;;  %v9695_v18 = vpack.c.bf16 %v8772_v24, %v8737_v14  ;;  %v2709_v46 = vcombine.low %v2701_v41, %v2708_v33  ;;  %2889 = vst.msk [vmem:[#allocation2 + $0x178] sm:$0x3] %vm1436_vm3, %v2716_v44  ;;  %v2328_v19 = vadd.f32 %v8977_v39, %v2327_v38  ;;  %v6485_v50 = vpop.f32.mrb[73].mxu0  ;;  %v9172_v44 = vld [vmem:[#allocation2 + $0x112] sm:$0xff] }
 0x334   : > { %6608 = vmatmul.mubr.msk.bf16.vlgmr.msra.gmra.mrb[0].mxu1 %vm1434_vm4, %v9132_v10  ;;  %v3610_v14 = vpack.c.bf16 %v9138_v45, %v9154_v29  ;;  %v2718_v24 = vcombine.low %v2508_v32, %v2510_v36  ;;  %v2511_v12 = vcombine.high %v2389_v48, %v2389_v48  ;;  %v2518_v16 = vrot.slane %v2389_v48, %v8541_v9  ;;  %v2330_v37 = vpop.f32.mrb[74].mxu0  ;;  %v9239_v29 = vld [vmem:[#allocation2 + $0x120] sm:$0xff] }
 0x335   : > { %6552 = vmatmul.mubr.msk.bf16.gmra.mrb[88].mxu0 %vm1434_vm4, %v9695_v18  ;;  %6611 = vmatprep.mubr.msk.bf16.mxu1 %vm1434_vm4, %v9146_v11  ;;  %v3629_v4 = vsel %vm2941_vm2, %v3615_v58, 0  ;;  %2888 = vst.msk [vmem:[#allocation2 + $0x170] sm:$0xff] %vm1434_vm4, %v2709_v46  ;;  %v2725_v40 = vrot.slane %v2717_v61, %v8541_v9  ;;  %v2390_v28 = vmul.f32 %v8995_v22, %v2369_v1  ;;  %v2357_v41 = vmax.f32 %v2328_v19, 0.0  ;;  %v6486_v32 = vpop.f32.mrb[75].mxu0  ;;  %v9180_v46 = vld [vmem:[#allocation2 + $0x102] sm:$0xff]  ;;  %v3507_v19 = vld [vmem:[#allocation2 + $0x90] sm:$0xff] }
 0x336   : > { %6557 = vmatprep.mubr.msk.bf16.mxu0 %vm1434_vm4, %v9696_v55  ;;  %6616 = vmatpush3.bf16.msra.mxu1 %v4140_v20  ;;  %v2331_v33 = vadd.f32 %v8977_v39, %v2330_v37  ;;  %v2732_v36 = vrot.slane %v2718_v24, %v8541_v9  ;;  %v2525_v48 = vrot.slane %v2511_v12, %v8541_v9 }
 0x337   : > { %v2526_v18 = vcombine.high %v2518_v16, %v2518_v16  ;;  %v2740_v58 = vrot.slane %v2518_v16, %v8541_v9  ;;  %6996 = vmatprep.subr.msk.bf16.mxu1 %vm2941_vm2, %v4228_v42  ;;  %v2528_v38 = vcombine.high %v2390_v28, %v2390_v28  ;;  %v2535_v61 = vrot.slane %v2390_v28, %v8541_v9 }
 0x338   : > { %v2370_v1 = vmul.f32 %v2357_v41, %v8519_v51  ;;  %v2358_v20 = vmax.f32 %v2331_v33, 0.0  ;;  %v2733_v55 = vcombine.low %v2725_v40, %v2732_v36  ;;  %v2527_v24 = vcombine.high %v2525_v48, %v2525_v48  ;;  %v9697_v33 = vld [vmem:[#allocation47_spill] sm:$0xff] }
 0x339   : > { %v2741_v50 = vcombine.low %v2526_v18, %v2525_v48  ;;  %2891 = vst.msk [vmem:[#allocation2 + $0x188] sm:$0x3] %vm1436_vm3, %v2740_v58  ;;  %v9185_v12 = vpack.c.bf16 %v9172_v44, %v9180_v46  ;;  %v2542_v16 = vrot.slane %v2528_v38, %v8541_v9  ;;  %v2543_v37 = vcombine.high %v2535_v61, %v2535_v61 }
 0x33a   : > { %v2391_v28 = vmul.f32 %v8995_v22, %v2370_v1  ;;  %v2371_v51 = vmul.f32 %v2358_v20, %v8527_v54  ;;  %2890 = vst.msk [vmem:[#allocation2 + $0x180] sm:$0xff] %vm1434_vm4, %v2733_v55  ;;  %v2742_v40 = vcombine.low %v2527_v24, %v2535_v61  ;;  %v2335_v32 = vpop.f32.mrb[76].mxu0  ;;  %v4121_v36 = vpack.c.bf16 %v8900_v26, %v8855_v8 }
 0x33b   : > { %v2749_v41 = vrot.slane %v2741_v50, %v8541_v9  ;;  %v3511_v48 = vpack.c.bf16 %v3507_v19, %v8944_v0  ;;  %v2544_v18 = vcombine.high %v2542_v16, %v2542_v16  ;;  %v2764_v58 = vrot.slane %v2543_v37, %v8541_v9  ;;  %v6489_v1 = vpop.f32.mrb[77].mxu0  ;;  %v9698_v50 = vld [vmem:[#allocation48_spill] sm:$0xff] }
 0x33c   : > { %v2545_v38 = vcombine.high %v2391_v28, %v2391_v28  ;;  %v2552_v54 = vrot.slane %v2391_v28, %v8541_v9  ;;  %6612 = vmatmul.mubr.msk.bf16.gmra.mrb[4].mxu1 %vm1434_vm4, %v9185_v12  ;;  %v2756_v61 = vrot.slane %v2742_v40, %v8541_v9  ;;  %v2392_v20 = vmul.f32 %v8995_v22, %v2371_v51  ;;  %v2338_v8 = vpop.f32.mrb[78].mxu0 }
 0x33d   : > { %6558 = vmatmul.mubr.msk.bf16.vlgmr.msra.gmra.mrb[84].mxu0 %vm1434_vm4, %v9697_v33  ;;  %v2336_v55 = vadd.f32 %v8977_v39, %v2335_v32  ;;  %6617 = vmatprep.mubr.msk.bf16.mxu1 %vm1434_vm4, %v4121_v36  ;;  %v4242_v26 = vsel %vm2941_vm2, %v4228_v42, 0  ;;  %v2765_v0 = vcombine.low %v2542_v16, %v2544_v18  ;;  %2893 = vst.msk [vmem:[#allocation2 + $0x198] sm:$0x3] %vm1436_vm3, %v2764_v58  ;;  %v6490_v28 = vpop.f32.mrb[79].mxu0 }
 0x33e   : > { %6561 = vmatprep.mubr.msk.bf16.mxu0 %vm1434_vm4, %v9698_v50  ;;  %v2559_v19 = vrot.slane %v2545_v38, %v8541_v9  ;;  %v2560_v24 = vcombine.high %v2552_v54, %v2552_v54  ;;  %v2339_v37 = vadd.f32 %v8977_v39, %v2338_v8  ;;  %6566 = vmatpush3.bf16.msra.mxu0 %v3629_v4  ;;  %v3605_v28 = vld [vmem:[#allocation2 + $0x51] sm:$0xff] }
 0x33f   : > { %v2757_v51 = vcombine.low %v2749_v41, %v2756_v61  ;;  %v2562_v40 = vcombine.high %v2392_v20, %v2392_v20  ;;  %v2569_v33 = vrot.slane %v2392_v20, %v8541_v9  ;;  %v2359_v32 = vmax.f32 %v2336_v55, 0.0 }
 0x340   : > { %v2766_v1 = vcombine.low %v2552_v54, %v2560_v24  ;;  %v2788_v36 = vrot.slane %v2559_v19, %v8541_v9  ;;  %v2561_v50 = vcombine.high %v2559_v19, %v2559_v19  ;;  %v4122_v42 = vpack.c.bf16 %v8958_v6, %v8902_v27 }
 0x341   : > { %2892 = vst.msk [vmem:[#allocation2 + $0x190] sm:$0xff] %vm1434_vm4, %v2757_v51  ;;  %v2576_v16 = vrot.slane %v2562_v40, %v8541_v9  ;;  %v2577_v18 = vcombine.high %v2569_v33, %v2569_v33  ;;  %v2372_v58 = vmul.f32 %v2359_v32, %v8523_v52  ;;  %v2360_v4 = vmax.f32 %v2339_v37, 0.0 }
 0x342   : > { %v2773_v41 = vrot.slane %v2765_v0, %v8541_v9  ;;  %v2780_v38 = vrot.slane %v2766_v1, %v8541_v9  ;;  %2895 = vst.msk [vmem:[#allocation2 + $0x1a8] sm:$0x3] %vm1436_vm3, %v2788_v36  ;;  %v2789_v54 = vcombine.low %v2561_v50, %v2569_v33  ;;  %v4123_v61 = vpack.c.bf16 %v9004_v21, %v8960_v5  ;;  %v2343_v52 = vpop.f32.mrb[80].mxu0  ;;  %v4330_v5 = vld [vmem:[#allocation15 + $0x1c] sm:$0x3] }
 0x343   : > { %v2578_v20 = vcombine.high %v2576_v16, %v2576_v16  ;;  %v2790_v27 = vcombine.low %v2577_v18, %v2576_v16  ;;  %v2393_v6 = vmul.f32 %v8995_v22, %v2372_v58  ;;  %v2373_v55 = vmul.f32 %v2360_v4, %v8525_v53  ;;  %v6493_v21 = vpop.f32.mrb[81].mxu0  ;;  %v3604_v36 = vld [vmem:[#allocation2 + $0x41] sm:$0xff] }
 0x344   : > { %v2781_v8 = vcombine.low %v2773_v41, %v2780_v38  ;;  %v2797_v0 = vrot.slane %v2789_v54, %v8541_v9  ;;  %6618 = vmatmul.mubr.msk.bf16.vlgmr.msra.gmra.mrb[0].mxu1 %vm1434_vm4, %v4122_v42  ;;  %v2344_v19 = vadd.f32 %v8977_v39, %v2343_v52  ;;  %v2346_v51 = vpop.f32.mrb[82].mxu0  ;;  %v3611_v18 = vpack.c.bf16 %v3605_v28, %v3604_v36  ;;  %v3609_v21 = vld [vmem:[#allocation2 + $0x91] sm:$0xff] }
 0x345   : > { %6562 = vmatmul.mubr.msk.bf16.gmra.mrb[88].mxu0 %vm1434_vm4, %v3511_v48  ;;  %v2804_v24 = vrot.slane %v2790_v27, %v8541_v9  ;;  %v2812_v53 = vrot.slane %v2578_v20, %v8541_v9  ;;  %v2579_v48 = vcombine.high %v2393_v6, %v2393_v6  ;;  %v2586_v37 = vrot.slane %v2393_v6, %v8541_v9  ;;  %v6494_v40 = vpop.f32.mrb[83].mxu0 }
 0x346   : > { %6567 = vmatprep.mubr.msk.bf16.mxu0 %vm1434_vm4, %v3610_v14  ;;  %6621 = vmatprep.mubr.msk.bf16.mxu1 %vm1434_vm4, %v4123_v61  ;;  %2894 = vst.msk [vmem:[#allocation2 + $0x1a0] sm:$0xff] %vm1434_vm4, %v2781_v8  ;;  %v2394_v39 = vmul.f32 %v8995_v22, %v2373_v55  ;;  %v2361_v45 = vmax.f32 %v2344_v19, 0.0  ;;  %v3607_v14 = vld [vmem:[#allocation2 + $0x71] sm:$0xff]  ;;  %v4124_v41 = vpack.c.bf16 %v9239_v29, %v9006_v60  ;;  %v4344_v51 = vsel %vm2941_vm2, %v4330_v5, 0 }
 0x347   : > { %6626 = vmatpush3.bf16.msra.mxu1 %v4242_v26  ;;  %v2805_v33 = vcombine.low %v2797_v0, %v2804_v24  ;;  %2897 = vst.msk [vmem:[#allocation2 + $0x1b8] sm:$0x3] %vm1436_vm3, %v2812_v53  ;;  %v2593_v32 = vrot.slane %v2579_v48, %v8541_v9  ;;  %v2594_v1 = vcombine.high %v2586_v37, %v2586_v37  ;;  %v3606_v26 = vld [vmem:[#allocation2 + $0x61] sm:$0xff] }
 0x348   : > { %6997 = vmatprep.subr.msk.bf16.mxu1 %vm2941_vm2, %v4330_v5  ;;  %v2596_v50 = vcombine.high %v2394_v39, %v2394_v39  ;;  %v2603_v42 = vrot.slane %v2394_v39, %v8541_v9  ;;  %v2374_v16 = vmul.f32 %v2361_v45, %v8531_v59  ;;  %v3612_v38 = vpack.c.bf16 %v3607_v14, %v3606_v26  ;;  %v4433_v45 = vld [vmem:[#allocation15 + $0x1e] sm:$0x3]  ;;  %v4535_v5 = vld [vmem:[#allocation15 + $0x20] sm:$0x3]  ;;  %v4726_v14 = vld [vmem:[#allocation2 + $0x140] sm:$0xff] }
 0x349   : > { %2896 = vst.msk [vmem:[#allocation2 + $0x1b0] sm:$0xff] %vm1434_vm4, %v2805_v33  ;;  %v2595_v58 = vcombine.high %v2593_v32, %v2593_v32  ;;  %v2813_v4 = vcombine.low %v2586_v37, %v2594_v1  ;;  %v4223_v59 = vpack.c.bf16 %v9051_v35, %v8999_v25  ;;  %v3613_v48 = vpack.c.bf16 %v3609_v21, %v9034_v63  ;;  %v4728_v33 = vld [vmem:[#allocation2 + $0x160] sm:$0xff] }
 0x34a   : > { %v2610_v54 = vrot.slane %v2596_v50, %v8541_v9  ;;  %v2611_v61 = vcombine.high %v2603_v42, %v2603_v42  ;;  %v2836_v20 = vrot.slane %v2603_v42, %v8541_v9  ;;  %v2395_v27 = vmul.f32 %v8995_v22, %v2374_v16  ;;  %v4943_v50 = vld [vmem:[#allocation15 + $0x28] sm:$0x3] }
 0x34b   : > { %v2814_v6 = vcombine.low %v2593_v32, %v2595_v58  ;;  %v2821_v8 = vrot.slane %v2813_v4, %v8541_v9  ;;  %v4224_v28 = vpack.c.bf16 %v9053_v57, %v9037_v15  ;;  %v4225_v39 = vpack.c.bf16 %v9094_v34, %v9041_v23  ;;  %v9332_v32 = vld [vmem:[#allocation2 + $0x180] sm:$0xff]  ;;  %v4829_v16 = vld [vmem:[#allocation2 + $0x151] sm:$0xff] }
 0x34c   : > { %v2837_v55 = vcombine.low %v2611_v61, %v2610_v54  ;;  %2899 = vst.msk [vmem:[#allocation2 + $0x1c8] sm:$0x3] %vm1436_vm3, %v2836_v20  ;;  %v2612_v52 = vcombine.high %v2610_v54, %v2610_v54  ;;  %v2619_v60 = vrot.slane %v2395_v27, %v8541_v9  ;;  %6622 = vmatmul.mubr.msk.bf16.gmra.mrb[4].mxu1 %vm1434_vm4, %v4124_v41  ;;  %v4447_v57 = vsel %vm2941_vm2, %v4433_v45, 0  ;;  %v4828_v58 = vld [vmem:[#allocation2 + $0x141] sm:$0xff]  ;;  %v4831_v54 = vld [vmem:[#allocation2 + $0x171] sm:$0xff] }
 0x34d   : > { %6568 = vmatmul.mubr.msk.bf16.vlgmr.msra.gmra.mrb[84].mxu0 %vm1434_vm4, %v3611_v18  ;;  %v2828_v22 = vrot.slane %v2814_v6, %v8541_v9  ;;  %6627 = vmatprep.mubr.msk.bf16.mxu1 %vm1434_vm4, %v4223_v59  ;;  %v4325_v15 = vpack.c.bf16 %v9125_v43, %v9069_v17  ;;  %v4326_v23 = vpack.c.bf16 %v9136_v30, %v9118_v47  ;;  %v4324_v17 = vld [vmem:[#allocation2 + $0x122] sm:$0xff]  ;;  %v4549_v47 = vsel %vm2941_vm2, %v4535_v5, 0  ;;  %v4637_v43 = vld [vmem:[#allocation15 + $0x22] sm:$0x3]  ;;  %v4833_v61 = vld [vmem:[#allocation2 + $0x191] sm:$0xff] }
 0x34e   : > { %6571 = vmatprep.mubr.msk.bf16.mxu0 %vm1434_vm4, %v3612_v38  ;;  %v2620_v0 = vcombine.high %v2619_v60, %v2619_v60  ;;  %v2838_v19 = vcombine.low %v2612_v52, %v2619_v60  ;;  %v2845_v35 = vrot.slane %v2837_v55, %v8541_v9  ;;  %v4327_v34 = vpack.c.bf16 %v9180_v46, %v9127_v49  ;;  %v4427_v49 = vld [vmem:[#allocation2 + $0x130] sm:$0xff]  ;;  %v4732_v18 = vld [vmem:[#allocation2 + $0x1a0] sm:$0xff] }
 0x34f   : > { %v2829_v25 = vcombine.low %v2821_v8, %v2828_v22  ;;  %v4431_v30 = vpack.c.bf16 %v4427_v49, %v9239_v29  ;;  %v4841_v46 = vld [vmem:[#allocation15 + $0x26] sm:$0x3]  ;;  %v4836_v4 = vpack.c.bf16 %v4829_v16, %v4828_v58  ;;  %v5673_v41 = vld [vmem:[#allocation18] sm:$0x3]  ;;  %v4957_v59 = vsel %vm2941_vm2, %v4943_v50, 0  ;;  %v4931_v8 = vld [vmem:[#allocation2 + $0x152] sm:$0xff] }
 0x350   : > { %v2852_v24 = vrot.slane %v2838_v19, %v8541_v9  ;;  %v2860_v53 = vrot.slane %v2620_v0, %v8541_v9  ;;  %v4222_v9 = vld [vmem:[#allocation2 + $0x121] sm:$0xff]  ;;  %v4855_v1 = vsel %vm2941_vm2, %v4841_v46, 0  ;;  %v4733_v42 = vld [vmem:[#allocation2 + $0x1b0] sm:$0xff]  ;;  %7010 = vmatprep.subr.msk.bf16.mxu0 %vm2941_vm2, %v5673_v41  ;;  %v5694_v38 = vsel %vm2941_vm2, %v5673_v41, 0 }
 0x351   : > { %2898 = vst.msk [vmem:[#allocation2 + $0x1c0] sm:$0xff] %vm1434_vm4, %v2829_v25  ;;  %v4226_v63 = vpack.c.bf16 %v4222_v9, %v9085_v13  ;;  %v4328_v13 = vpack.c.bf16 %v4324_v17, %v9172_v44  ;;  %v4739_v44 = vld [vmem:[#allocation15 + $0x24] sm:$0x3]  ;;  %v9344_v26 = vpack.c.bf16 %v4733_v42, %v4732_v18  ;;  %6766 = vmatpush3.bf16.msra.mxu0 %v5694_v38  ;;  %v4830_v20 = vld [vmem:[#allocation2 + $0x161] sm:$0xff]  ;;  %v5046_v52 = vld [vmem:[#allocation15 + $0x2a] sm:$0x3] }
 0x352   : > { %v2853_v37 = vcombine.low %v2845_v35, %v2852_v24  ;;  %2901 = vst.msk [vmem:[#allocation2 + $0x1d8] sm:$0x3] %vm1436_vm3, %v2860_v53  ;;  %v9351_v27 = vpack.c.bf16 %v4831_v54, %v4830_v20  ;;  %v4832_v6 = vld [vmem:[#allocation2 + $0x181] sm:$0xff]  ;;  %v4835_v60 = vld [vmem:[#allocation2 + $0x1b1] sm:$0xff] }
 0x353   : > { %v9354_v55 = vpack.c.bf16 %v4833_v61, %v4832_v6  ;;  %v4834_v22 = vld [vmem:[#allocation2 + $0x1a1] sm:$0xff]  ;;  %v4933_v25 = vld [vmem:[#allocation2 + $0x172] sm:$0xff] }
 0x354   : > { %2900 = vst.msk [vmem:[#allocation2 + $0x1d0] sm:$0xff] %vm1434_vm4, %v2853_v37  ;;  %6628 = vmatmul.mubr.msk.bf16.vlgmr.msra.gmra.mrb[0].mxu1 %vm1434_vm4, %v4224_v28  ;;  %v9361_v0 = vpack.c.bf16 %v4835_v60, %v4834_v22  ;;  %v4930_v19 = vld [vmem:[#allocation2 + $0x142] sm:$0xff]  ;;  %v4935_v35 = vld [vmem:[#allocation2 + $0x192] sm:$0xff]  ;;  %v5060_v37 = vsel %vm2941_vm2, %v5046_v52, 0  ;;  %v5145_v49 = vpack.c.bf16 %v4834_v22, %v4833_v61 }
 0x355   : > { %6572 = vmatmul.mubr.msk.bf16.gmra.mrb[88].mxu0 %vm1434_vm4, %v3613_v48  ;;  %6631 = vmatprep.mubr.msk.bf16.mxu1 %vm1434_vm4, %v4225_v39  ;;  %v4938_v21 = vpack.c.bf16 %v4931_v8, %v4930_v19  ;;  %v4932_v24 = vld [vmem:[#allocation2 + $0x162] sm:$0xff]  ;;  %v4937_v39 = vld [vmem:[#allocation2 + $0x1b2] sm:$0xff] }
 0x356   : > { %6636 = vmatpush3.bf16.msra.mxu1 %v4344_v51  ;;  %v9366_v53 = vpack.c.bf16 %v4933_v25, %v4932_v24  ;;  %v4934_v48 = vld [vmem:[#allocation2 + $0x182] sm:$0xff]  ;;  %v5148_v51 = vld [vmem:[#allocation15 + $0x2c] sm:$0x3] }
 0x357   : > { %6998 = vmatprep.subr.msk.bf16.mxu1 %vm2941_vm2, %v4433_v45  ;;  %v9369_v28 = vpack.c.bf16 %v4935_v35, %v4934_v48  ;;  %v4936_v45 = vld [vmem:[#allocation2 + $0x1a2] sm:$0xff] }
 0x35c   : > { %6632 = vmatmul.mubr.msk.bf16.gmra.mrb[4].mxu1 %vm1434_vm4, %v4226_v63 }
 0x35d   : > { %6637 = vmatprep.mubr.msk.bf16.mxu1 %vm1434_vm4, %v4325_v15 }
 0x364   : > { %6638 = vmatmul.mubr.msk.bf16.vlgmr.msra.gmra.mrb[0].mxu1 %vm1434_vm4, %v4326_v23  ;;  %v5162_v23 = vsel %vm2941_vm2, %v5148_v51, 0 }
 0x365   : > { %6641 = vmatprep.mubr.msk.bf16.mxu1 %vm1434_vm4, %v4327_v34  ;;  %6646 = vmatpush3.bf16.msra.mxu1 %v4447_v57  ;;  %v5250_v34 = vld [vmem:[#allocation15 + $0x2e] sm:$0x3] }
 0x366   : > { %6999 = vmatprep.subr.msk.bf16.mxu1 %vm2941_vm2, %v4535_v5  ;;  %v5040_v5 = vld [vmem:[#allocation2 + $0x1c0] sm:$0xff] }
 0x36c   : > { %6642 = vmatmul.mubr.msk.bf16.gmra.mrb[4].mxu1 %vm1434_vm4, %v4328_v13  ;;  %v5143_v13 = vpack.c.bf16 %v4830_v20, %v4829_v16 }
 0x36d   : > { %6647 = vmatprep.mubr.msk.bf16.mxu1 %vm1434_vm4, %v8907_v62  ;;  %v4651_v62 = vsel %vm2941_vm2, %v4637_v43, 0 }
 0x374   : > { %6648 = vmatmul.mubr.msk.bf16.vlgmr.msra.gmra.mrb[0].mxu1 %vm1434_vm4, %v8972_v56  ;;  %v4529_v56 = vld [vmem:[#allocation2 + $0x131] sm:$0xff] }
 0x375   : > { %6651 = vmatprep.mubr.msk.bf16.mxu1 %vm1434_vm4, %v9012_v2  ;;  %6656 = vmatpush3.bf16.msra.mxu1 %v4549_v47  ;;  %v4533_v2 = vpack.c.bf16 %v4529_v56, %v4222_v9  ;;  %v9376_v9 = vpack.c.bf16 %v4937_v39, %v4936_v45  ;;  %v5144_v47 = vpack.c.bf16 %v4832_v6, %v4831_v54  ;;  %v6229_v54 = vld [vmem:[#allocation17] ss:$0 sm:$0xff] }
 0x376   : > { %7000 = vmatprep.subr.msk.bf16.mxu1 %vm2941_vm2, %v4637_v43  ;;  %v5264_v43 = vsel %vm2941_vm2, %v5250_v34, 0  ;;  %v5245_v56 = vpack.c.bf16 %v4932_v24, %v4931_v8 }
 0x37c   : > { %6652 = vmatmul.mubr.msk.bf16.gmra.mrb[4].mxu1 %vm1434_vm4, %v4431_v30  ;;  %v5353_v30 = vld [vmem:[#allocation15 + $0x30] sm:$0x3] }
 0x37d   : > { %6657 = vmatprep.mubr.msk.bf16.mxu1 %vm1434_vm4, %v9057_v7  ;;  %v4753_v7 = vsel %vm2941_vm2, %v4739_v44, 0 }
 0x384   : > { %6658 = vmatmul.mubr.msk.bf16.vlgmr.msra.gmra.mrb[0].mxu1 %vm1434_vm4, %v9061_v31  ;;  %v4631_v31 = vld [vmem:[#allocation2 + $0x132] sm:$0xff] }
 0x385   : > { %6661 = vmatprep.mubr.msk.bf16.mxu1 %vm1434_vm4, %v9100_v3  ;;  %6666 = vmatpush3.bf16.msra.mxu1 %v4651_v62  ;;  %v9320_v3 = vld [vmem:[#allocation2 + $0x150] sm:$0xff]  ;;  %v4635_v29 = vpack.c.bf16 %v4631_v31, %v4324_v17  ;;  %v5044_v17 = vpack.c.bf16 %v5040_v5, %v4733_v42  ;;  %v5142_v62 = vld [vmem:[#allocation2 + $0x1c1] sm:$0xff]  ;;  %v5455_v31 = vld [vmem:[#allocation15 + $0x32] sm:$0x3] }
 0x386   : > { %7001 = vmatprep.subr.msk.bf16.mxu1 %vm2941_vm2, %v4739_v44  ;;  %v4734_v40 = vpack.c.bf16 %v9320_v3, %v4726_v14  ;;  %v5041_v63 = vpack.c.bf16 %v4728_v33, %v9320_v3  ;;  %v5146_v44 = vpack.c.bf16 %v5142_v62, %v4835_v60  ;;  %v5244_v3 = vld [vmem:[#allocation2 + $0x1c2] sm:$0xff]  ;;  %v5469_v14 = vsel %vm2941_vm2, %v5455_v31, 0 }
 0x38c   : > { %6662 = vmatmul.mubr.msk.bf16.gmra.mrb[4].mxu1 %vm1434_vm4, %v4533_v2  ;;  %v5246_v2 = vpack.c.bf16 %v4934_v48, %v4933_v25 }
 0x38d   : > { %6667 = vmatprep.mubr.msk.bf16.mxu1 %vm1434_vm4, %v9132_v10  ;;  %v9325_v10 = vld [vmem:[#allocation2 + $0x170] sm:$0xff] }
 0x38e   : > { %v5042_v15 = vpack.c.bf16 %v9332_v32, %v9325_v10 }
 0x394   : > { %6668 = vmatmul.mubr.msk.bf16.vlgmr.msra.gmra.mrb[0].mxu1 %vm1434_vm4, %v9146_v11  ;;  %v9327_v11 = vld [vmem:[#allocation2 + $0x190] sm:$0xff] }
 0x395   : > { %6671 = vmatprep.mubr.msk.bf16.mxu1 %vm1434_vm4, %v9185_v12  ;;  %6676 = vmatpush3.bf16.msra.mxu1 %v4753_v7  ;;  %v9330_v12 = vpack.c.bf16 %v9325_v10, %v4728_v33  ;;  %v9337_v36 = vpack.c.bf16 %v9327_v11, %v9332_v32  ;;  %v5043_v57 = vpack.c.bf16 %v4732_v18, %v9327_v11  ;;  %v5367_v7 = vsel %vm2941_vm2, %v5353_v30, 0  ;;  %v5347_v10 = vld [vmem:[#allocation2 + $0x1d0] sm:$0xff] }
 0x396   : > { %7002 = vmatprep.subr.msk.bf16.mxu1 %vm2941_vm2, %v4841_v46  ;;  %v5247_v46 = vpack.c.bf16 %v4936_v45, %v4935_v35  ;;  %v5351_v11 = vpack.c.bf16 %v5347_v10, %v5040_v5  ;;  %v5762_v10 = vld [vmem:[%s8386_s15 + $0x8] sm:$0xff] }
 0x39c   : > { %6672 = vmatmul.mubr.msk.bf16.gmra.mrb[4].mxu1 %vm1434_vm4, %v4635_v29  ;;  %v5248_v29 = vpack.c.bf16 %v5244_v3, %v4937_v39 }
 0x39d   : > { %6677 = vmatprep.mubr.msk.bf16.mxu1 %vm1434_vm4, %v4734_v40  ;;  %v5557_v40 = vld [vmem:[#allocation15 + $0x34] sm:$0x3] }
 0x39e   : > { %v5571_v33 = vsel %vm2941_vm2, %v5557_v40, 0 }
 0x3a4   : > { %6678 = vmatmul.mubr.msk.bf16.vlgmr.msra.gmra.mrb[0].mxu1 %vm1434_vm4, %v9330_v12 }
 0x3a5   : > { %6681 = vmatprep.mubr.msk.bf16.mxu1 %vm1434_vm4, %v9337_v36  ;;  %6686 = vmatpush3.bf16.msra.mxu1 %v4855_v1 }
 0x3a6   : > { %7003 = vmatprep.subr.msk.bf16.mxu1 %vm2941_vm2, %v4943_v50 }
 0x3ac   : > { %6682 = vmatmul.mubr.msk.bf16.gmra.mrb[4].mxu1 %vm1434_vm4, %v9344_v26 }
 0x3ad   : > { %6687 = vmatprep.mubr.msk.bf16.mxu1 %vm1434_vm4, %v4836_v4 }
 0x3b4   : > { %6688 = vmatmul.mubr.msk.bf16.vlgmr.msra.gmra.mrb[0].mxu1 %vm1434_vm4, %v9351_v27 }
 0x3b5   : > { %6691 = vmatprep.mubr.msk.bf16.mxu1 %vm1434_vm4, %v9354_v55  ;;  %6696 = vmatpush3.bf16.msra.mxu1 %v4957_v59 }
 0x3b6   : > { %7004 = vmatprep.subr.msk.bf16.mxu1 %vm2941_vm2, %v5046_v52 }
 0x3bc   : > { %6692 = vmatmul.mubr.msk.bf16.gmra.mrb[4].mxu1 %vm1434_vm4, %v9361_v0 }
 0x3bd   : > { %6697 = vmatprep.mubr.msk.bf16.mxu1 %vm1434_vm4, %v4938_v21 }
 0x3c4   : > { %6698 = vmatmul.mubr.msk.bf16.vlgmr.msra.gmra.mrb[0].mxu1 %vm1434_vm4, %v9366_v53 }
 0x3c5   : > { %6701 = vmatprep.mubr.msk.bf16.mxu1 %vm1434_vm4, %v9369_v28  ;;  %6706 = vmatpush3.bf16.msra.mxu1 %v5060_v37 }
 0x3c6   : > { %7005 = vmatprep.subr.msk.bf16.mxu1 %vm2941_vm2, %v5148_v51 }
 0x3cc   : > { %6702 = vmatmul.mubr.msk.bf16.gmra.mrb[4].mxu1 %vm1434_vm4, %v9376_v9 }
 0x3cd   : > { %6707 = vmatprep.mubr.msk.bf16.mxu1 %vm1434_vm4, %v5041_v63 }
 0x3d4   : > { %6708 = vmatmul.mubr.msk.bf16.vlgmr.msra.gmra.mrb[0].mxu1 %vm1434_vm4, %v5042_v15 }
 0x3d5   : > { %6711 = vmatprep.mubr.msk.bf16.mxu1 %vm1434_vm4, %v5043_v57  ;;  %6716 = vmatpush3.bf16.msra.mxu1 %v5162_v23 }
 0x3d6   : > { %7006 = vmatprep.subr.msk.bf16.mxu1 %vm2941_vm2, %v5250_v34 }
 0x3dc   : > { %6712 = vmatmul.mubr.msk.bf16.gmra.mrb[4].mxu1 %vm1434_vm4, %v5044_v17 }
 0x3dd   : > { %6717 = vmatprep.mubr.msk.bf16.mxu1 %vm1434_vm4, %v5143_v13 }
 0x3e4   : > { %6718 = vmatmul.mubr.msk.bf16.vlgmr.msra.gmra.mrb[0].mxu1 %vm1434_vm4, %v5144_v47 }
 0x3e5   : > { %6721 = vmatprep.mubr.msk.bf16.mxu1 %vm1434_vm4, %v5145_v49  ;;  %6726 = vmatpush3.bf16.msra.mxu1 %v5264_v43 }
 0x3e6   : > { %7007 = vmatprep.subr.msk.bf16.mxu1 %vm2941_vm2, %v5353_v30  ;;  %v6230_v30 = vld [vmem:[#allocation20] ss:$0 sm:$0xff] }
 0x3ec   : > { %6722 = vmatmul.mubr.msk.bf16.gmra.mrb[4].mxu1 %vm1434_vm4, %v5146_v44  ;;  %v5763_v44 = vld [vmem:[%s8386_s15 + $0x10] sm:$0xff] }
 0x3ed   : > { %6727 = vmatprep.mubr.msk.bf16.mxu1 %vm1434_vm4, %v5245_v56 }
 0x3f4   : > { %6728 = vmatmul.mubr.msk.bf16.vlgmr.msra.gmra.mrb[0].mxu1 %vm1434_vm4, %v5246_v2 }
 0x3f5   : > { %6731 = vmatprep.mubr.msk.bf16.mxu1 %vm1434_vm4, %v5247_v46  ;;  %6736 = vmatpush3.bf16.msra.mxu1 %v5367_v7  ;;  %v5761_v7 = vld [vmem:[%s8386_s15] sm:$0xff] }
 0x3f6   : > { %7008 = vmatprep.subr.msk.bf16.mxu1 %vm2941_vm2, %v5455_v31 }
 0x3fc   : > { %6732 = vmatmul.mubr.msk.bf16.gmra.mrb[4].mxu1 %vm1434_vm4, %v5248_v29 }
 0x3fd   : > { %6737 = vmatprep.mubr.msk.bf16.mxu1 %vm1434_vm4, %v9330_v12  ;;  %v5449_v12 = vld [vmem:[#allocation2 + $0x1d1] sm:$0xff] }
 0x3fe   : > { %v5453_v32 = vpack.c.bf16 %v5449_v12, %v5142_v62 }
 0x404   : > { %6738 = vmatmul.mubr.msk.bf16.vlgmr.msra.gmra.mrb[0].mxu1 %vm1434_vm4, %v9337_v36 }
 0x405   : > { %6741 = vmatprep.mubr.msk.bf16.mxu1 %vm1434_vm4, %v9344_v26  ;;  %6746 = vmatpush3.bf16.msra.mxu1 %v5469_v14  ;;  %v5551_v26 = vld [vmem:[#allocation2 + $0x1d2] sm:$0xff] }
 0x406   : > { %7009 = vmatprep.subr.msk.bf16.mxu1 %vm2941_vm2, %v5557_v40  ;;  %v5555_v41 = vpack.c.bf16 %v5551_v26, %v5244_v3  ;;  %v5764_v3 = vld [vmem:[%s8386_s15 + $0x18] sm:$0xff] }
 0x40c   : > { %6742 = vmatmul.mubr.msk.bf16.gmra.mrb[4].mxu1 %vm1434_vm4, %v5351_v11 }
 0x40d   : > { %6747 = vmatprep.mubr.msk.bf16.mxu1 %vm1434_vm4, %v9351_v27 }
 0x414   : > { %6748 = vmatmul.mubr.msk.bf16.vlgmr.msra.gmra.mrb[0].mxu1 %vm1434_vm4, %v9354_v55 }
 0x415   : > { %6751 = vmatprep.mubr.msk.bf16.mxu1 %vm1434_vm4, %v9361_v0  ;;  %6756 = vmatpush3.bf16.msra.mxu1 %v5571_v33 }
 0x41c   : > { %6752 = vmatmul.mubr.msk.bf16.gmra.mrb[4].mxu1 %vm1434_vm4, %v5453_v32 }
 0x41d   : > { %6757 = vmatprep.mubr.msk.bf16.mxu1 %vm1434_vm4, %v9366_v53 }
 0x420   : > { %v6569_v1 = vpop.f32.mrb[84].mxu0 }
 0x421   : > { %v3665_v36 = vpop.f32.mrb[85].mxu0 }
 0x422   : > { %v6570_v50 = vpop.f32.mrb[86].mxu0 }
 0x423   : > { %v3668_v42 = vpop.f32.mrb[87].mxu0 }
 0x424   : > { %6758 = vmatmul.mubr.msk.bf16.vlgmr.msra.gmra.mrb[0].mxu1 %vm1434_vm4, %v9369_v28 }
 0x425   : > { %6761 = vmatprep.mubr.msk.bf16.mxu1 %vm1434_vm4, %v9376_v9 }
 0x428   : > { %v6573_v16 = vpop.f32.mrb[88].mxu0 }
 0x429   : > { %v3681_v18 = vpop.f32.mrb[89].mxu0 }
 0x42a   : > { %v6574_v58 = vpop.f32.mrb[90].mxu0 }
 0x42b   : > { %v3684_v4 = vpop.f32.mrb[91].mxu0 }
 0x42c   : > { %6762 = vmatmul.mubr.msk.bf16.gmra.mrb[4].mxu1 %vm1434_vm4, %v5555_v41 }
 0x4f7   : > { %v6759_v38 = vpop.f32.mrb[0].mxu1 }
 0x4f8   : > { %v6775_v61 = vadd.f32 %v6759_v38, %v6569_v1  ;;  %v5607_v20 = vpop.f32.mrb[1].mxu1 }
 0x4f9   : > { %v6776_v27 = vadd.f32 %v5607_v20, %v3665_v36  ;;  %v6760_v6 = vpop.f32.mrb[2].mxu1 }
 0x4fa   : > { %v5655_v59 = vadd.f32 %v6775_v61, %v6229_v54  ;;  %v6777_v55 = vadd.f32 %v6760_v6, %v6570_v50  ;;  %v5610_v52 = vpop.f32.mrb[3].mxu1  ;;  %v5766_v6 = vld [vmem:[%s8386_s15 + $0x28] sm:$0xff] }
 0x4fb   : > { %v5653_v60 = vadd.f32 %v6776_v27, %v6229_v54  ;;  %v6778_v8 = vadd.f32 %v5610_v52, %v3668_v42 }
 0x4fc   : > { %v5656_v22 = vadd.f32 %v6777_v55, %v6229_v54  ;;  %v5663_v19 = vmax.f32 %v5655_v59, 0.0 }
 0x4fd   : > { %v5654_v0 = vadd.f32 %v6778_v8, %v6229_v54  ;;  %v5661_v25 = vmax.f32 %v5653_v60, 0.0 }
 0x4fe   : > { %v5664_v21 = vmax.f32 %v5656_v22, 0.0 }
 0x4ff   : > { %v5662_v35 = vmax.f32 %v5654_v0, 0.0  ;;  %v6763_v24 = vpop.f32.mrb[4].mxu1 }
 0x500   : > { %v5670_v53 = vpack.c.bf16 %v5664_v21, %v5663_v19  ;;  %v6779_v48 = vadd.f32 %v6763_v24, %v6573_v16  ;;  %v5623_v37 = vpop.f32.mrb[5].mxu1 }
 0x501   : > { %v5669_v28 = vpack.c.bf16 %v5662_v35, %v5661_v25  ;;  %v6780_v51 = vadd.f32 %v5623_v37, %v3681_v18  ;;  %v6764_v39 = vpop.f32.mrb[6].mxu1  ;;  %v5767_v18 = vld [vmem:[%s8386_s15 + $0x30] sm:$0xff] }
 0x502   : > { %v5659_v45 = vadd.f32 %v6779_v48, %v6229_v54  ;;  %v6781_v9 = vadd.f32 %v6764_v39, %v6574_v58  ;;  %v5626_v63 = vpop.f32.mrb[7].mxu1 }
 0x503   : > { %v5657_v15 = vadd.f32 %v6780_v51, %v6229_v54  ;;  %v6782_v23 = vadd.f32 %v5626_v63, %v3684_v4  ;;  %6767 = vmatprep.mubr.msk.bf16.mxu0 %vm1434_vm4, %v5669_v28  ;;  %v5765_v4 = vld [vmem:[%s8386_s15 + $0x20] sm:$0xff] }
 0x504   : > { %v5660_v57 = vadd.f32 %v6781_v9, %v6229_v54  ;;  %6768 = vmatmul.mubr.msk.bf16.vlgmr.msra.gmra.mrb[92].mxu0 %vm1434_vm4, %v5670_v53  ;;  %v5667_v5 = vmax.f32 %v5659_v45, 0.0 }
 0x505   : > { %v5658_v34 = vadd.f32 %v6782_v23, %v6229_v54  ;;  %v5665_v13 = vmax.f32 %v5657_v15, 0.0  ;;  %v5768_v54 = vld [vmem:[%s8386_s15 + $0x38] sm:$0xff] }
 0x506   : > { %v5668_v17 = vmax.f32 %v5660_v57, 0.0 }
 0x507   : > { %v5666_v47 = vmax.f32 %v5658_v34, 0.0 }
 0x508   : > { %v5672_v43 = vpack.c.bf16 %v5668_v17, %v5667_v5 }
 0x509   : > { %v5671_v49 = vpack.c.bf16 %v5666_v47, %v5665_v13 }
 0x50b   : > { %6771 = vmatprep.mubr.msk.bf16.mxu0 %vm1434_vm4, %v5671_v49 }
 0x50c   : > { %6772 = vmatmul.mubr.msk.bf16.gmra.mrb[96].mxu0 %vm1434_vm4, %v5672_v43 }
 0x5d7   : > { %v6769_v62 = vpop.f32.mrb[92].mxu0 }
 0x5d8   : > { %v5739_v56 = vadd.f32 %v6769_v62, %v6230_v30  ;;  %v5730_v2 = vpop.f32.mrb[93].mxu0 }
 0x5d9   : > { %v5731_v46 = vadd.f32 %v6230_v30, %v5730_v2  ;;  %v6770_v31 = vpop.f32.mrb[94].mxu0 }
 0x5da   : > { %v5771_v29 = vadd.f32 %v5763_v44, %v5739_v56  ;;  %v5742_v14 = vadd.f32 %v6770_v31, %v6230_v30  ;;  %v5733_v40 = vpop.f32.mrb[95].mxu0 }
 0x5db   : > { %v5769_v11 = vadd.f32 %v5761_v7, %v5731_v46  ;;  %v5734_v33 = vadd.f32 %v6230_v30, %v5733_v40 }
 0x5dc   : > { %v5779_v12 = vmax.f32 %v5771_v29, 0.0  ;;  %v5772_v32 = vadd.f32 %v5764_v3, %v5742_v14 }
 0x5dd   : > { %v5777_v1 = vmax.f32 %v5769_v11, 0.0  ;;  %v5770_v36 = vadd.f32 %v5762_v10, %v5734_v33 }
 0x5de   : > { %5787 = vst.msk [vmem:[%s9436_s14 + $0x10] sm:$0xff] %vm728_vm1, %v5779_v12  ;;  %v5780_v50 = vmax.f32 %v5772_v32, 0.0 }
 0x5df   : > { %5785 = vst.msk [vmem:[%s9436_s14] sm:$0xff] %vm728_vm1, %v5777_v1  ;;  %v5778_v42 = vmax.f32 %v5770_v36, 0.0  ;;  %v6773_v16 = vpop.f32.mrb[96].mxu0 }
 0x5e0   : > { %5788 = vst.msk [vmem:[%s9436_s14 + $0x18] sm:$0xff] %vm728_vm1, %v5780_v50  ;;  %v5755_v26 = vadd.f32 %v6773_v16, %v6230_v30  ;;  %v5746_v58 = vpop.f32.mrb[97].mxu0 }
 0x5e1   : > { %5786 = vst.msk [vmem:[%s9436_s14 + $0x8] sm:$0xff] %vm728_vm1, %v5778_v42  ;;  %v5747_v41 = vadd.f32 %v6230_v30, %v5746_v58  ;;  %v6774_v38 = vpop.f32.mrb[98].mxu0 }
 0x5e2   : > { %v5775_v61 = vadd.f32 %v5767_v18, %v5755_v26  ;;  %v5758_v20 = vadd.f32 %v6774_v38, %v6230_v30  ;;  %v5749_v27 = vpop.f32.mrb[99].mxu0 }
 0x5e3   : > { %v5773_v59 = vadd.f32 %v5765_v4, %v5747_v41  ;;  %v5750_v55 = vadd.f32 %v6230_v30, %v5749_v27 }
 0x5e4   : > { %v5783_v52 = vmax.f32 %v5775_v61, 0.0  ;;  %v5776_v60 = vadd.f32 %v5768_v54, %v5758_v20 }
 0x5e5   : > { %v5781_v8 = vmax.f32 %v5773_v59, 0.0  ;;  %v5774_v22 = vadd.f32 %v5766_v6, %v5750_v55 }
 0x5e6   : > { %5791 = vst.msk [vmem:[%s9436_s14 + $0x30] sm:$0xff] %vm728_vm1, %v5783_v52  ;;  %v5784_v0 = vmax.f32 %v5776_v60, 0.0 }
 0x5e7   : > { %5789 = vst.msk [vmem:[%s9436_s14 + $0x20] sm:$0xff] %vm728_vm1, %v5781_v8  ;;  %v5782_v19 = vmax.f32 %v5774_v22, 0.0 }
 0x5e8   : > { %5792 = vst.msk [vmem:[%s9436_s14 + $0x38] sm:$0xff] %vm728_vm1, %v5784_v0 }
 0x5e9   : > { %5790 = vst.msk [vmem:[%s9436_s14 + $0x28] sm:$0xff] %vm728_vm1, %v5782_v19 }
 0x5ea   : > { %7601 = shalt.err (!%p7598_p12)
}
 0x5eb   : > { %s7602_s26 = scalar_lea.hbm %s9462_s8, 1024  ;;  %s7606_s17 = scalar_lea.hbm %s9701_s1, 16384 }
 0x5ec   : > { %p7603_p6 = scmp.ne.s32.totalorder %s9462_s8, %s7602_s26  ;;  %p7607_p13 = scmp.lt.u32.totalorder %s9462_s8, %s9701_s1 }
 0x5ed   : > { %p7608_p0 = scmp.lt.u32.totalorder %s7606_s17, %s7602_s26  ;;  %p7610_p1 = scmp.lt.u32.totalorder %s7602_s26, %s9462_s8 }
 0x5ee   : > { %p7604_p9 = pnand %p7603_p6, %p9702_p11 }
 0x5ef   : > { %p7609_p3 = por %p7608_p0, %p7607_p13 }
 0x5f0   : > { %p7605_p5 = pneg %p7604_p9 }
 0x5f1   : > { %p7611_p8 = por %p7610_p1, %p7609_p3 }
 0x5f3   : > { %p7612_p7 = pnand %p7611_p8, %p7605_p5 }
 0x5f5   : > { %7615 = shalt.err (!%p7612_p7)
}
 0x5f6   : > { %s7786_s3 = smov 128   ;;  %s7787_s19 = smov 8  }
 0x5f7   : > { %7055 = dma.vmem_to_hbm [thread:$0]  (%p9702_p11), %s9455_s24, 1024, %s9462_s8, %s5794_s25, %s7786_s3, %s7786_s3, %s7787_s19  }
 0x5f8 PF: > { %s9703_s18 = sld [smem:[#allocation34_spill]]  ;;  %p7111_p10 = scmp.ge.s32.totalorder %s7762_s30, 2 }
 0x5f9   : > { %p9704_p2 = scmp.ne.s32.totalorder %s9647_s20, 0 }
 0x5fb   : > { %p7093_p4 = pnand %p7111_p10, %p9704_p2 }
 0x5fe   : > { %s5824_s12 = sand.u32 1, %s9703_s18  }
 0x5ff   : > { %s5825_s15 = scalar_lea.sflag [#allocation5], %s5824_s12 }
 0x600   : > { %7705 = dma.done.wait (!%p7093_p4), %s5825_s15, 1024  }
 0x601   : > { %7707 = vsyncadd (!%p7093_p4), %s5825_s15, 4294966272  ;;  %s36_s30 = sadd.s32 1, %s7762_s30   ;;  %s9706_s17 = sld [smem:[#allocation32_spill]] }
 0x602   : > { %p9497_p12 = scmp.ge.s32.totalorder %s36_s30, 18   ;;  %s9707_s18 = sld [smem:[#allocation33_spill]] }
 0x603   : > { %s9708_s4 = sld [smem:[#allocation43_spill]]  ;;  %s9709_s23 = sld [smem:[#allocation35_spill]] }
 0x604   : > { %s9710_s24 = sld [smem:[#allocation36_spill]]  ;;  %s9711_s25 = sld [smem:[#allocation44_spill]] }
 0x605   : > { %s9712_s8 = sld [smem:[#allocation40_spill]]  ;;  %s9713_s9 = sld [smem:[#allocation41_spill]] }
 0x606   : > { %s9714_s19 = smov %s9727_s6  ;;  %s9715_s20 = smov %s7726_s21 }
 0x607   : > { %s9716_s21 = smov %s7730_s22  ;;  %s9718_s26 = smov %s7754_s28 }
 0x608   : > { %s9719_s27 = smov %s7758_s29  ;;  %35 = sbr.rel (!%p9497_p12) target bundleno = 30 (0x1e), region = 208 }
 0x609   : > { %s9717_s22 = smov %s9708_s4 }
 0x60b   : > { %s9720_s28 = smov %s9712_s8  ;;  %s9721_s29 = smov %s9713_s9 }
 0x60f   :  { %5830 = vsyncpa [#allocation4], 1 }
 0x610   :  { %5832 = vsyncpa [#allocation4 + $0x1], 1 }
 0x611   :  { %5833 = vsyncpa [#allocation7], 1 }
 0x612   :  { %5835 = vsyncpa [#allocation7 + $0x1], 1 }
 0x613   :  { %5836 = vsyncpa [#allocation10], 1 }
 0x614   :  { %5838 = vsyncpa [#allocation10 + $0x1], 1 }
 0x615   :  { %5839 = vsyncpa [#allocation13], 1 }
 0x616   :  { %5840 = vsyncpa [#allocation16], 1 }
 0x617   :  { %5841 = vsyncpa [#allocation19], 1 }
 0x618   :  { %5842 = vsyncpa [#allocation5], 1 }
 0x619   :  { %5844 = vsyncpa [#allocation5 + $0x1], 1 }

</bundles_post_ra>
